<compile_context>
chip_gen: v5e
topology: v5e:2x2
jax: 0.10.0
libtpu: 0.0.40
codegen_flags: <defaults>
</compile_context>

<pallas_src>
import functools

import jax
import jax.numpy as jnp
from jax import lax
from jax.experimental import pallas as pl
from jax.experimental.pallas import tpu as pltpu

EXPANSION = 4
BN_EPS = 1e-5
LANE = 128


def _round_up(x, m):
    return (x + m - 1) // m * m


def _device_kind():
    try:
        return jax.devices()[0].device_kind.lower()
    except Exception:
        return ""


def _gen_params():
    """Per-generation knobs: (use_im2col, tile_pixel_cap, vmem_limit_bytes, x_buffers)."""
    kind = _device_kind()
    is_v5e = ("v5 lite" in kind) or ("v5e" in kind) or ("v5lite" in kind)
    is_v7 = ("v7" in kind) or ("tpu7" in kind)
    if is_v5e:
        # 128-wide MXU: K=128 accumulated dots are already native; 128 MiB VMEM;
        # deeper x pipeline hides the per-batch whole-image DMA.
        return False, 4096, 96 * 1024 * 1024, 3
    if is_v7:
        # 64 MiB physical VMEM: smaller tiles, tighter scoped budget.
        return True, 2048, 48 * 1024 * 1024, 2
    if ("v4" in kind) or ("v5" in kind) or ("v6" in kind):
        return True, 4096, 96 * 1024 * 1024, 2
    return True, 2048, 32 * 1024 * 1024, 2


def _pick_row_tile(H, W, cap_pixels):
    """Rows per spatial tile: divides H, keeps TH*W a multiple of 8, prefers >=2 tiles."""
    cands = [th for th in range(1, H + 1) if H % th == 0 and (th * W) % 8 == 0]
    if not cands:
        return H
    fit = [th for th in cands if th * W <= cap_pixels]
    if not fit:
        return min(cands)
    multi = [th for th in fit if H // th >= 2]
    return max(multi) if multi else max(fit)


def _bottleneck_kernel(x_ref, w1_ref, w2_ref, w3_ref, b1_ref, b2_ref, b3_ref,
                       out_ref, *scratch, H, W, TH, OFF, use_im2col):
    t1_scr = scratch[0]
    HW = H * W
    THW = TH * W
    Lp = t1_scr.shape[0]                       # THW + 2*OFF (haloed window rows)
    Pp = t1_scr.shape[1]

    t = pl.program_id(1)
    start = t * THW                            # row offset into the (padded) image
    if THW % 8 == 0:
        start = pl.multiple_of(start, 8)

    # Haloed bf16 input window for this row tile (x is zero-padded by OFF rows each
    # side in the wrapper, so this slice is always in bounds).
    xw = x_ref[pl.ds(start, Lp), :]            # (Lp, Cp) bf16

    # ---- conv1 (1x1, BN scale folded into w1) + bias + ReLU ------------------
    t1 = jnp.dot(xw, w1_ref[...], preferred_element_type=jnp.float32)   # (Lp, Pp) f32
    t1 = jnp.maximum(t1 + b1_ref[...], 0.0)

    # Zero halo rows outside the image (reproduces conv2's vertical zero padding).
    j = lax.broadcasted_iota(jnp.int32, (Lp, 1), 0)
    g = j + (t * THW - OFF)                    # global flat pixel index of each row
    inside = (g >= 0) & (g < HW)
    t1_scr[...] = jnp.where(inside, t1, 0.0).astype(jnp.bfloat16)

    # Column-edge masks (horizontal zero padding), computed once per step in-kernel
    # and lane-broadcast by the select — no HBM traffic for masks.
    col = lax.broadcasted_iota(jnp.int32, (THW, 1), 0) % W
    not_l = col != 0
    not_r = col != (W - 1)

    def tap(k):
        oy, ox = k // 3 - 1, k % 3 - 1
        sl = t1_scr[pl.ds(OFF + oy * W + ox, THW), :]        # static shifted view
        if ox == -1:
            sl = jnp.where(not_l, sl, 0)
        elif ox == 1:
            sl = jnp.where(not_r, sl, 0)
        return sl

    if use_im2col:
        # ---- conv2 (3x3) as ONE K = 9*Pp matmul; taps staged in a VMEM scratch
        # (each tap stored exactly once — no concatenate copy). v6e/v7x path.
        lhs_scr = scratch[1]                                  # (THW, 9*Pp) bf16
        for k in range(9):
            lhs_scr[:, k * Pp:(k + 1) * Pp] = tap(k)
        t2 = jnp.dot(lhs_scr[...], w2_ref[...], preferred_element_type=jnp.float32)
    else:
        # ---- v5e path: 9 accumulated K = Pp dots (128-wide MXU native width).
        t2 = jnp.zeros((THW, Pp), jnp.float32)
        for k in range(9):
            t2 = t2 + jnp.dot(tap(k), w2_ref[k * Pp:(k + 1) * Pp, :],
                              preferred_element_type=jnp.float32)
    t2 = jnp.maximum(t2 + b2_ref[...], 0.0)                   # (THW, Pp) f32

    # ---- conv3 (1x1) + bias + residual + ReLU (bias/residual add in f32) -----
    t3 = jnp.dot(t2.astype(jnp.bfloat16), w3_ref[...],
                 preferred_element_type=jnp.float32)          # (THW, Cp) f32
    res = xw[OFF:OFF + THW, :].astype(jnp.float32)            # aligned residual rows
    out_ref[...] = jnp.maximum(t3 + b3_ref[...] + res, 0.0).astype(out_ref.dtype)


def bottleneck_forward(x_nhwc, w1, w2_hwio, w3, bn1, bn2, bn3,
                       out_dtype=jnp.bfloat16):
    """x_nhwc: (B,H,W,Cin); w1: (Cin,P); w2_hwio: (3,3,P,P); w3: (P,4P);
    bn* = (gamma, beta, running_mean, running_var) — eval-mode BatchNorm."""
    B, H, W, Cin = x_nhwc.shape
    P = w1.shape[1]
    Cout = w3.shape[1]
    assert Cout == P * EXPANSION
    assert Cin == Cout, "downsample=None / stride=1 requires inplanes == planes*expansion"
    # TODO(synk): stride>1 / downsample branch of the module is not implemented.

    use_im2col, cap_pixels, vmem_limit, x_buffers = _gen_params()

    HW = H * W
    Cp = _round_up(Cin, LANE)
    Pp = _round_up(P, LANE)
    if use_im2col:
        # keep the (THW, 9*Pp) bf16 LHS scratch within ~8 MiB
        cap_pixels = min(cap_pixels, max(8, (8 * 1024 * 1024) // (9 * Pp * 2)))
    TH = _pick_row_tile(H, W, cap_pixels)
    T = H // TH
    THW = TH * W
    OFF = _round_up(W + 1, 8)                 # halo rows (>= one image row + 1)
    L = THW + 2 * OFF                         # haloed window length (rows)
    HWp = HW + 2 * OFF                        # spatially zero-padded image length

    f32 = jnp.float32
    bf16 = jnp.bfloat16

    # --- fold BatchNorm (eval mode) into weight scales + per-channel biases ---
    def fold(bn):
        gamma, beta, mean, var = bn
        s = gamma.astype(f32) / jnp.sqrt(var.astype(f32) + BN_EPS)
        return s, beta.astype(f32) - mean.astype(f32) * s

    s1, b1 = fold(bn1)
    s2, b2 = fold(bn2)
    s3, b3 = fold(bn3)

    w1s = w1.astype(f32) * s1[None, :]
    w2s = w2_hwio.astype(f32) * s2[None, None, None, :]
    w3s = w3.astype(f32) * s3[None, :]

    # --- lane-pad channels, cast matmul weights to bf16, build im2col w2 ------
    w1p = jnp.zeros((Cp, Pp), f32).at[:Cin, :P].set(w1s).astype(bf16)
    w3p = jnp.zeros((Pp, Cp), f32).at[:P, :Cout].set(w3s).astype(bf16)
    w2m = jnp.zeros((9 * Pp, Pp), f32)
    for k in range(9):
        ky, kx = divmod(k, 3)
        w2m = w2m.at[k * Pp:k * Pp + P, :P].set(w2s[ky, kx])
    w2m = w2m.astype(bf16)

    b1p = jnp.zeros((1, Pp), f32).at[0, :P].set(b1)
    b2p = jnp.zeros((1, Pp), f32).at[0, :P].set(b2)
    b3p = jnp.zeros((1, Cp), f32).at[0, :Cout].set(b3)

    # --- bf16, spatially + channel padded, flattened input (zero halo rows) ---
    x_flat = x_nhwc.astype(bf16).reshape(B, HW, Cin)
    x_pad = jnp.zeros((B, HWp, Cp), bf16).at[:, OFF:OFF + HW, :Cin].set(x_flat)

    kernel = functools.partial(_bottleneck_kernel, H=H, W=W, TH=TH, OFF=OFF,
                               use_im2col=use_im2col)

    x_spec_kwargs = {}
    if x_buffers != 2:
        # v5e: deeper pipeline so the next batch's whole-image DMA starts early.
        x_spec_kwargs = dict(pipeline_mode=pl.Buffered(x_buffers))

    scratch_shapes = [pltpu.VMEM((L, Pp), bf16)]              # halo'd t1
    if use_im2col:
        scratch_shapes.append(pltpu.VMEM((THW, 9 * Pp), bf16))  # staged im2col LHS

    out_flat = pl.pallas_call(
        kernel,
        out_shape=jax.ShapeDtypeStruct((B, HW, Cp), out_dtype),
        grid_spec=pltpu.PrefetchScalarGridSpec(
            num_scalar_prefetch=0,
            grid=(B, T),
            in_specs=[
                pl.BlockSpec((None, HWp, Cp), lambda b, t: (b, 0, 0),
                             **x_spec_kwargs),                           # x (resident per b)
                pl.BlockSpec((Cp, Pp), lambda b, t: (0, 0)),             # w1 (BN folded)
                pl.BlockSpec((9 * Pp, Pp), lambda b, t: (0, 0)),         # w2 im2col matrix
                pl.BlockSpec((Pp, Cp), lambda b, t: (0, 0)),             # w3
                pl.BlockSpec((1, Pp), lambda b, t: (0, 0)),              # bn1 bias
                pl.BlockSpec((1, Pp), lambda b, t: (0, 0)),              # bn2 bias
                pl.BlockSpec((1, Cp), lambda b, t: (0, 0)),              # bn3 bias
            ],
            out_specs=pl.BlockSpec((None, THW, Cp), lambda b, t: (b, t, 0)),
            scratch_shapes=scratch_shapes,
        ),
        compiler_params=pltpu.CompilerParams(
            dimension_semantics=("parallel", "parallel"),
            vmem_limit_bytes=vmem_limit),
    )(x_pad, w1p, w2m, w3p, b1p, b2p, b3p)

    if Cout == Cp:                                            # real ResNet shapes: no copy
        return out_flat.reshape(B, H, W, Cout)
    return out_flat[:, :, :Cout].reshape(B, H, W, Cout)


# ------------------------------ reference (f32) ------------------------------
def _reference(x, w1, w2_hwio, w3, bn1, bn2, bn3):
    dn = ("NHWC", "HWIO", "NHWC")

    def bn_apply(t, bn):
        gamma, beta, mean, var = bn
        s = gamma / jnp.sqrt(var + BN_EPS)
        return t * s + (beta - mean * s)

    hi = lax.Precision.HIGHEST
    t = lax.conv_general_dilated(x, w1.reshape(1, 1, *w1.shape), (1, 1), "VALID",
                                 dimension_numbers=dn, precision=hi)
    t = jnp.maximum(bn_apply(t, bn1), 0.0)
    t = lax.conv_general_dilated(t, w2_hwio, (1, 1), ((1, 1), (1, 1)),
                                 dimension_numbers=dn, precision=hi)
    t = jnp.maximum(bn_apply(t, bn2), 0.0)
    t = lax.conv_general_dilated(t, w3.reshape(1, 1, *w3.shape), (1, 1), "VALID",
                                 dimension_numbers=dn, precision=hi)
    t = bn_apply(t, bn3)
    return jnp.maximum(t + x, 0.0)


if __name__ == "__main__":
    B, H, W = 2, 16, 16
    planes = 4
    inplanes = planes * EXPANSION        # 16; downsample=None => residual needs this

    key = jax.random.PRNGKey(0)
    ks = jax.random.split(key, 8)

    x = jax.random.normal(ks[0], (B, H, W, inplanes), jnp.float32)
    w1 = jax.random.normal(ks[1], (inplanes, planes), jnp.float32) * 0.2
    w2_hwio = jax.random.normal(ks[2], (3, 3, planes, planes), jnp.float32) * 0.2
    w3 = jax.random.normal(ks[3], (planes, planes * EXPANSION), jnp.float32) * 0.2

    def bn_params(k, c):
        k1, k2, k3, k4 = jax.random.split(k, 4)
        return (jax.random.uniform(k1, (c,), jnp.float32, 0.5, 1.5),   # gamma
                jax.random.normal(k2, (c,), jnp.float32) * 0.1,        # beta
                jax.random.normal(k3, (c,), jnp.float32) * 0.1,        # running mean
                jax.random.uniform(k4, (c,), jnp.float32, 0.5, 1.5))   # running var

    bn1 = bn_params(ks[4], planes)
    bn2 = bn_params(ks[5], planes)
    bn3 = bn_params(ks[6], planes * EXPANSION)

    out = bottleneck_forward(x, w1, w2_hwio, w3, bn1, bn2, bn3)
    out = jax.block_until_ready(out)

    ref = _reference(x, w1, w2_hwio, w3, bn1, bn2, bn3)
    assert out.shape == (B, H, W, planes * EXPANSION)
    out_f32 = out.astype(jnp.float32)
    # bf16 input/weights/output (f32 accumulation, f32 bias + residual add)
    # -> relaxed tolerance.
    max_err = float(jnp.max(jnp.abs(out_f32 - ref)))
    assert jnp.allclose(out_f32, ref, rtol=3e-2, atol=3e-2), max_err

    print("KERNEL_OK")
</pallas_src>

<mosaic_0001>
module attributes {stable_mosaic.version = 11 : i64} {
  func.func @_bottleneck_kernel(%arg0: i32, %arg1: i32, %arg2: memref<1x304x128xbf16, #tpu.memory_space<vmem>>, %arg3: memref<128x128xbf16, #tpu.memory_space<vmem>>, %arg4: memref<1152x128xbf16, #tpu.memory_space<vmem>>, %arg5: memref<128x128xbf16, #tpu.memory_space<vmem>>, %arg6: memref<1x128xf32, #tpu.memory_space<vmem>>, %arg7: memref<1x128xf32, #tpu.memory_space<vmem>>, %arg8: memref<1x128xf32, #tpu.memory_space<vmem>>, %arg9: memref<1x128x128xbf16, #tpu.memory_space<vmem>>, %arg10: memref<176x128xbf16, #tpu.memory_space<vmem>>, %arg11: memref<128x1152xbf16, #tpu.memory_space<vmem>>) attributes {dimension_semantics = [#tpu.dimension_semantics<parallel>, #tpu.dimension_semantics<parallel>], iteration_bounds = array<i64: 2, 2>, scalar_prefetch = 0 : i64, scratch_operands = 2 : i64, tpu.core_type = #tpu.core_type<tc>, window_params = [{transform_indices = @transform_0, window_bounds = array<i64: 1, 304, 128>}, {pipeline_mode = #tpu.pipeline_mode<synchronous>, transform_indices = @transform_1, window_bounds = array<i64: 128, 128>}, {pipeline_mode = #tpu.pipeline_mode<synchronous>, transform_indices = @transform_2, window_bounds = array<i64: 1152, 128>}, {pipeline_mode = #tpu.pipeline_mode<synchronous>, transform_indices = @transform_3, window_bounds = array<i64: 128, 128>}, {pipeline_mode = #tpu.pipeline_mode<synchronous>, transform_indices = @transform_4, window_bounds = array<i64: 1, 128>}, {pipeline_mode = #tpu.pipeline_mode<synchronous>, transform_indices = @transform_5, window_bounds = array<i64: 1, 128>}, {pipeline_mode = #tpu.pipeline_mode<synchronous>, transform_indices = @transform_6, window_bounds = array<i64: 1, 128>}, {transform_indices = @transform_7, window_bounds = array<i64: 1, 128, 128>}]} {
    %c128_i32 = arith.constant 128 : i32
    %0 = arith.muli %arg1, %c128_i32 : i32
    %1 = tpu.assume_multiple %0, 8 : i32
    %c0 = arith.constant 0 : index
    %2 = arith.index_cast %1 : i32 to index
    %c0_0 = arith.constant 0 : index
    %3 = vector.load %arg2[%c0, %2, %c0_0] : memref<1x304x128xbf16, #tpu.memory_space<vmem>>, vector<1x176x128xbf16>
    %4 = vector.shape_cast %3 : vector<1x176x128xbf16> to vector<176x128xbf16>
    %c0_1 = arith.constant 0 : index
    %c0_2 = arith.constant 0 : index
    %5 = vector.load %arg3[%c0_1, %c0_2] : memref<128x128xbf16, #tpu.memory_space<vmem>>, vector<128x128xbf16>
    %cst = arith.constant dense<0.000000e+00> : vector<176x128xf32>
    %6 = tpu.matmul %4, %5, %cst {dimension_numbers = #tpu.dot_dimension_numbers<[1], [0], [0], [1], [0, 0, 1, 1], [], []>} : vector<176x128xbf16>, vector<128x128xbf16>, vector<176x128xf32> -> vector<176x128xf32>
    %c0_3 = arith.constant 0 : index
    %c0_4 = arith.constant 0 : index
    %7 = vector.load %arg6[%c0_3, %c0_4] : memref<1x128xf32, #tpu.memory_space<vmem>>, vector<1x128xf32>
    %8 = vector.broadcast %7 : vector<1x128xf32> to vector<176x128xf32>
    %9 = arith.addf %6, %8 : vector<176x128xf32>
    %cst_5 = arith.constant 0.000000e+00 : f32
    %10 = vector.broadcast %cst_5 : f32 to vector<176x128xf32>
    %11 = arith.maximumf %9, %10 : vector<176x128xf32>
    %12 = tpu.iota {dimensions = array<i32: 0>} : vector<176x1xi32>
    %c128_i32_6 = arith.constant 128 : i32
    %13 = arith.muli %arg1, %c128_i32_6 : i32
    %c24_i32 = arith.constant 24 : i32
    %14 = arith.subi %13, %c24_i32 : i32
    %15 = vector.broadcast %14 : i32 to vector<176x1xi32>
    %16 = arith.addi %12, %15 : vector<176x1xi32>
    %c0_i32 = arith.constant 0 : i32
    %17 = vector.broadcast %c0_i32 : i32 to vector<176x1xi32>
    %18 = arith.cmpi sge, %16, %17 : vector<176x1xi32>
    %c256_i32 = arith.constant 256 : i32
    %19 = vector.broadcast %c256_i32 : i32 to vector<176x1xi32>
    %20 = arith.cmpi slt, %16, %19 : vector<176x1xi32>
    %21 = arith.andi %18, %20 : vector<176x1xi1>
    %cst_7 = arith.constant 0.000000e+00 : f32
    %22 = vector.shape_cast %21 : vector<176x1xi1> to vector<176x1xi1>
    %23 = vector.broadcast %22 : vector<176x1xi1> to vector<176x128xi1>
    %24 = vector.broadcast %cst_7 : f32 to vector<176x128xf32>
    %25 = arith.select %23, %11, %24 : vector<176x128xi1>, vector<176x128xf32>
    %26 = arith.truncf %25 : vector<176x128xf32> to vector<176x128xbf16>
    %c0_8 = arith.constant 0 : index
    %c0_9 = arith.constant 0 : index
    %27 = vector.load %arg10[%c0_8, %c0_9] : memref<176x128xbf16, #tpu.memory_space<vmem>>, vector<176x128xbf16>
    tpu.vector_store %arg10[%c0_8, %c0_9], %26 {strides = array<i32>} : memref<176x128xbf16, #tpu.memory_space<vmem>>, vector<176x128xbf16>,
    %28 = tpu.iota {dimensions = array<i32: 0>} : vector<128x1xi32>
    %c16_i32 = arith.constant 16 : i32
    %c0_i32_10 = arith.constant 0 : i32
    %29 = arith.cmpi eq, %c16_i32, %c0_i32_10 : i32
    %c1_i32 = arith.constant 1 : i32
    %30 = arith.select %29, %c1_i32, %c16_i32 : i32
    %31 = vector.broadcast %30 : i32 to vector<128x1xi32>
    %32 = arith.remsi %28, %31 : vector<128x1xi32>
    %c0_i32_11 = arith.constant 0 : i32
    %33 = vector.broadcast %c0_i32_11 : i32 to vector<128x1xi32>
    %34 = arith.cmpi ne, %32, %33 : vector<128x1xi32>
    %c0_i32_12 = arith.constant 0 : i32
    %35 = vector.broadcast %c0_i32_12 : i32 to vector<128x1xi32>
    %36 = arith.cmpi slt, %32, %35 : vector<128x1xi32>
    %c0_i32_13 = arith.constant 0 : i32
    %37 = arith.cmpi slt, %30, %c0_i32_13 : i32
    %38 = vector.broadcast %37 : i1 to vector<128x1xi1>
    %39 = vector.broadcast %38 : vector<128x1xi1> to vector<128x1xi1>
    %40 = arith.xori %36, %39 : vector<128x1xi1>
    %41 = arith.andi %40, %34 : vector<128x1xi1>
    %42 = vector.broadcast %30 : i32 to vector<128x1xi32>
    %43 = arith.addi %32, %42 : vector<128x1xi32>
    %44 = arith.select %41, %43, %32 : vector<128x1xi1>, vector<128x1xi32>
    %c0_i32_14 = arith.constant 0 : i32
    %45 = vector.broadcast %c0_i32_14 : i32 to vector<128x1xi32>
    %46 = arith.cmpi ne, %44, %45 : vector<128x1xi32>
    %c15_i32 = arith.constant 15 : i32
    %47 = vector.broadcast %c15_i32 : i32 to vector<128x1xi32>
    %48 = arith.cmpi ne, %44, %47 : vector<128x1xi32>
    %c7 = arith.constant 7 : index
    %c0_15 = arith.constant 0 : index
    %49 = vector.load %arg10[%c7, %c0_15] : memref<176x128xbf16, #tpu.memory_space<vmem>>, vector<128x128xbf16>
    %c0_i32_16 = arith.constant 0 : i32
    %50 = arith.sitofp %c0_i32_16 : i32 to bf16
    %51 = vector.shape_cast %46 : vector<128x1xi1> to vector<128x1xi1>
    %52 = vector.broadcast %51 : vector<128x1xi1> to vector<128x128xi1>
    %53 = vector.broadcast %50 : bf16 to vector<128x128xbf16>
    %54 = arith.select %52, %49, %53 : vector<128x128xi1>, vector<128x128xbf16>
    %c0_17 = arith.constant 0 : index
    %c0_18 = arith.constant 0 : index
    %55 = vector.load %arg11[%c0_17, %c0_18] : memref<128x1152xbf16, #tpu.memory_space<vmem>>, vector<128x128xbf16>
    tpu.vector_store %arg11[%c0_17, %c0_18], %54 {strides = array<i32>} : memref<128x1152xbf16, #tpu.memory_space<vmem>>, vector<128x128xbf16>,
    %c8 = arith.constant 8 : index
    %c0_19 = arith.constant 0 : index
    %56 = vector.load %arg10[%c8, %c0_19] : memref<176x128xbf16, #tpu.memory_space<vmem>>, vector<128x128xbf16>
    %c0_20 = arith.constant 0 : index
    %c128 = arith.constant 128 : index
    %57 = vector.load %arg11[%c0_20, %c128] : memref<128x1152xbf16, #tpu.memory_space<vmem>>, vector<128x128xbf16>
    tpu.vector_store %arg11[%c0_20, %c128], %56 {strides = array<i32>} : memref<128x1152xbf16, #tpu.memory_space<vmem>>, vector<128x128xbf16>,
    %c9 = arith.constant 9 : index
    %c0_21 = arith.constant 0 : index
    %58 = vector.load %arg10[%c9, %c0_21] : memref<176x128xbf16, #tpu.memory_space<vmem>>, vector<128x128xbf16>
    %c0_i32_22 = arith.constant 0 : i32
    %59 = arith.sitofp %c0_i32_22 : i32 to bf16
    %60 = vector.shape_cast %48 : vector<128x1xi1> to vector<128x1xi1>
    %61 = vector.broadcast %60 : vector<128x1xi1> to vector<128x128xi1>
    %62 = vector.broadcast %59 : bf16 to vector<128x128xbf16>
    %63 = arith.select %61, %58, %62 : vector<128x128xi1>, vector<128x128xbf16>
    %c0_23 = arith.constant 0 : index
    %c256 = arith.constant 256 : index
    %64 = vector.load %arg11[%c0_23, %c256] : memref<128x1152xbf16, #tpu.memory_space<vmem>>, vector<128x128xbf16>
    tpu.vector_store %arg11[%c0_23, %c256], %63 {strides = array<i32>} : memref<128x1152xbf16, #tpu.memory_space<vmem>>, vector<128x128xbf16>,
    %c23 = arith.constant 23 : index
    %c0_24 = arith.constant 0 : index
    %65 = vector.load %arg10[%c23, %c0_24] : memref<176x128xbf16, #tpu.memory_space<vmem>>, vector<128x128xbf16>
    %c0_i32_25 = arith.constant 0 : i32
    %66 = arith.sitofp %c0_i32_25 : i32 to bf16
    %67 = vector.shape_cast %46 : vector<128x1xi1> to vector<128x1xi1>
    %68 = vector.broadcast %67 : vector<128x1xi1> to vector<128x128xi1>
    %69 = vector.broadcast %66 : bf16 to vector<128x128xbf16>
    %70 = arith.select %68, %65, %69 : vector<128x128xi1>, vector<128x128xbf16>
    %c0_26 = arith.constant 0 : index
    %c384 = arith.constant 384 : index
    %71 = vector.load %arg11[%c0_26, %c384] : memref<128x1152xbf16, #tpu.memory_space<vmem>>, vector<128x128xbf16>
    tpu.vector_store %arg11[%c0_26, %c384], %70 {strides = array<i32>} : memref<128x1152xbf16, #tpu.memory_space<vmem>>, vector<128x128xbf16>,
    %c24 = arith.constant 24 : index
    %c0_27 = arith.constant 0 : index
    %72 = vector.load %arg10[%c24, %c0_27] : memref<176x128xbf16, #tpu.memory_space<vmem>>, vector<128x128xbf16>
    %c0_28 = arith.constant 0 : index
    %c512 = arith.constant 512 : index
    %73 = vector.load %arg11[%c0_28, %c512] : memref<128x1152xbf16, #tpu.memory_space<vmem>>, vector<128x128xbf16>
    tpu.vector_store %arg11[%c0_28, %c512], %72 {strides = array<i32>} : memref<128x1152xbf16, #tpu.memory_space<vmem>>, vector<128x128xbf16>,
    %c25 = arith.constant 25 : index
    %c0_29 = arith.constant 0 : index
    %74 = vector.load %arg10[%c25, %c0_29] : memref<176x128xbf16, #tpu.memory_space<vmem>>, vector<128x128xbf16>
    %c0_i32_30 = arith.constant 0 : i32
    %75 = arith.sitofp %c0_i32_30 : i32 to bf16
    %76 = vector.shape_cast %48 : vector<128x1xi1> to vector<128x1xi1>
    %77 = vector.broadcast %76 : vector<128x1xi1> to vector<128x128xi1>
    %78 = vector.broadcast %75 : bf16 to vector<128x128xbf16>
    %79 = arith.select %77, %74, %78 : vector<128x128xi1>, vector<128x128xbf16>
    %c0_31 = arith.constant 0 : index
    %c640 = arith.constant 640 : index
    %80 = vector.load %arg11[%c0_31, %c640] : memref<128x1152xbf16, #tpu.memory_space<vmem>>, vector<128x128xbf16>
    tpu.vector_store %arg11[%c0_31, %c640], %79 {strides = array<i32>} : memref<128x1152xbf16, #tpu.memory_space<vmem>>, vector<128x128xbf16>,
    %c39 = arith.constant 39 : index
    %c0_32 = arith.constant 0 : index
    %81 = vector.load %arg10[%c39, %c0_32] : memref<176x128xbf16, #tpu.memory_space<vmem>>, vector<128x128xbf16>
    %c0_i32_33 = arith.constant 0 : i32
    %82 = arith.sitofp %c0_i32_33 : i32 to bf16
    %83 = vector.shape_cast %46 : vector<128x1xi1> to vector<128x1xi1>
    %84 = vector.broadcast %83 : vector<128x1xi1> to vector<128x128xi1>
    %85 = vector.broadcast %82 : bf16 to vector<128x128xbf16>
    %86 = arith.select %84, %81, %85 : vector<128x128xi1>, vector<128x128xbf16>
    %c0_34 = arith.constant 0 : index
    %c768 = arith.constant 768 : index
    %87 = vector.load %arg11[%c0_34, %c768] : memref<128x1152xbf16, #tpu.memory_space<vmem>>, vector<128x128xbf16>
    tpu.vector_store %arg11[%c0_34, %c768], %86 {strides = array<i32>} : memref<128x1152xbf16, #tpu.memory_space<vmem>>, vector<128x128xbf16>,
    %c40 = arith.constant 40 : index
    %c0_35 = arith.constant 0 : index
    %88 = vector.load %arg10[%c40, %c0_35] : memref<176x128xbf16, #tpu.memory_space<vmem>>, vector<128x128xbf16>
    %c0_36 = arith.constant 0 : index
    %c896 = arith.constant 896 : index
    %89 = vector.load %arg11[%c0_36, %c896] : memref<128x1152xbf16, #tpu.memory_space<vmem>>, vector<128x128xbf16>
    tpu.vector_store %arg11[%c0_36, %c896], %88 {strides = array<i32>} : memref<128x1152xbf16, #tpu.memory_space<vmem>>, vector<128x128xbf16>,
    %c41 = arith.constant 41 : index
    %c0_37 = arith.constant 0 : index
    %90 = vector.load %arg10[%c41, %c0_37] : memref<176x128xbf16, #tpu.memory_space<vmem>>, vector<128x128xbf16>
    %c0_i32_38 = arith.constant 0 : i32
    %91 = arith.sitofp %c0_i32_38 : i32 to bf16
    %92 = vector.shape_cast %48 : vector<128x1xi1> to vector<128x1xi1>
    %93 = vector.broadcast %92 : vector<128x1xi1> to vector<128x128xi1>
    %94 = vector.broadcast %91 : bf16 to vector<128x128xbf16>
    %95 = arith.select %93, %90, %94 : vector<128x128xi1>, vector<128x128xbf16>
    %c0_39 = arith.constant 0 : index
    %c1024 = arith.constant 1024 : index
    %96 = vector.load %arg11[%c0_39, %c1024] : memref<128x1152xbf16, #tpu.memory_space<vmem>>, vector<128x128xbf16>
    tpu.vector_store %arg11[%c0_39, %c1024], %95 {strides = array<i32>} : memref<128x1152xbf16, #tpu.memory_space<vmem>>, vector<128x128xbf16>,
    %c0_40 = arith.constant 0 : index
    %c0_41 = arith.constant 0 : index
    %97 = vector.load %arg11[%c0_40, %c0_41] : memref<128x1152xbf16, #tpu.memory_space<vmem>>, vector<128x1152xbf16>
    %c0_42 = arith.constant 0 : index
    %c0_43 = arith.constant 0 : index
    %98 = vector.load %arg4[%c0_42, %c0_43] : memref<1152x128xbf16, #tpu.memory_space<vmem>>, vector<1152x128xbf16>
    %cst_44 = arith.constant dense<0.000000e+00> : vector<128x128xf32>
    %99 = tpu.matmul %97, %98, %cst_44 {dimension_numbers = #tpu.dot_dimension_numbers<[1], [0], [0], [1], [0, 0, 1, 1], [], []>} : vector<128x1152xbf16>, vector<1152x128xbf16>, vector<128x128xf32> -> vector<128x128xf32>
    %c0_45 = arith.constant 0 : index
    %c0_46 = arith.constant 0 : index
    %100 = vector.load %arg7[%c0_45, %c0_46] : memref<1x128xf32, #tpu.memory_space<vmem>>, vector<1x128xf32>
    %101 = vector.broadcast %100 : vector<1x128xf32> to vector<128x128xf32>
    %102 = arith.addf %99, %101 : vector<128x128xf32>
    %cst_47 = arith.constant 0.000000e+00 : f32
    %103 = vector.broadcast %cst_47 : f32 to vector<128x128xf32>
    %104 = arith.maximumf %102, %103 : vector<128x128xf32>
    %105 = arith.truncf %104 : vector<128x128xf32> to vector<128x128xbf16>
    %c0_48 = arith.constant 0 : index
    %c0_49 = arith.constant 0 : index
    %106 = vector.load %arg5[%c0_48, %c0_49] : memref<128x128xbf16, #tpu.memory_space<vmem>>, vector<128x128xbf16>
    %cst_50 = arith.constant dense<0.000000e+00> : vector<128x128xf32>
    %107 = tpu.matmul %105, %106, %cst_50 {dimension_numbers = #tpu.dot_dimension_numbers<[1], [0], [0], [1], [0, 0, 1, 1], [], []>} : vector<128x128xbf16>, vector<128x128xbf16>, vector<128x128xf32> -> vector<128x128xf32>
    %108 = vector.extract_strided_slice %4 {offsets = [24, 0], sizes = [128, 128], strides = [1, 1]} : vector<176x128xbf16> to vector<128x128xbf16>
    %109 = arith.extf %108 : vector<128x128xbf16> to vector<128x128xf32>
    %c0_51 = arith.constant 0 : index
    %c0_52 = arith.constant 0 : index
    %110 = vector.load %arg8[%c0_51, %c0_52] : memref<1x128xf32, #tpu.memory_space<vmem>>, vector<1x128xf32>
    %111 = vector.broadcast %110 : vector<1x128xf32> to vector<128x128xf32>
    %112 = arith.addf %107, %111 : vector<128x128xf32>
    %113 = arith.addf %112, %109 : vector<128x128xf32>
    %cst_53 = arith.constant 0.000000e+00 : f32
    %114 = vector.broadcast %cst_53 : f32 to vector<128x128xf32>
    %115 = arith.maximumf %113, %114 : vector<128x128xf32>
    %116 = arith.truncf %115 : vector<128x128xf32> to vector<128x128xbf16>
    %c0_54 = arith.constant 0 : index
    %c0_55 = arith.constant 0 : index
    %c0_56 = arith.constant 0 : index
    %117 = vector.load %arg9[%c0_54, %c0_55, %c0_56] : memref<1x128x128xbf16, #tpu.memory_space<vmem>>, vector<1x128x128xbf16>
    %118 = vector.shape_cast %117 : vector<1x128x128xbf16> to vector<128x128xbf16>
    %119 = vector.shape_cast %116 : vector<128x128xbf16> to vector<1x128x128xbf16>
    tpu.vector_store %arg9[%c0_54, %c0_55, %c0_56], %119 {strides = array<i32>} : memref<1x128x128xbf16, #tpu.memory_space<vmem>>, vector<1x128x128xbf16>,
    return
  }
  func.func @transform_0(%arg0: i32, %arg1: i32) -> (i32, i32, i32) {
    %c0_i32 = arith.constant 0 : i32
    %c0_i32_0 = arith.constant 0 : i32
    %c0_i32_1 = arith.constant 0 : i32
    return %arg0, %c0_i32, %c0_i32_0 : i32, i32, i32
  }
  func.func @transform_1(%arg0: i32, %arg1: i32) -> (i32, i32) {
    %c0_i32 = arith.constant 0 : i32
    %c0_i32_0 = arith.constant 0 : i32
    %c0_i32_1 = arith.constant 0 : i32
    return %c0_i32, %c0_i32_0 : i32, i32
  }
  func.func @transform_2(%arg0: i32, %arg1: i32) -> (i32, i32) {
    %c0_i32 = arith.constant 0 : i32
    %c0_i32_0 = arith.constant 0 : i32
    %c0_i32_1 = arith.constant 0 : i32
    return %c0_i32, %c0_i32_0 : i32, i32
  }
  func.func @transform_3(%arg0: i32, %arg1: i32) -> (i32, i32) {
    %c0_i32 = arith.constant 0 : i32
    %c0_i32_0 = arith.constant 0 : i32
    %c0_i32_1 = arith.constant 0 : i32
    return %c0_i32, %c0_i32_0 : i32, i32
  }
  func.func @transform_4(%arg0: i32, %arg1: i32) -> (i32, i32) {
    %c0_i32 = arith.constant 0 : i32
    %c0_i32_0 = arith.constant 0 : i32
    %c0_i32_1 = arith.constant 0 : i32
    return %c0_i32, %c0_i32_0 : i32, i32
  }
  func.func @transform_5(%arg0: i32, %arg1: i32) -> (i32, i32) {
    %c0_i32 = arith.constant 0 : i32
    %c0_i32_0 = arith.constant 0 : i32
    %c0_i32_1 = arith.constant 0 : i32
    return %c0_i32, %c0_i32_0 : i32, i32
  }
  func.func @transform_6(%arg0: i32, %arg1: i32) -> (i32, i32) {
    %c0_i32 = arith.constant 0 : i32
    %c0_i32_0 = arith.constant 0 : i32
    %c0_i32_1 = arith.constant 0 : i32
    return %c0_i32, %c0_i32_0 : i32, i32
  }
  func.func @transform_7(%arg0: i32, %arg1: i32) -> (i32, i32, i32) {
    %c0_i32 = arith.constant 0 : i32
    %c0_i32_0 = arith.constant 0 : i32
    return %arg0, %arg1, %c0_i32 : i32, i32, i32
  }
}

</mosaic_0001>

<bundles_post_ra>
// kernel: tpu_custom_call.1
= control target key start
LH: loop header
LB: loop body
LE: loop exit
PB: predicated region body
PF: predicated region fallthrough
CT: control target
= control target key end

     0   :  { %s9312_s0 = inlined_call_operand.hbm [shape: bf16[2,304,128], index: 0, kind: input, shape index: {}]   ;;  %s9313_s1 = inlined_call_operand.hbm [shape: bf16[128,128], index: 1, kind: input, shape index: {}]   ;;  %s9314_s2 = inlined_call_operand.hbm [shape: bf16[1152,128], index: 2, kind: input, shape index: {}]   ;;  %s9315_s3 = inlined_call_operand.hbm [shape: bf16[128,128], index: 3, kind: input, shape index: {}]   ;;  %s9316_s4 = inlined_call_operand.vmem [shape: f32[1,128], index: 4, kind: input, shape index: {}]   ;;  %s9317_s5 = inlined_call_operand.vmem [shape: f32[1,128], index: 5, kind: input, shape index: {}]   ;;  %s9318_s6 = inlined_call_operand.vmem [shape: f32[1,128], index: 6, kind: input, shape index: {}]   ;;  %s9319_s7 = inlined_call_operand.hbm [shape: bf16[2,256,128], index: 7, kind: output, shape index: {}]  }
   0x1   :  { %9408 = sst [smem:[#allocation70_spill]] %s9313_s1 }
   0x2   :  { %9409 = sst [smem:[#allocation71_spill]] %s9314_s2 }
   0x3   :  { %9410 = sst [smem:[#allocation72_spill]] %s9315_s3 }
   0x4   :  { %9411 = sst [smem:[#allocation73_spill]] %s9318_s6 }
   0x5   :  { %9412 = sst [smem:[#allocation74_spill]] %s9319_s7 }
   0x6   :  { %12 = vsyncpa [#allocation5], 0 }
   0x7   :  { %14 = vsyncpa [#allocation5 + $0x1], 0 }
   0x8   :  { %15 = vsyncpa [#allocation8], 0 }
   0x9   :  { %16 = vsyncpa [#allocation11], 0 }
   0xa   :  { %17 = vsyncpa [#allocation6], 0 }
   0xb   :  { %19 = vsyncpa [#allocation6 + $0x1], 0  ;;  %s6446_s24 = smov 0   ;;  %s6448_s25 = smov 0  }
   0xc   :  { %s6450_s26 = smov 0   ;;  %s6452_s27 = smov 0  }
   0xd   :  { %s6454_s28 = smov 0   ;;  %s6456_s29 = smov 0  }
   0xe   :  { %s6458_s30 = smov 0   ;;  %s6460_s8 = smov 0  }
   0xf   :  { %s6462_s9 = smov 0   ;;  %s6464_s10 = smov 0  }
  0x10   :  { %s6466_s11 = smov 0  }
  0x11 LB: > { %9413 = sst [smem:[#allocation17_spill]] %s6355_s24  ;;  %s4989_s12 = sadd.s32 4294967295, %s6395_s11   ;;  %s6395_s11 = sphi %s6466_s11, %s25_s11   ;;  %s6391_s10 = sphi %s6464_s10, %s9841_s10   ;;  %s6387_s9 = sphi %s6462_s9, %s9840_s9   ;;  %s6383_s8 = sphi %s6460_s8, %s9839_s8   ;;  %s6379_s30 = sphi %s6458_s30, %s9838_s30   ;;  %s6375_s29 = sphi %s6456_s29, %s9847_s29   ;;  %s6371_s28 = sphi %s6454_s28, %s9846_s28   ;;  %s6367_s27 = sphi %s6452_s27, %s9845_s27   ;;  %s6363_s26 = sphi %s6450_s26, %s9844_s26   ;;  %s6359_s25 = sphi %s6448_s25, %s9843_s25   ;;  %s6355_s24 = sphi %s6446_s24, %s9842_s24  }
  0x12   : > { %9414 = sst [smem:[#allocation18_spill]] %s6383_s8  ;;  %s4990_s13 = sadd.s32 4294967294, %s6395_s11  }
  0x13   : > { %9415 = sst [smem:[#allocation19_spill]] %s6387_s9  ;;  %p57_p0 = scmp.ne.s32.totalorder %s6371_s28, %s6367_s27 }
  0x14   : > { %9416 = sst [smem:[#allocation20_spill]] %s6391_s10  ;;  %p6502_p1 = scmp.eq.s32.totalorder %s4989_s12, 0 }
  0x15   : > { %p208_p2 = scmp.ne.s32.totalorder %s6363_s26, %s6359_s25  ;;  %p209_p3 = scmp.eq.s32.totalorder %s4989_s12, 3 }
  0x16   : > { %p6510_p4 = por %p6502_p1, %p57_p0  ;;  %p214_p5 = scmp.ne.s32.totalorder %s6359_s25, %s6355_s24 }
  0x17   : > { %p6516_p6 = por %p209_p3, %p208_p2  ;;  %p215_p7 = scmp.eq.s32.totalorder %s4990_s13, 3 }
  0x18   : > { %p4991_p8 = scmp.ge.s32.totalorder %s6395_s11, 1  ;;  %p222_p9 = scmp.lt.s32.totalorder %s6395_s11, 5 }
  0x19   : > { %s9419_s16 = scalar_select %p6516_p6, 1, 0 }
  0x1a   : > { %p6522_p10 = por %p215_p7, %p214_p5  ;;  %p6526_p11 = pnand %p4991_p8, %p222_p9 }
  0x1b   : > { %9420 = sst [smem:[#allocation21_spill]] %s9419_s16  ;;  %s6397_s22 = smov [#allocation7]  }
  0x1c   : > { %s9421_s17 = scalar_select %p6522_p10, 1, 0 }
  0x1d   : > { %s9424_s1 = sld [smem:[#allocation70_spill]]  ;;  %p6016_p12 = pneg %p6526_p11 }
  0x1e   : > { %9422 = sst [smem:[#allocation22_spill]] %s9421_s17  ;;  %s235_s23 = sshll.u32 %s6397_s22, 4  ;;  %s236_s23 = int_to_ptr.vmem [resolvable:$true] %s235_s23 }
  0x1f   : > { %p6537_p13 = pnand %p6016_p12, %p6502_p1  ;;  %s9426_s2 = sld [smem:[#allocation71_spill]] }
  0x20   : > { %s9322_s20 = smov 64   ;;  %s9427_s3 = sld [smem:[#allocation72_spill]] }
  0x21   : > { %s6400_s13 = smov [#allocation9]   ;;  %s6401_s24 = smov [#allocation10]  }
  0x22   : > { %s34_s17 = sadd.s32 1, %s6387_s9  ;;  %s44_s22 = sadd.s32 1, %s6375_s29 }
  0x23   : > { %s233_s21 = sshll.u32 %s9424_s1, 4  ;;  %s9323_s1 = smov 4   ;;  %s234_s21 = int_to_ptr.hbm [resolvable:$true] %s233_s21 }
  0x24   : > { %6019 = dma.hbm_to_vmem [thread:$0]  (!%p6537_p13), %s234_s21, 1024, %s236_s23, [#allocation8], %s9322_s20, %s9322_s20, %s9323_s1  }
  0x25   : > { %s247_s19 = sshll.u32 %s9426_s2, 4  ;;  %s249_s2 = sshll.u32 %s6400_s13, 4  ;;  %s248_s19 = int_to_ptr.hbm [resolvable:$true] %s247_s19  ;;  %s250_s2 = int_to_ptr.vmem [resolvable:$true] %s249_s2 }
  0x26   : > { %s261_s12 = sshll.u32 %s9427_s3, 4  ;;  %s263_s21 = sshll.u32 %s6401_s24, 4  ;;  %s262_s12 = int_to_ptr.hbm [resolvable:$true] %s261_s12  ;;  %s264_s21 = int_to_ptr.vmem [resolvable:$true] %s263_s21 }
  0x27   : > { %6022 = dma.hbm_to_vmem [thread:$0]  (!%p6537_p13), %s248_s19, 9216, %s250_s2, [#allocation8], %s9322_s20, %s9322_s20, %s9323_s1  }
  0x28   : > { %6025 = dma.hbm_to_vmem [thread:$0]  (!%p6537_p13), %s262_s12, 1024, %s264_s21, [#allocation11], %s9322_s20, %s9322_s20, %s9323_s1  }
  0x29   : > { %s37_s23 = sadd.s32 1, %s6391_s10  ;;  %p35_p0 = scmp.ge.s32.totalorder %s34_s17, 2 }
  0x2a   : > { %p51_p2 = scmp.ne.s32.totalorder %s6375_s29, %s6371_s28  ;;  %p52_p3 = scmp.eq.s32.totalorder %s6395_s11, 0 }
  0x2b   : > { %s9849_s17 = smov (%p35_p0, %s34_s17), 0  ;;  %s9851_s23 = smov (!%p35_p0, %s37_s23), %s6391_s10 }
  0x2c   : > { %9428 = sst [smem:[#allocation23_spill]] %s9849_s17  ;;  %p6571_p5 = por %p52_p3, %p51_p2 }
  0x2d   : > { %s194_s24 = ssub.s32 %s6387_s9, %s9849_s17  ;;  %p39_p7 = scmp.ge.s32.totalorder %s9851_s23, 2 }
  0x2e   : > { %s198_s27 = sadd.s32 1, %s6363_s26  ;;  %p6037_p8 = scmp.lt.s32.totalorder %s6395_s11, 4 }
  0x2f   : > { %s286_s19 = sand.u32 1, %s6375_s29   ;;  %s9853_s23 = smov (%p39_p7, %s9851_s23), 0 }
  0x30   : > { %9430 = sst [smem:[#allocation24_spill]] %s9853_s23  ;;  %s5997_s12 = smul.u32 152, %s286_s19 }
  0x31   : > { %s41_s13 = ssub.s32 %s6391_s10, %s9853_s23  ;;  %s5998_s21 = smul.u32 152, %s6391_s10 }
  0x32   : > { %p42_p9 = scmp.eq.s32.totalorder %s41_s13, 0  ;;  %s195_s20 = sor.u32 %s194_s24, %s41_s13 }
  0x33   : > { %p196_p12 = scmp.eq.s32.totalorder %s195_s20, 0  ;;  %s295_s16 = scalar_lea.hbm %s9312_s0, %s5998_s21 }
  0x34   : > { %s6586_s1 = scalar_select %p42_p9, %s6375_s29, %s44_s22  }
  0x35   : > { %s6589_s3 = scalar_select %p196_p12, %s6363_s26, %s198_s27  }
  0x36   : > { %s290_s7 = scalar_lea.vmem [#allocation4], %s5997_s12  ;;  %s296_s6 = sshll.u32 %s295_s16, 4  ;;  %s297_s6 = int_to_ptr.hbm [resolvable:$true] %s296_s6 }
  0x37   : > { %s298_s8 = sshll.u32 %s290_s7, 4  ;;  %p6027_p13 = pnand %p6037_p8, %p6571_p5  ;;  %s299_s8 = int_to_ptr.vmem [resolvable:$true] %s298_s8 }
  0x38   : > { %s287_s23 = scalar_lea.sflag [#allocation5], %s286_s19  ;;  %s9431_s10 = smov 4  }
  0x39   : > { %s9432_s24 = smov 64   ;;  %310 = sbr.rel (%p6526_p11) target bundleno = 1027 (0x403), region = 48 }
  0x3a   : > { %6029 = dma.hbm_to_vmem [thread:$0]  (!%p6027_p13), %s297_s6, 2432, %s299_s8, %s287_s23, %s9432_s24, %s9432_s24, %s9431_s10  }
  0x3e   : > { %s312_s9 = sand.u32 1, %s6371_s28  }
  0x3f   : > { %s5999_s20 = smul.u32 152, %s312_s9  ;;  %s313_s17 = scalar_lea.sflag [#allocation5], %s312_s9 }
  0x41   : > { %s316_s7 = scalar_lea.vmem [#allocation4], %s5999_s20 }
  0x42   : > { %6338 = dma.done.wait (%p6510_p4), %s313_s17, 2432  }
  0x43   : > { %6340 = vsyncadd (%p6510_p4), %s313_s17, 4294964864 }
  0x44   : > { %6342 = dma.done.wait (%p6502_p1), [#allocation8], 10240  }
  0x45   : > { %6344 = vsyncadd (%p6502_p1), [#allocation8], 4294957056 }
  0x46   : > { %6346 = dma.done.wait (%p6502_p1), [#allocation11], 1024  }
  0x47   : > { %6348 = vsyncadd (%p6502_p1), [#allocation11], 4294966272  ;;  %v5716_v0 = vld [vmem:[#allocation7 + $0x38] sm:$0xff]  ;;  %v5715_v1 = vld [vmem:[#allocation7 + $0x30] sm:$0xff]  ;;  %s5002_s6 = sshll.u32 %s6379_s30, 7  ;;  %v614_v17 = vlaneseq  ;;  %v9337_v23 = vmov 0  }
  0x48   : > { %528 = vmatpush.bf16.msra.mxu0 %v5716_v0  ;;  %v5714_v2 = vld [vmem:[#allocation7 + $0x28] sm:$0xff]  ;;  %v5713_v3 = vld [vmem:[#allocation7 + $0x20] sm:$0xff]  ;;  %v5712_v4 = vld [vmem:[#allocation7 + $0x18] sm:$0xff]  ;;  %s368_s8 = sshra.s32 %s5002_s6, 3  ;;  %s5080_s15 = sadd.s32 4294967272, %s5002_s6  ;;  %vm6403_vm2 = vmmov 1  }
  0x49   : > { %v5711_v5 = vld [vmem:[#allocation7 + $0x10] sm:$0xff]  ;;  %v5710_v6 = vld [vmem:[#allocation7 + $0x8] sm:$0xff]  ;;  %s5003_s10 = sshll.u32 %s368_s8, 2  ;;  %v5709_v7 = vld [vmem:[#allocation7] sm:$0xff]  ;;  %v6628_v18 = vshrl.u32 %v614_v17, 7  ;;  %v6636_v28 = vstv %s5080_s15  ;;  %s9830_s20 = sld [smem:[#allocation73_spill]] }
  0x4a   : > { %s6619_s14 = scalar_lea.vmem %s316_s7, %s5003_s10 [#allocation4]  ;;  %v5844_v13 = vld [vmem:[#allocation9 + $0x1b8] sm:$0xff]  ;;  %v5843_v16 = vld [vmem:[#allocation9 + $0x1b0] sm:$0xff]  ;;  %vm1111_vm3 = vmpackc.low %vm6403_vm2, %vm6403_vm2  ;;  %vm1142_vm4 = vsmask.f32 3328  ;;  %vm1143_vm5 = vsmask.f32 7440 }
  0x4b   : > { %v5698_v8 = vld [vmem:[%s6619_s14] sm:$0xff]  ;;  %v5699_v9 = vld [vmem:[%s6619_s14 + $0x8] sm:$0xff]  ;;  %v5700_v10 = vld [vmem:[%s6619_s14 + $0x10] sm:$0xff]  ;;  %v841_v19 = vand.u32 15, %v6628_v18  ;;  %v616_v27 = vadd.s32 8, %v6628_v18  ;;  %v6642_v35 = vsel %vm1111_vm3, 65537, %v9337_v23  ;;  %v639_v38 = vadd.s32 %v6636_v28, %v6628_v18 }
  0x4c   : > { %529 = vmatpush.bf16.msra.mxu0 %v5715_v1  ;;  %v5701_v11 = vld [vmem:[%s6619_s14 + $0x18] sm:$0xff]  ;;  %v5702_v12 = vld [vmem:[%s6619_s14 + $0x20] sm:$0xff]  ;;  %v5703_v14 = vld [vmem:[%s6619_s14 + $0x28] sm:$0xff]  ;;  %v1155_v41 = vshll.u32 %v6642_v35, 16  ;;  %v617_v49 = vadd.s32 16, %v6628_v18  ;;  %v1159_v0 = vshrl.u32 %v6642_v35, 16 }
  0x4d   : > { %v5704_v15 = vld [vmem:[%s6619_s14 + $0x30] sm:$0xff]  ;;  %v5705_v20 = vld [vmem:[%s6619_s14 + $0x38] sm:$0xff]  ;;  %vm1029_vm0 = vcmp.ne.s32.totalorder %v841_v19, 0  ;;  %v5804_v21 = vld [vmem:[#allocation9 + $0x78] sm:$0xff]  ;;  %v640_v39 = vadd.s32 %v6636_v28, %v616_v27  ;;  %v848_v45 = vand.u32 15, %v616_v27  ;;  %vm661_vm6 = vcmp.ge.s32.totalorder %v639_v38, 0 }
  0x4e   : > { %4240 = vmatpush.bf16.msra.mxu2 %v5804_v21  ;;  %vm1110_vm1 = vmpackc.low %vm1029_vm0, %vm1029_vm0  ;;  %v5803_v22 = vld [vmem:[#allocation9 + $0x70] sm:$0xff]  ;;  %v5706_v29 = vld [vmem:[%s6619_s14 + $0x40] sm:$0xff]  ;;  %vm683_vm7 = vcmp.lt.s32.totalorder %v639_v38, 256  ;;  %v6657_v48 = vrot.slane %v1155_v41, 5  ;;  %v855_v58 = vand.u32 15, %v617_v49  ;;  %v1739_v19 = vrot.slane %v1159_v0, 7 }
  0x4f   : > { %v1126_v24 = vsel %vm1110_vm1, 65537, %v9337_v23  ;;  %v5796_v32 = vld [vmem:[#allocation9 + $0x38] sm:$0xff]  ;;  %v5802_v33 = vld [vmem:[#allocation9 + $0x68] sm:$0xff]  ;;  %v5795_v42 = vld [vmem:[#allocation9 + $0x30] sm:$0xff]  ;;  %vm662_vm8 = vcmp.ge.s32.totalorder %v640_v39, 0  ;;  %vm684_vm9 = vcmp.lt.s32.totalorder %v640_v39, 256 }
  0x50   : > { %530 = vmatpush.bf16.msra.mxu0 %v5714_v2  ;;  %v1146_v25 = vshll.u32 %v1126_v24, 16  ;;  %v1149_v26 = vshrl.u32 %v1126_v24, 16  ;;  %v6647_v36 = vld [vmem:[%s9316_s4] ss:$0 sm:$0xff]  ;;  %4191 = vmatpush.bf16.msra.mxu1 %v5796_v32  ;;  %v5801_v43 = vld [vmem:[#allocation9 + $0x60] sm:$0xff]  ;;  %v5811_v46 = vld [vmem:[#allocation9 + $0xb0] sm:$0xff] }
  0x51   : > { %v5812_v37 = vld [vmem:[#allocation9 + $0xb8] sm:$0xff]  ;;  %v5794_v50 = vld [vmem:[#allocation9 + $0x28] sm:$0xff]  ;;  %vm6661_vm10 = vmor %vm1142_vm4, %vm1143_vm5  ;;  %vm6670_vm12 = vcmp.ne.s32.totalorder %v848_v45, 15  ;;  %vm6688_vm15 = vcmp.ne.s32.totalorder %v855_v58, 0  ;;  %v9443_v27 = vmov 0  ;;  %v6741_v35 = vrot.slane %v1739_v19, 4 }
  0x52   : > { %4241 = vmatpush.bf16.msra.mxu2 %v5803_v22  ;;  %v6639_v30 = vrot.slane %v1146_v25, 5  ;;  %v1151_v31 = vrot.slane %v1149_v26, 4  ;;  %4289 = vmatpush.bf16.msra.mxu3 %v5812_v37  ;;  %v5800_v53 = vld [vmem:[#allocation9 + $0x58] sm:$0xff]  ;;  %vm6665_vm11 = vmand %vm661_vm6, %vm683_vm7  ;;  %v5810_v59 = vld [vmem:[#allocation9 + $0xa8] sm:$0xff]  ;;  %vm1440_vm7 = vsmask.f32 256 }
  0x53   : > { %vm706_vm13 = vmand %vm662_vm8, %vm684_vm9  ;;  %v5793_v62 = vld [vmem:[#allocation9 + $0x20] sm:$0xff]  ;;  %v5799_v63 = vld [vmem:[#allocation9 + $0x50] sm:$0xff]  ;;  %vm1441_vm8 = vsmask.f32 4368  ;;  %v6777_v21 = vadd.s32 40, %v6628_v18  ;;  %s360_s17 = sand.u32 1, %s6359_s25  }
  0x54   : > { %531 = vmatpush.bf16.msra.mxu0 %v5713_v3  ;;  %v1152_v40 = vor.u32 %v1151_v31, %v6639_v30  ;;  %4192 = vmatpush.bf16.msra.mxu1 %v5795_v42  ;;  %vm1705_vm14 = vmpackc.low %vm6670_vm12, %vm6670_vm12  ;;  %v6686_v3 = vunpack.c.l.b16 %v9337_v23  ;;  %v5842_v17 = vld [vmem:[#allocation9 + $0x1a8] sm:$0xff]  ;;  %v5809_v25 = vld [vmem:[#allocation9 + $0xa0] sm:$0xff]  ;;  %v9445_v31 = vmov 0  ;;  %s5001_s7 = sshll.u32 %s360_s17, 6  ;;  %s9833_s8 = sld [smem:[#allocation18_spill]] }
  0x55   : > { %vm1112_vm0 = vmpackc.low %vm6688_vm15, %vm6688_vm15  ;;  %v5808_v45 = vld [vmem:[#allocation9 + $0x98] sm:$0xff]  ;;  %v5865_v52 = vld [vmem:[#allocation10 + $0x20] sm:$0xff]  ;;  %s9222_s6 = scalar_lea.vmem [#allocation12], %s5001_s7  ;;  %s5693_s10 = sshll.u32 %s6379_s30, 4 }
  0x56   : > { %4242 = vmatpush.bf16.msra.mxu2 %v5802_v33  ;;  %v1153_v47 = vrot.slane %v1152_v40, 4  ;;  %4290 = vmatpush.bf16.msra.mxu3 %v5811_v46  ;;  %v1128_v22 = vsel %vm1112_vm0, 65537, %v9337_v23  ;;  %v6733_v40 = vor.u32 %v1739_v19, %v1155_v41  ;;  %vm6762_vm0 = vmor %vm1440_vm7, %vm1441_vm8  ;;  %s9834_s2 = sld [smem:[#allocation74_spill]]  ;;  %s4868_s19 = sshll.u32 %s9222_s6, 4  ;;  %s4869_s19 = int_to_ptr.vmem [resolvable:$true] %s4868_s19 }
  0x57   : > { %v1165_v37 = vshll.u32 %v1128_v22, 16  ;;  %v1169_v41 = vshrl.u32 %v1128_v22, 16  ;;  %v5789_v22 = vld [vmem:[#allocation9] sm:$0xff]  ;;  %s4854_s12 = scalar_lea.sflag [#allocation6], %s360_s17 }
  0x58   : > { %532 = vmatpush.bf16.msra.mxu0 %v5712_v4  ;;  %4193 = vmatpush.bf16.msra.mxu1 %v5794_v50  ;;  %v1158_v61 = vsel %vm6661_vm10, %v1153_v47, %v6657_v48  ;;  %v5791_v50 = vld [vmem:[#allocation9 + $0x10] sm:$0xff]  ;;  %v5790_v4 = vld [vmem:[#allocation9 + $0x8] sm:$0xff] }
  0x5a   : > { %4243 = vmatpush.bf16.msra.mxu2 %v5801_v43  ;;  %4291 = vmatpush.bf16.msra.mxu3 %v5810_v59  ;;  %s5694_s15 = sshll.u32 %s9833_s8, 5 }
  0x5b   : > { %s4865_s16 = sadd.s32 %s5694_s15, %s5693_s10 }
  0x5c   : > { %533 = vmatpush.bf16.msra.mxu0 %v5711_v5  ;;  %4194 = vmatpush.bf16.msra.mxu1 %v5793_v62  ;;  %v1880_v62 = vunpack.c.h.b16 %v6733_v40  ;;  %s5695_s18 = sshll.u32 %s4865_s16, 2 }
  0x5d   : > { %s4867_s30 = scalar_lea.hbm %s9834_s2, %s5695_s18 }
  0x5e   : > { %4244 = vmatpush.bf16.msra.mxu2 %v5800_v53  ;;  %4292 = vmatpush.bf16.msra.mxu3 %v5809_v25 }
  0x60   : > { %534 = vmatpush.bf16.msra.mxu0 %v5710_v6  ;;  %v6693_v6 = vunpack.c.h.b16 %v9337_v23 }
  0x62   : > { %4245 = vmatpush.bf16.msra.mxu2 %v5799_v63  ;;  %4293 = vmatpush.bf16.msra.mxu3 %v5808_v45 }
  0x64   : > { %535 = vmatpush.bf16.msra.mxu0 %v5709_v7  ;;  %v1311_v7 = vunpack.c.l.b16 %v1158_v61 }
  0x66   : > { %vm1315_vm1 = vcmp.ne.s32.totalorder %v1311_v7, %v6686_v3 }
  0x67   : > { %536 = vmatmul.bf16.vlgmr.msra.gmra.mxu0 %v5698_v8  ;;  %v1312_v8 = vunpack.c.h.b16 %v1158_v61  ;;  %v5807_v61 = vld [vmem:[#allocation9 + $0x90] sm:$0xff] }
  0x68   : > { %4485 = vmatpush.bf16.msrb.mxu0 %v5844_v13  ;;  %v5707_v13 = vld [vmem:[%s6619_s14 + $0x48] sm:$0xff]  ;;  %4294 = vmatpush.bf16.msra.mxu3 %v5807_v61 }
  0x69   : > { %vm1316_vm2 = vcmp.ne.s32.totalorder %v1312_v8, %v6693_v6 }
  0x6a   : > { %vm6718_vm6 = vmpackc.low %vm1316_vm2, %vm1315_vm1  ;;  %vm1884_vm2 = vcmp.ne.s32.totalorder %v1880_v62, %v6693_v6 }
  0x6b   : > { %v9444_v27 = vsel %vm6718_vm6, 4294967295, %v9443_v27 }
  0x6c   : > { %4486 = vmatpush.bf16.msrb.mxu0 %v5843_v16  ;;  %v6704_v16 = vadd.s32 24, %v6628_v18 }
  0x6e   : > { %v642_v26 = vadd.s32 %v6636_v28, %v6704_v16 }
  0x70   : > { %4487 = vmatpush.bf16.msrb.mxu0 %v5842_v17  ;;  %vm664_vm12 = vcmp.ge.s32.totalorder %v642_v26, 0 }
  0x77   : > { %541 = vmatmul.bf16.gmra.mxu0 %v5699_v9  ;;  %v1161_v9 = vrot.slane %v1159_v0, 4 }
  0x79   : > { %v1162_v24 = vor.u32 %v1161_v9, %v6657_v48  ;;  %v1171_v9 = vrot.slane %v1169_v41, 4 }
  0x7b   : > { %v6735_v42 = vrot.slane %v1162_v24, 4 }
  0x87   : > { %546 = vmatmul.bf16.gmra.mxu0 %v5700_v10  ;;  %v1304_v10 = vunpack.c.l.b16 %v6639_v30 }
  0x89   : > { %vm6709_vm3 = vcmp.ne.s32.totalorder %v1304_v10, %v6686_v3 }
  0x97   : > { %551 = vmatmul.bf16.gmra.mxu0 %v5701_v11  ;;  %v1305_v11 = vunpack.c.h.b16 %v6639_v30  ;;  %v5798_v30 = vld [vmem:[#allocation9 + $0x48] sm:$0xff] }
  0x98   : > { %4246 = vmatpush.bf16.msra.mxu2 %v5798_v30 }
  0x99   : > { %vm1309_vm4 = vcmp.ne.s32.totalorder %v1305_v11, %v6693_v6 }
  0x9a   : > { %vm6724_vm9 = vmpackc.low %vm1309_vm4, %vm6709_vm3 }
  0x9b   : > { %v9446_v31 = vsel %vm6724_vm9, 4294967295, %v9445_v31 }
  0xa7   : > { %556 = vmatmul.bf16.gmra.mxu0 %v5702_v12  ;;  %v1721_v12 = vsel %vm1705_vm14, 65537, %v9337_v23 }
  0xa8   : > { %v1748_v33 = vshll.u32 %v1721_v12, 16 }
  0xb7   : > { %561 = vmatmul.bf16.gmra.mxu0 %v5703_v14 }
  0xc7   : > { %566 = vmatmul.bf16.gmra.mxu0 %v5704_v15  ;;  %v641_v15 = vadd.s32 %v6636_v28, %v617_v49 }
  0xc9   : > { %vm663_vm5 = vcmp.ge.s32.totalorder %v641_v15, 0 }
  0xd7   : > { %571 = vmatmul.bf16.gmra.mxu0 %v5705_v20  ;;  %v1745_v20 = vshrl.u32 %v1721_v12, 16 }
  0xd9   : > { %v6728_v32 = vrot.slane %v1745_v20, 7  ;;  %v619_v20 = vadd.s32 32, %v6628_v18 }
  0xdb   : > { %v1750_v53 = vor.u32 %v1748_v33, %v6728_v32 }
  0xdd   : > { %v1751_v7 = vsel %vm6762_vm0, %v6741_v35, %v1750_v53  ;;  %v869_v53 = vand.u32 15, %v619_v20 }
  0xde   : > { %v1886_v25 = vunpack.c.l.b16 %v1751_v7  ;;  %v1887_v30 = vunpack.c.h.b16 %v1751_v7  ;;  %v5805_v7 = vld [vmem:[#allocation9 + $0x80] sm:$0xff] }
  0xe0   : > { %vm1890_vm8 = vcmp.ne.s32.totalorder %v1886_v25, %v6686_v3 }
  0xe4   : > { %v537_v34 = vpop.f32.mrf.mxu0 }
  0xe5   : > { %v538_v44 = vadd.f32 %v6647_v36, %v537_v34 }
  0xe7   : > { %576 = vmatmul.bf16.gmra.mxu0 %v5706_v29  ;;  %v592_v54 = vmax.f32 %v538_v44, 0.0  ;;  %v5792_v29 = vld [vmem:[#allocation9 + $0x18] sm:$0xff] }
  0xe8   : > { %4195 = vmatpush.bf16.msra.mxu1 %v5792_v29 }
  0xe9   : > { %v771_v1 = vsel %vm6665_vm11, %v592_v54, 0.0  ;;  %vm685_vm11 = vcmp.lt.s32.totalorder %v641_v15, 256  ;;  %v5806_v15 = vld [vmem:[#allocation9 + $0x88] sm:$0xff] }
  0xea   : > { %vm6746_vm14 = vmand %vm663_vm5, %vm685_vm11  ;;  %4295 = vmatpush.bf16.msra.mxu3 %v5806_v15  ;;  %vm1891_vm11 = vcmp.ne.s32.totalorder %v1887_v30, %v6693_v6 }
  0xec   : > { %v539_v51 = vpop.f32.mrf.mxu0  ;;  %4196 = vmatpush.bf16.msra.mxu1 %v5791_v50 }
  0xed   : > { %v540_v56 = vadd.f32 %v6647_v36, %v539_v51  ;;  %v5797_v51 = vld [vmem:[#allocation9 + $0x40] sm:$0xff] }
  0xee   : > { %4247 = vmatpush.bf16.msra.mxu2 %v5797_v51  ;;  %4296 = vmatpush.bf16.msra.mxu3 %v5805_v7 }
  0xef   : > { %v593_v60 = vmax.f32 %v540_v56, 0.0  ;;  %v1167_v56 = vrot.slane %v1165_v37, 5  ;;  %v644_v37 = vadd.s32 %v6636_v28, %v6777_v21 }
  0xf0   : > { %4197 = vmatpush.bf16.msra.mxu1 %v5790_v4 }
  0xf1   : > { %v772_v2 = vsel %vm706_vm13, %v593_v60, 0.0  ;;  %vm686_vm13 = vcmp.lt.s32.totalorder %v642_v26, 256  ;;  %v1879_v60 = vunpack.c.l.b16 %v6733_v40  ;;  %v1168_v63 = vsel %vm6661_vm10, %v6735_v42, %v1167_v56 }
  0xf2   : > { %v5872_v5 = vpack.c.bf16 %v772_v2, %v771_v1  ;;  %vm708_vm15 = vmand %vm664_vm12, %vm686_vm13  ;;  %v1318_v11 = vunpack.c.l.b16 %v1168_v63  ;;  %v1319_v12 = vunpack.c.h.b16 %v1168_v63  ;;  %v1172_v33 = vor.u32 %v1171_v9, %v1167_v56  ;;  %v5841_v63 = vld [vmem:[#allocation9 + $0x1a0] sm:$0xff] }
  0xf3   : > { %vm1883_vm1 = vcmp.ne.s32.totalorder %v1879_v60, %v6686_v3  ;;  %4488 = vmatpush.bf16.msrb.mxu0 %v5841_v63 }
  0xf4   : > { %5873 = vst [vmem:[#allocation2] sm:$0xff] %v5872_v5   ;;  %v542_v14 = vpop.f32.mrf.mxu0  ;;  %vm6781_vm3 = vmpackc.low %vm1884_vm2, %vm1883_vm1  ;;  %vm1322_vm4 = vcmp.ne.s32.totalorder %v1318_v11, %v6686_v3  ;;  %vm1323_vm5 = vcmp.ne.s32.totalorder %v1319_v12, %v6693_v6  ;;  %4198 = vmatpush.bf16.msra.mxu1 %v5789_v22 }
  0xf5   : > { %v543_v34 = vadd.f32 %v6647_v36, %v542_v14  ;;  %v5708_v14 = vld [vmem:[%s6619_s14 + $0x50] sm:$0xff]  ;;  %vm6792_vm7 = vmpackc.low %vm1323_vm5, %vm1322_vm4  ;;  %vm6813_vm5 = vcmp.ne.s32.totalorder %v869_v53, 0  ;;  %v6857_v53 = vadd.s32 56, %v6628_v18 }
  0xf6   : > { %vm6802_vm1 = vmpackc.low %vm1891_vm11, %vm1890_vm8 }
  0xf7   : > { %581 = vmatmul.bf16.gmra.mxu0 %v5707_v13  ;;  %v594_v54 = vmax.f32 %v543_v34, 0.0  ;;  %v643_v34 = vadd.s32 %v6636_v28, %v619_v20  ;;  %vm1114_vm8 = vmpackc.low %vm6813_vm5, %vm6813_vm5 }
  0xf8   : > { %v1130_v30 = vsel %vm1114_vm8, 65537, %v9337_v23 }
  0xf9   : > { %v773_v8 = vsel %vm6746_vm14, %v594_v54, 0.0  ;;  %vm665_vm12 = vcmp.ge.s32.totalorder %v643_v34, 0  ;;  %vm687_vm13 = vcmp.lt.s32.totalorder %v643_v34, 256  ;;  %vm666_vm14 = vcmp.ge.s32.totalorder %v644_v37, 0 }
  0xfa   : > { %vm709_vm4 = vmand %vm665_vm12, %vm687_vm13 }
  0xfb   : > { %v1061_v38 = vld [vmem:[#allocation2] sm:$0x8]  ;;  %v1062_v39 = vld [vmem:[#allocation2 + $0x4] sm:$0xf] }
  0xfc   : > { %v1424_v43 = vsel %vm6718_vm6, %v1062_v39, 0  ;;  %v544_v44 = vpop.f32.mrf.mxu0  ;;  %v1623_v46 = vld [vmem:[#allocation2 + $0x4] sm:$0xf]  ;;  %v1423_v47 = vsel %vm6724_vm9, %v1061_v38, 0  ;;  %v7300_v39 = vadd.s32 80, %v6628_v18 }
  0xfd   : > { %v1449_v49 = vshrl.u32 %v1424_v43, 16  ;;  %v545_v57 = vadd.f32 %v6647_v36, %v544_v44  ;;  %1639 = vst [vmem:[#allocation3 + $0x4] sm:$0xf] %v1623_v46  ;;  %v1452_v59 = vshll.u32 %v1424_v43, 16  ;;  %v1444_v1 = vshrl.u32 %v1423_v47, 16 }
  0xfe   : > { %v1655_v26 = vld [vmem:[#allocation2 + $0x4] sm:$0xf]  ;;  %v1173_v43 = vrot.slane %v1172_v33, 4 }
  0xff   : > { %v6751_v58 = vrot.slane %v1449_v49, 7  ;;  %v595_v0 = vmax.f32 %v545_v57, 0.0  ;;  %v5081_v17 = vrot.slane %v1444_v1, 11  ;;  %v1998_v38 = vsel %vm6781_vm3, %v1655_v26, 0 }
 0x100   : > { %v2016_v47 = vshrl.u32 %v1998_v38, 16  ;;  %v2019_v49 = vshll.u32 %v1998_v38, 16  ;;  %v1752_v57 = vrot.slane %v6728_v32, 4  ;;  %v1178_v61 = vsel %vm6661_vm10, %v1173_v43, %v6657_v48 }
 0x101   : > { %v1454_v5 = vor.u32 %v1452_v59, %v6751_v58  ;;  %v774_v10 = vsel %vm708_vm15, %v595_v0, 0.0  ;;  %vm688_vm15 = vcmp.lt.s32.totalorder %v644_v37, 256  ;;  %v5828_v0 = vld [vmem:[#allocation9 + $0x138] sm:$0xff]  ;;  %v862_v1 = vand.u32 15, %v6704_v16 }
 0x102   : > { %v5877_v13 = vpack.c.bf16 %v774_v10, %v773_v8  ;;  %vm710_vm2 = vmand %vm666_vm14, %vm688_vm15  ;;  %v2018_v59 = vrot.slane %v2016_v47, 4  ;;  %v2021_v60 = vrot.slane %v2019_v49, 5  ;;  %4387 = vmatpush.bf16.msrb.mxu2 %v5828_v0  ;;  %v1325_v10 = vunpack.c.l.b16 %v1178_v61 }
 0x103   : > { %v1455_v24 = vsel %vm6762_vm0, %v5081_v17, %v1454_v5  ;;  %vm6827_vm11 = vcmp.ne.s32.totalorder %v862_v1, 15  ;;  %v1456_v20 = vrot.slane %v6751_v58, 4  ;;  %v9461_v47 = vmov 0 }
 0x104   : > { %v547_v19 = vpop.f32.mrf.mxu0  ;;  %5964 = vst [vmem:[#allocation2 + $0x8] sm:$0xff] %v5877_v13   ;;  %v1760_v13 = vsel %vm6762_vm0, %v1752_v57, %v6733_v40  ;;  %v2022_v17 = vor.u32 %v2021_v60, %v2018_v59  ;;  %vm1329_vm12 = vcmp.ne.s32.totalorder %v1325_v10, %v6686_v3  ;;  %vm1707_vm14 = vmpackc.low %vm6827_vm11, %vm6827_vm11  ;;  %v5717_v38 = vld [vmem:[#allocation3 + $0x4] sm:$0xf]  ;;  %v876_v59 = vand.u32 15, %v6777_v21 }
 0x105   : > { %1607 = vst [vmem:[#allocation3] sm:$0xf] %v1455_v24  ;;  %v548_v44 = vadd.f32 %v6647_v36, %v547_v19  ;;  %v1893_v25 = vunpack.c.l.b16 %v1760_v13  ;;  %v1894_v26 = vunpack.c.h.b16 %v1760_v13  ;;  %v9463_v60 = vmov 0 }
 0x106   : > { %v2023_v58 = vrot.slane %v2022_v17, 4  ;;  %v646_v1 = vadd.s32 %v6636_v28, %v6857_v53  ;;  %vm6879_vm8 = vcmp.ne.s32.totalorder %v876_v59, 15 }
 0x107   : > { %586 = vmatmul.bf16.gmra.mxu0 %v5708_v14  ;;  %v596_v55 = vmax.f32 %v548_v44, 0.0  ;;  %v1326_v14 = vunpack.c.h.b16 %v1178_v61  ;;  %v1185_v44 = vshll.u32 %v1130_v30, 16 }
 0x109   : > { %v775_v9 = vsel %vm709_vm4, %v596_v55, 0.0  ;;  %vm1330_vm13 = vcmp.ne.s32.totalorder %v1326_v14, %v6693_v6  ;;  %vm1898_vm4 = vcmp.ne.s32.totalorder %v1894_v26, %v6693_v6  ;;  %v1187_v57 = vrot.slane %v1185_v44, 5 }
 0x10a   : > { %vm6846_vm15 = vmpackc.low %vm1330_vm13, %vm1329_vm12  ;;  %vm668_vm13 = vcmp.ge.s32.totalorder %v646_v1, 0 }
 0x10b   : > { %v1063_v45 = vld [vmem:[#allocation2 + $0x8] sm:$0xf]  ;;  %v1625_v16 = vld [vmem:[#allocation2 + $0xc] sm:$0xf]  ;;  %v9462_v47 = vsel %vm6846_vm15, 4294967295, %v9461_v47  ;;  %v1188_v0 = vsel %vm6661_vm10, %v6735_v42, %v1187_v57 }
 0x10c   : > { %v549_v46 = vpop.f32.mrf.mxu0  ;;  %v1425_v41 = vsel %vm6792_vm7, %v1063_v45, 0  ;;  %v1656_v62 = vld [vmem:[#allocation2 + $0x8] sm:$0xf]  ;;  %1641 = vst [vmem:[#allocation3 + $0x4c] sm:$0xf] %v1625_v16  ;;  %v1332_v16 = vunpack.c.l.b16 %v1188_v0  ;;  %v1333_v13 = vunpack.c.h.b16 %v1188_v0  ;;  %v9478_v0 = vmov 0 }
 0x10d   : > { %v550_v50 = vadd.f32 %v6647_v36, %v549_v46  ;;  %v1458_v54 = vshrl.u32 %v1425_v41, 16  ;;  %v1624_v32 = vld [vmem:[#allocation2 + $0x8] sm:$0xf]  ;;  %v1999_v11 = vsel %vm6802_vm1, %v1656_v62, 0  ;;  %v1461_v15 = vshll.u32 %v1425_v41, 16 }
 0x10e   : > { %1640 = vst [vmem:[#allocation3 + $0x28] sm:$0xf] %v1624_v32  ;;  %v2025_v24 = vshll.u32 %v1999_v11, 16  ;;  %v1064_v49 = vld [vmem:[#allocation2 + $0xc] sm:$0xf]  ;;  %v1723_v41 = vsel %vm1707_vm14, 65537, %v9337_v23 }
 0x10f   : > { %v597_v56 = vmax.f32 %v550_v50, 0.0  ;;  %v6817_v8 = vrot.slane %v1458_v54, 7  ;;  %v6852_v50 = vadd.s32 48, %v6628_v18  ;;  %v2029_v54 = vshrl.u32 %v1999_v11, 16  ;;  %v1657_v61 = vld [vmem:[#allocation2 + $0xc] sm:$0xf] }
 0x110   : > { %v6841_v37 = vrot.slane %v2025_v24, 5  ;;  %v1426_v55 = vsel %vm6846_vm15, %v1064_v49, 0  ;;  %v1189_v62 = vshrl.u32 %v1130_v30, 16  ;;  %vm690_vm14 = vcmp.lt.s32.totalorder %v646_v1, 256  ;;  %v5840_v49 = vld [vmem:[#allocation9 + $0x198] sm:$0xff] }
 0x111   : > { %v776_v5 = vsel %vm710_vm2, %v597_v56, 0.0  ;;  %v1463_v22 = vor.u32 %v1461_v15, %v6817_v8  ;;  %vm1897_vm2 = vcmp.ne.s32.totalorder %v1893_v25, %v6686_v3  ;;  %v1763_v56 = vshrl.u32 %v1723_v41, 16  ;;  %4489 = vmatpush.bf16.msrb.mxu0 %v5840_v49 }
 0x112   : > { %v5882_v12 = vpack.c.bf16 %v776_v5, %v775_v9  ;;  %v2028_v46 = vsel %vm6661_vm10, %v2023_v58, %v6841_v37  ;;  %vm6862_vm5 = vmpackc.low %vm1898_vm4, %vm1897_vm2  ;;  %v645_v63 = vadd.s32 %v6636_v28, %v6852_v50  ;;  %v1467_v4 = vshrl.u32 %v1426_v55, 16  ;;  %v2211_v58 = vld [vmem:[#allocation2 + $0x8] sm:$0x8] }
 0x113   : > { %v1464_v34 = vsel %vm6762_vm0, %v1456_v20, %v1463_v22  ;;  %2195 = vst [vmem:[#allocation3 + $0x8] sm:$0xf] %v2028_v46  ;;  %v9464_v60 = vsel %vm6862_vm5, 4294967295, %v9463_v60  ;;  %v1766_v5 = vshll.u32 %v1723_v41, 16  ;;  %v2031_v32 = vrot.slane %v2029_v54, 4 }
 0x114   : > { %5965 = vst [vmem:[#allocation2 + $0x10] sm:$0xff] %v5882_v12   ;;  %v552_v33 = vpop.f32.mrf.mxu0  ;;  %v6873_v7 = vrot.slane %v1763_v56, 7  ;;  %v6877_v9 = vsel %vm6862_vm5, %v1657_v61, 0  ;;  %v1191_v12 = vrot.slane %v1189_v62, 4  ;;  %vm667_vm11 = vcmp.ge.s32.totalorder %v645_v63, 0  ;;  %vm6899_vm5 = vmand %vm668_vm13, %vm690_vm14 }
 0x115   : > { %v5088_v43 = vld [vmem:[#allocation3 + $0x24] sm:$0xf0]  ;;  %1608 = vst [vmem:[#allocation3 + $0x24] sm:$0xf] %v1464_v34  ;;  %v553_v11 = vadd.f32 %v6647_v36, %v552_v33  ;;  %vm689_vm12 = vcmp.lt.s32.totalorder %v645_v63, 256  ;;  %v6885_v17 = vrot.slane %v1467_v4, 7  ;;  %v2032_v19 = vor.u32 %v2031_v32, %v6841_v37 }
 0x116   : > { %v5091_v45 = vor.u32 %v5717_v38, %v5088_v43  ;;  %v2035_v20 = vshll.u32 %v6877_v9, 16  ;;  %vm6892_vm4 = vmand %vm667_vm11, %vm689_vm12  ;;  %v883_v25 = vand.u32 15, %v6852_v50  ;;  %v1470_v26 = vshll.u32 %v1426_v55, 16  ;;  %v5820_v38 = vld [vmem:[#allocation9 + $0xf8] sm:$0xff]  ;;  %v5086_v46 = vld [vmem:[#allocation3] sm:$0xf] }
 0x117   : > { %v598_v22 = vmax.f32 %v553_v11, 0.0  ;;  %v1768_v30 = vor.u32 %v1766_v5, %v6873_v7  ;;  %v1770_v33 = vrot.slane %v6873_v7, 4  ;;  %v1192_v34 = vor.u32 %v1191_v12, %v1187_v57  ;;  %4338 = vmatpush.bf16.msrb.mxu1 %v5820_v38  ;;  %vm9475_vm12 = vmpackc.low %vm6879_vm8, %vm6879_vm8  ;;  %v5827_v32 = vld [vmem:[#allocation9 + $0x130] sm:$0xff] }
 0x118   : > { %4248 = vmatmul.bf16.vlgmr.msra.gmra.mxu2 %v5091_v45  ;;  %vm6904_vm2 = vcmp.ne.s32.totalorder %v1332_v16, %v6686_v3  ;;  %vm6909_vm11 = vcmp.ne.s32.totalorder %v1333_v13, %v6693_v6  ;;  %v1465_v41 = vrot.slane %v6817_v8, 4  ;;  %v2033_v54 = vrot.slane %v2032_v19, 4 }
 0x119   : > { %v6914_v55 = vrot.slane %v2035_v20, 5  ;;  %v1472_v57 = vor.u32 %v1470_v26, %v6885_v17  ;;  %v1725_v59 = vsel %vm9475_vm12, 65537, %v9337_v23  ;;  %v777_v61 = vsel %vm6892_vm4, %v598_v22, 0.0  ;;  %vm6935_vm14 = vmpackc.low %vm6909_vm11, %vm6904_vm2  ;;  %4388 = vmatpush.bf16.msrb.mxu2 %v5827_v32 }
 0x11a   : > { %vm6925_vm13 = vcmp.ne.s32.totalorder %v883_v25, 0  ;;  %v1193_v63 = vrot.slane %v1192_v34, 4  ;;  %v9479_v0 = vsel %vm6935_vm14, 4294967295, %v9478_v0  ;;  %v1781_v7 = vshrl.u32 %v1725_v59, 16 }
 0x11b   : > { %v2901_v14 = vld [vmem:[#allocation2 + $0x14] sm:$0xf]  ;;  %v1626_v56 = vld [vmem:[#allocation2 + $0x10] sm:$0xf]  ;;  %v2038_v5 = vsel %vm6661_vm10, %v2033_v54, %v6914_v55  ;;  %v1473_v11 = vsel %vm6762_vm0, %v1465_v41, %v1472_v57  ;;  %v1778_v16 = vsel %vm6762_vm0, %v1770_v33, %v6733_v40  ;;  %v1784_v20 = vshll.u32 %v1725_v59, 16 }
 0x11c   : > { %v554_v21 = vpop.f32.mrf.mxu0  ;;  %2917 = vst [vmem:[#allocation3 + $0x1c] sm:$0xf] %v2901_v14  ;;  %v5721_v37 = vld [vmem:[#allocation3 + $0x20] sm:$0xf0]  ;;  %v1065_v1 = vld [vmem:[#allocation2 + $0x10] sm:$0xf]  ;;  %v1198_v19 = vsel %vm6661_vm10, %v1193_v63, %v6657_v48  ;;  %v1907_v24 = vunpack.c.l.b16 %v1778_v16  ;;  %v1908_v33 = vunpack.c.h.b16 %v1778_v16 }
 0x11d   : > { %v555_v15 = vadd.f32 %v6647_v36, %v554_v21  ;;  %v5087_v50 = vor.u32 %v5721_v37, %v5086_v46  ;;  %1642 = vst [vmem:[#allocation3 + $0x70] sm:$0xf] %v1626_v56  ;;  %v1769_v21 = vsel %vm6762_vm0, %v6741_v35, %v1768_v30  ;;  %v1627_v12 = vld [vmem:[#allocation2 + $0x14] sm:$0xf]  ;;  %v1427_v13 = vsel %vm6935_vm14, %v1065_v1, 0 }
 0x11e   : > { %2196 = vst [vmem:[#allocation3 + $0x2c] sm:$0xf] %v2038_v5  ;;  %v1900_v14 = vunpack.c.l.b16 %v1769_v21  ;;  %v1476_v25 = vshrl.u32 %v1427_v13, 16  ;;  %v1783_v26 = vrot.slane %v1781_v7, 7  ;;  %v5726_v30 = vld [vmem:[#allocation3 + $0x4c] sm:$0xf]  ;;  %v1339_v38 = vunpack.c.l.b16 %v1198_v19 }
 0x11f   : > { %v599_v45 = vmax.f32 %v555_v15, 0.0  ;;  %4199 = vmatmul.bf16.vlgmr.msra.gmra.mxu1 %v5087_v50  ;;  %1609 = vst [vmem:[#allocation3 + $0x48] sm:$0xf] %v1473_v11  ;;  %v1901_v15 = vunpack.c.h.b16 %v1769_v21  ;;  %v2212_v37 = vld [vmem:[#allocation2 + $0xc] sm:$0xf]  ;;  %v1340_v43 = vunpack.c.h.b16 %v1198_v19  ;;  %v890_v57 = vand.u32 15, %v6857_v53 }
 0x120   : > { %1643 = vst [vmem:[#allocation3 + $0x94] sm:$0xf] %v1627_v12  ;;  %vm6962_vm8 = vcmp.ne.s32.totalorder %v1900_v14, %v6686_v3  ;;  %v5094_v41 = vld [vmem:[#allocation3 + $0x8] sm:$0xf]  ;;  %v2457_v54 = vld [vmem:[#allocation2 + $0xc] sm:$0xf]  ;;  %vm6976_vm4 = vcmp.ne.s32.totalorder %v1907_v24, %v6686_v3  ;;  %v1786_v63 = vor.u32 %v1784_v20, %v1783_v26  ;;  %vm6986_vm11 = vcmp.ne.s32.totalorder %v1908_v33, %v6693_v6 }
 0x121   : > { %v778_v62 = vsel %vm6899_vm5, %v599_v45, 0.0  ;;  %vm1116_vm5 = vmpackc.low %vm6925_vm13, %vm6925_vm13  ;;  %vm6967_vm2 = vcmp.ne.s32.totalorder %v1901_v15, %v6693_v6  ;;  %v6983_v1 = vadd.s32 64, %v6628_v18  ;;  %vm6991_vm12 = vcmp.ne.s32.totalorder %v1339_v38, %v6686_v3  ;;  %v1066_v38 = vld [vmem:[#allocation2 + $0x14] sm:$0xf] }
 0x122   : > { %v5887_v4 = vpack.c.bf16 %v778_v62, %v777_v61  ;;  %v1132_v22 = vsel %vm1116_vm5, 65537, %v9337_v23  ;;  %v6973_v61 = vadd.s32 72, %v6628_v18  ;;  %v6980_v62 = vrot.slane %v1476_v25, 7  ;;  %vm7020_vm14 = vmpackc.low %vm6967_vm2, %vm6962_vm8  ;;  %v1659_v5 = vld [vmem:[#allocation2 + $0x14] sm:$0xf] }
 0x123   : > { %v1205_v49 = vshll.u32 %v1132_v22, 16  ;;  %v1209_v56 = vshrl.u32 %v1132_v22, 16  ;;  %vm6996_vm13 = vcmp.ne.s32.totalorder %v1340_v43, %v6693_v6  ;;  %v1788_v32 = vrot.slane %v1783_v26, 4  ;;  %v1658_v43 = vld [vmem:[#allocation2 + $0x10] sm:$0xf]  ;;  %vm7065_vm2 = vmpackc.low %vm6986_vm11, %vm6976_vm4 }
 0x124   : > { %5966 = vst [vmem:[#allocation2 + $0x18] sm:$0xff] %v5887_v4   ;;  %v6948_v10 = vpop.f32.mrf.mxu0  ;;  %v5124_v34 = vld [vmem:[#allocation3 + $0x6c] sm:$0xf0]  ;;  %v2228_v21 = vsel %vm6724_vm9, %v2211_v58, 0  ;;  %v7004_v7 = vsel %vm6718_vm6, %v2212_v37, 0  ;;  %v2474_v11 = vsel %vm6781_vm3, %v2457_v54, 0  ;;  %v648_v20 = vadd.s32 %v6636_v28, %v6973_v61  ;;  %vm7040_vm8 = vmpackc.low %vm6996_vm13, %vm6991_vm12 }
 0x125   : > { %v5127_v44 = vor.u32 %v5726_v30, %v5124_v34  ;;  %v5722_v50 = vld [vmem:[#allocation3 + $0x28] sm:$0xf0]  ;;  %9492 = vst [vmem:[#allocation25_spill] sm:$0xff] %v7004_v7  ;;  %v1479_v12 = vshll.u32 %v1427_v13, 16  ;;  %v7008_v14 = vrot.slane %v1205_v49, 5  ;;  %v1211_v15 = vrot.slane %v1209_v56, 4 }
 0x126   : > { %v5095_v59 = vor.u32 %v5722_v50, %v5094_v41  ;;  %vm7010_vm5 = vcmp.ne.s32.totalorder %v890_v57, 15  ;;  %v9495_v22 = vmov 0  ;;  %v2039_v13 = vshrl.u32 %v6877_v9, 16 }
 0x127   : > { %v9496_v22 = vsel %vm7020_vm14, 4294967295, %v9495_v22  ;;  %v7028_v24 = vsel %vm6762_vm0, %v6741_v35, %v1786_v63  ;;  %v647_v25 = vadd.s32 %v6636_v28, %v6983_v1  ;;  %v1481_v26 = vor.u32 %v1479_v12, %v6980_v62  ;;  %vm9502_vm6 = vmpackc.low %vm7010_vm5, %vm7010_vm5 }
 0x128   : > { %4253 = vmatmul.bf16.gmra.mxu2 %v5127_v44  ;;  %4297 = vmatmul.bf16.vlgmr.msra.gmra.mxu3 %v5095_v59  ;;  %v7033_v30 = vshrl.u32 %v2228_v21, 16  ;;  %v2251_v34 = vshrl.u32 %v7004_v7, 16  ;;  %v2492_v33 = vshrl.u32 %v2474_v11, 16  ;;  %v9498_v9 = vmov 0  ;;  %v2933_v21 = vld [vmem:[#allocation2 + $0x14] sm:$0xf] }
 0x129   : > { %v9499_v9 = vsel %vm7040_vm8, 4294967295, %v9498_v9  ;;  %v2495_v37 = vshll.u32 %v2474_v11, 16  ;;  %v7048_v44 = vsel %vm6762_vm0, %v1788_v32, %v6733_v40  ;;  %v558_v45 = vadd.f32 %v6647_v36, %v6948_v10 }
 0x12a   : > { %9497 = vst [vmem:[#allocation26_spill] sm:$0xff] %v7033_v30  ;;  %v1474_v46 = vrot.slane %v6885_v17, 4  ;;  %v1914_v49 = vunpack.c.l.b16 %v7028_v24  ;;  %v1212_v41 = vor.u32 %v1211_v15, %v7008_v14  ;;  %vm670_vm12 = vcmp.ge.s32.totalorder %v648_v20, 0  ;;  %v5818_v30 = vld [vmem:[#allocation9 + $0xe8] sm:$0xff] }
 0x12b   : > { %v2902_v50 = vld [vmem:[#allocation2 + $0x18] sm:$0xf]  ;;  %v2903_v54 = vld [vmem:[#allocation2 + $0x1c] sm:$0xf]  ;;  %vm692_vm13 = vcmp.lt.s32.totalorder %v648_v20, 256  ;;  %v1915_v56 = vunpack.c.h.b16 %v7028_v24  ;;  %vm691_vm9 = vcmp.lt.s32.totalorder %v647_v25, 256 }
 0x12c   : > { %v559_v16 = vpop.f32.mrf.mxu0  ;;  %2918 = vst [vmem:[#allocation3 + $0x40] sm:$0xf] %v2902_v50  ;;  %v1482_v57 = vsel %vm6762_vm0, %v1474_v46, %v1481_v26  ;;  %v7071_v17 = vsel %vm7040_vm8, %v1066_v38, 0  ;;  %v2001_v10 = vsel %vm7020_vm14, %v1658_v43, 0  ;;  %v7081_v59 = vsel %vm9502_vm6, 65537, %v9337_v23  ;;  %vm7087_vm4 = vmand %vm670_vm12, %vm692_vm13  ;;  %v5839_v46 = vld [vmem:[#allocation9 + $0x190] sm:$0xff] }
 0x12d   : > { %v560_v58 = vadd.f32 %v6647_v36, %v559_v16  ;;  %v9500_v36 = vmov 0  ;;  %2919 = vst [vmem:[#allocation3 + $0x64] sm:$0xf] %v2903_v54  ;;  %v2041_v63 = vrot.slane %v2039_v13, 4  ;;  %v600_v32 = vmax.f32 %v558_v45, 0.0  ;;  %v5819_v45 = vld [vmem:[#allocation9 + $0xf0] sm:$0xff]  ;;  %4490 = vmatpush.bf16.msrb.mxu0 %v5839_v46 }
 0x12e   : > { %v9501_v36 = vsel %vm7065_vm2, 4294967295, %v9500_v36  ;;  %v7091_v11 = vrot.slane %v2251_v34, 7  ;;  %v7093_v12 = vrot.slane %v2492_v33, 4  ;;  %v7095_v16 = vrot.slane %v2495_v37, 5  ;;  %1610 = vst [vmem:[#allocation3 + $0x6c] sm:$0xf] %v1482_v57  ;;  %4339 = vmatpush.bf16.msrb.mxu1 %v5819_v45 }
 0x12f   : > { %v601_v8 = vmax.f32 %v560_v58, 0.0  ;;  %v1213_v15 = vrot.slane %v1212_v41, 4  ;;  %vm9508_vm6 = vcmp.ge.s32.totalorder %v647_v25, 0  ;;  %v1485_v20 = vshrl.u32 %v7071_v17, 16  ;;  %v2213_v26 = vld [vmem:[#allocation2 + $0x10] sm:$0xf] }
 0x130   : > { %9505 = vst [vmem:[#allocation27_spill] sm:$0xff] %v7091_v11  ;;  %vm7099_vm11 = vmand %vm9508_vm6, %vm691_vm9  ;;  %v2049_v13 = vshrl.u32 %v2001_v10, 16  ;;  %v1921_v33 = vunpack.c.l.b16 %v7048_v44  ;;  %v1922_v37 = vunpack.c.h.b16 %v7048_v44  ;;  %v7110_v25 = vsel %vm7065_vm2, %v1659_v5, 0  ;;  %v2214_v38 = vld [vmem:[#allocation2 + $0x14] sm:$0xf] }
 0x131   : > { %9506 = vst [vmem:[#allocation28_spill] sm:$0xff] %v7093_v12  ;;  %v780_v43 = vsel %vm7087_vm4, %v601_v8, 0.0  ;;  %v2458_v41 = vld [vmem:[#allocation2 + $0x10] sm:$0xf]  ;;  %v1208_v50 = vsel %vm6661_vm10, %v6735_v42, %v7008_v14  ;;  %v779_v54 = vsel %vm7099_vm11, %v600_v32, 0.0  ;;  %v2042_v44 = vor.u32 %v2041_v63, %v6914_v55 }
 0x132   : > { %9507 = vst [vmem:[#allocation29_spill] sm:$0xff] %v7095_v16  ;;  %v2045_v57 = vshll.u32 %v2001_v10, 16  ;;  %v1628_v5 = vld [vmem:[#allocation2 + $0x18] sm:$0xf]  ;;  %v7124_v8 = vsel %vm6792_vm7, %v2213_v26, 0  ;;  %v1218_v53 = vsel %vm6661_vm10, %v1213_v15, %v6657_v48  ;;  %v5892_v23 = vpack.c.bf16 %v780_v43, %v779_v54  ;;  %4340 = vmatpush.bf16.msrb.mxu1 %v5818_v30 }
 0x133   : > { %9511 = vst [vmem:[#allocation30_spill] sm:$0xff] %v7124_v8  ;;  %v7129_v14 = vrot.slane %v1485_v20, 7  ;;  %v7131_v55 = vrot.slane %v2049_v13, 4  ;;  %v2059_v10 = vshrl.u32 %v7110_v25, 16  ;;  %v7136_v63 = vsel %vm6846_vm15, %v2214_v38, 0 }
 0x134   : > { %1644 = vst [vmem:[#allocation3 + $0xb8] sm:$0xf] %v1628_v5  ;;  %v2459_v32 = vld [vmem:[#allocation2 + $0x14] sm:$0xf]  ;;  %v7140_v19 = vsel %vm6802_vm1, %v2458_v41, 0  ;;  %v1346_v15 = vunpack.c.l.b16 %v1208_v50  ;;  %v1347_v26 = vunpack.c.h.b16 %v1208_v50  ;;  %vm7145_vm9 = vcmp.ne.s32.totalorder %v1914_v49, %v6686_v3  ;;  %v7209_v16 = vpop.f32.mrf.mxu0 }
 0x135   : > { %9512 = vst [vmem:[#allocation31_spill] sm:$0xff] %v7136_v63  ;;  %v5122_v43 = vld [vmem:[#allocation3 + $0x48] sm:$0xf]  ;;  %vm7150_vm5 = vcmp.ne.s32.totalorder %v1915_v56, %v6693_v6  ;;  %v2950_v38 = vsel %vm6781_vm3, %v2933_v21, 0  ;;  %v1353_v45 = vunpack.c.l.b16 %v1218_v53  ;;  %v5730_v46 = vld [vmem:[#allocation3 + $0x68] sm:$0xf0]  ;;  %v1354_v4 = vunpack.c.h.b16 %v1218_v53 }
 0x136   : > { %5967 = vst [vmem:[#allocation2 + $0x20] sm:$0xff] %v5892_v23   ;;  %v2043_v41 = vrot.slane %v2042_v44, 4  ;;  %v2047_v23 = vrot.slane %v2045_v57, 5  ;;  %v5838_v50 = vld [vmem:[#allocation9 + $0x188] sm:$0xff]  ;;  %v2260_v54 = vshrl.u32 %v7124_v8, 16  ;;  %v5123_v34 = vor.u32 %v5730_v46, %v5122_v43 }
 0x137   : > { %v2687_v49 = vld [vmem:[#allocation2 + $0x10] sm:$0x8]  ;;  %v2688_v5 = vld [vmem:[#allocation2 + $0x14] sm:$0xf]  ;;  %vm7159_vm12 = vcmp.ne.s32.totalorder %v1921_v33, %v6686_v3  ;;  %vm7164_vm3 = vcmp.ne.s32.totalorder %v1922_v37, %v6693_v6  ;;  %v2269_v44 = vshrl.u32 %v7136_v63, 16  ;;  %vm9521_vm13 = vnez %v9464_v60  ;;  %4491 = vmatpush.bf16.msrb.mxu0 %v5838_v50 }
 0x138   : > { %v2476_v57 = vsel %vm9521_vm13, %v2459_v32, 0  ;;  %v2501_v21 = vshll.u32 %v7140_v19, 16  ;;  %v2048_v53 = vsel %vm6661_vm10, %v2043_v41, %v2047_v23  ;;  %v2505_v33 = vshrl.u32 %v7140_v19, 16  ;;  %4204 = vmatmul.bf16.gmra.mxu1 %v5123_v34  ;;  %v5826_v41 = vld [vmem:[#allocation9 + $0x128] sm:$0xff]  ;;  %v1068_v19 = vld [vmem:[#allocation2 + $0x1c] sm:$0xf] }
 0x139   : > { %v2968_v43 = vshrl.u32 %v2950_v38, 16  ;;  %v2971_v46 = vshll.u32 %v2950_v38, 16  ;;  %v897_v37 = vand.u32 15, %v6983_v1  ;;  %2197 = vst [vmem:[#allocation3 + $0x50] sm:$0xf] %v2048_v53  ;;  %vm9522_vm4 = vnez %v9446_v31  ;;  %4389 = vmatpush.bf16.msrb.mxu2 %v5826_v41 }
 0x13a   : > { %v2704_v24 = vsel %vm9522_vm4, %v2687_v49, 0  ;;  %vm9523_vm6 = vnez %v9444_v27  ;;  %vm7183_vm11 = vcmp.ne.s32.totalorder %v1346_v15, %v6686_v3  ;;  %vm7188_vm15 = vcmp.ne.s32.totalorder %v1347_v26, %v6693_v6  ;;  %v5735_v1 = vld [vmem:[#allocation3 + $0x94] sm:$0xf]  ;;  %v1661_v13 = vld [vmem:[#allocation2 + $0x1c] sm:$0xf] }
 0x13b   : > { %v7180_v32 = vsel %vm9523_vm6, %v2688_v5, 0  ;;  %v5160_v34 = vld [vmem:[#allocation3 + $0xb4] sm:$0xf0]  ;;  %vm7193_vm2 = vcmp.ne.s32.totalorder %v1353_v45, %v6686_v3  ;;  %vm7198_vm4 = vcmp.ne.s32.totalorder %v1354_v4, %v6693_v6  ;;  %v2052_v15 = vor.u32 %v7131_v55, %v2047_v23  ;;  %v5837_v26 = vld [vmem:[#allocation9 + $0x180] sm:$0xff]  ;;  %vm7215_vm6 = vmpackc.low %vm7188_vm15, %vm7183_vm11 }
 0x13c   : > { %v5163_v38 = vor.u32 %v5735_v1, %v5160_v34  ;;  %v7203_v50 = vrot.slane %v2059_v10, 4  ;;  %v2511_v49 = vshll.u32 %v2476_v57, 16  ;;  %v2515_v5 = vshrl.u32 %v2476_v57, 16  ;;  %v1067_v10 = vld [vmem:[#allocation2 + $0x18] sm:$0xf]  ;;  %4492 = vmatpush.bf16.msrb.mxu0 %v5837_v26  ;;  %vm7234_vm15 = vmpackc.low %vm7198_vm4, %vm7193_vm2 }
 0x13d   : > { %v9532_v53 = vshrl.u32 %v7081_v59, 16  ;;  %v2970_v12 = vrot.slane %v2968_v43, 4  ;;  %v2973_v4 = vrot.slane %v2971_v46, 5  ;;  %vm7219_vm14 = vcmp.ne.s32.totalorder %v897_v37, 0  ;;  %vm7260_vm11 = vmpackc.low %vm7150_vm5, %vm7145_vm9 }
 0x13e   : > { %v2055_v57 = vshll.u32 %v7110_v25, 16  ;;  %4258 = vmatmul.bf16.gmra.mxu2 %v5163_v38  ;;  %v7224_v1 = vrot.slane %v2260_v54, 7  ;;  %v7227_v58 = vshrl.u32 %v2704_v24, 16  ;;  %v2727_v46 = vshrl.u32 %v7180_v32, 16  ;;  %vm1118_vm2 = vmpackc.low %vm7219_vm14, %vm7219_vm14 }
 0x13f   : > { %v7207_v45 = vrot.slane %v9532_v53, 7  ;;  %v7238_v25 = vrot.slane %v2269_v44, 7  ;;  %v7240_v54 = vrot.slane %v2501_v21, 5  ;;  %v7242_v34 = vrot.slane %v2505_v33, 4  ;;  %v2689_v53 = vld [vmem:[#allocation2 + $0x18] sm:$0xf]  ;;  %vm7280_vm14 = vmpackc.low %vm7164_vm3, %vm7159_vm12 }
 0x140   : > { %9537 = vst [vmem:[#allocation32_spill] sm:$0xff] %v7224_v1  ;;  %v2053_v24 = vrot.slane %v2052_v15, 4  ;;  %v7244_v38 = vrot.slane %v2511_v49, 5  ;;  %v7246_v26 = vrot.slane %v2515_v5, 4  ;;  %v2730_v31 = vshll.u32 %v7180_v32, 16 }
 0x141   : > { %9540 = vst [vmem:[#allocation33_spill] sm:$0xff] %v7238_v25  ;;  %v7251_v27 = vsel %vm7215_vm6, %v1067_v10, 0  ;;  %v9545_v44 = vmov 0  ;;  %v2974_v21 = vor.u32 %v2973_v4, %v2970_v12  ;;  %v7266_v33 = vsel %vm7234_vm15, %v1068_v19, 0  ;;  %v1660_v32 = vld [vmem:[#allocation2 + $0x18] sm:$0xf] }
 0x142   : > { %9541 = vst [vmem:[#allocation34_spill] sm:$0xff] %v7240_v54  ;;  %v9546_v44 = vsel %vm7260_vm11, 4294967295, %v9545_v44  ;;  %v9548_v15 = vshll.u32 %v7081_v59, 16  ;;  %v7271_v49 = vrot.slane %v2055_v57, 5  ;;  %v5083_v20 = vrot.slane %v7227_v58, 11 }
 0x143   : > { %9542 = vst [vmem:[#allocation35_spill] sm:$0xff] %v7242_v34  ;;  %v7274_v5 = vrot.slane %v2727_v46, 7  ;;  %v2904_v10 = vld [vmem:[#allocation2 + $0x20] sm:$0xf]  ;;  %v9549_v12 = vmov 0  ;;  %v1494_v4 = vshrl.u32 %v7251_v27, 16 }
 0x144   : > { %9543 = vst [vmem:[#allocation36_spill] sm:$0xff] %v7244_v38  ;;  %v1804_v41 = vor.u32 %v9548_v15, %v7207_v45  ;;  %v9550_v12 = vsel %vm7280_vm14, 4294967295, %v9549_v12  ;;  %v7287_v59 = vsel %vm6792_vm7, %v2689_v53, 0  ;;  %v9552_v23 = vmov 0   ;;  %v2215_v19 = vld [vmem:[#allocation2 + $0x18] sm:$0xf] }
 0x145   : > { %9544 = vst [vmem:[#allocation37_spill] sm:$0xff] %v7246_v26  ;;  %v1134_v57 = vsel %vm1118_vm2, 65537, %v9552_v23  ;;  %v2058_v58 = vsel %vm6661_vm10, %v2053_v24, %v7271_v49  ;;  %v1503_v56 = vshrl.u32 %v7266_v33, 16  ;;  %v1806_v29 = vrot.slane %v7207_v45, 4 }
 0x146   : > { %9547 = vst [vmem:[#allocation38_spill] sm:$0xff] %v9546_v44  ;;  %v7297_v46 = vsel %vm7260_vm11, %v1660_v32, 0  ;;  %v7302_v53 = vrot.slane %v2974_v21, 4  ;;  %v1497_v15 = vshll.u32 %v7251_v27, 16  ;;  %v7308_v24 = vsel %vm6762_vm0, %v6741_v35, %v1804_v41  ;;  %v564_v21 = vpop.f32.mrf.mxu0  ;;  %v1629_v27 = vld [vmem:[#allocation2 + $0x1c] sm:$0xf] }
 0x147   : > { %9551 = vst [vmem:[#allocation39_spill] sm:$0xff] %v9550_v12  ;;  %v904_v45 = vand.u32 15, %v6973_v61  ;;  %v7313_v32 = vsel %vm7280_vm14, %v1661_v13, 0  ;;  %v2736_v43 = vshrl.u32 %v7287_v59, 16  ;;  %v1225_v26 = vshll.u32 %v1134_v57, 16 }
 0x148   : > { %2920 = vst [vmem:[#allocation3 + $0x88] sm:$0xf] %v2904_v10  ;;  %v2216_v10 = vld [vmem:[#allocation2 + $0x1c] sm:$0xf]  ;;  %v1229_v38 = vshrl.u32 %v1134_v57, 16  ;;  %v2069_v41 = vshrl.u32 %v7297_v46, 16  ;;  %vm9554_vm7 = vnez %v9479_v0 }
 0x149   : > { %9553 = vst [vmem:[#allocation40_spill] sm:$0xff] %v7302_v53  ;;  %v7316_v53 = vrot.slane %v1494_v4, 7  ;;  %v7322_v63 = vsel %vm9554_vm7, %v2215_v19, 0  ;;  %v7324_v61 = vrot.slane %v1503_v56, 7  ;;  %v7329_v13 = vld [vmem:[%s9316_s4] ss:$0 sm:$0xff]  ;;  %v649_v4 = vadd.s32 %v6636_v28, %v7300_v39 }
 0x14a   : > { %2198 = vst [vmem:[#allocation3 + $0x74] sm:$0xf] %v2058_v58  ;;  %v563_v57 = vadd.f32 %v7329_v13, %v7209_v16  ;;  %v2732_v58 = vor.u32 %v2730_v31, %v7274_v5  ;;  %v7339_v56 = vsel %vm7040_vm8, %v2216_v10, 0  ;;  %v565_v19 = vadd.f32 %v7329_v13, %v564_v21  ;;  %v1070_v0 = vld [vmem:[#allocation2 + $0x24] sm:$0xf] }
 0x14b   : > { %9555 = vst [vmem:[#allocation41_spill] sm:$0xff] %v7339_v56  ;;  %v9556_v34 = vshll.u32 %v7071_v17, 16  ;;  %v7345_v16 = vrot.slane %v2736_v43, 7  ;;  %v2739_v8 = vshll.u32 %v7287_v59, 16  ;;  %v1227_v1 = vrot.slane %v1225_v26, 5 }
 0x14c   : > { %v1231_v31 = vrot.slane %v1229_v38, 4  ;;  %1645 = vst [vmem:[#allocation3 + $0xdc] sm:$0xf] %v1629_v27  ;;  %vm671_vm9 = vcmp.ge.s32.totalorder %v649_v4, 0  ;;  %vm693_vm5 = vcmp.lt.s32.totalorder %v649_v4, 256  ;;  %v7349_v25 = vadd.s32 88, %v6628_v18 }
 0x14d   : > { %v1490_v54 = vor.u32 %v9556_v34, %v7129_v14  ;;  %v1483_v10 = vrot.slane %v6980_v62, 4  ;;  %vm7352_vm12 = vcmp.ne.s32.totalorder %v904_v45, 15  ;;  %v602_v17 = vmax.f32 %v563_v57, 0.0  ;;  %v5130_v38 = vld [vmem:[#allocation3 + $0x50] sm:$0xf]  ;;  %vm7370_vm3 = vmand %vm671_vm9, %vm693_vm5 }
 0x14e   : > { %v1499_v43 = vor.u32 %v1497_v15, %v7316_v53  ;;  %v2733_v34 = vsel %vm6762_vm0, %v5083_v20, %v2732_v58  ;;  %v603_v59 = vmax.f32 %v565_v19, 0.0  ;;  %v650_v27 = vadd.s32 %v6636_v28, %v7349_v25  ;;  %v2460_v45 = vld [vmem:[#allocation2 + $0x18] sm:$0xf]  ;;  %vm1713_vm4 = vmpackc.low %vm7352_vm12, %vm7352_vm12 }
 0x14f   : > { %v1492_v7 = vrot.slane %v7129_v14, 4  ;;  %v7365_v62 = vsel %vm6762_vm0, %v1806_v29, %v6733_v40  ;;  %v2934_v15 = vld [vmem:[#allocation2 + $0x18] sm:$0xf]  ;;  %v1491_v58 = vsel %vm6762_vm0, %v1483_v10, %v1490_v54  ;;  %2885 = vst [vmem:[#allocation3 + $0x18] sm:$0xf] %v2733_v34  ;;  %v1929_v19 = vunpack.c.h.b16 %v7308_v24 }
 0x150   : > { %v1630_v14 = vld [vmem:[#allocation2 + $0x20] sm:$0xf]  ;;  %v2935_v29 = vld [vmem:[#allocation2 + $0x1c] sm:$0xf]  ;;  %vm672_vm2 = vcmp.ge.s32.totalorder %v650_v27, 0  ;;  %vm694_vm8 = vcmp.lt.s32.totalorder %v650_v27, 256  ;;  %v1232_v10 = vor.u32 %v1231_v31, %v1227_v1  ;;  %v2741_v34 = vor.u32 %v2739_v8, %v7345_v16 }
 0x151   : > { %v5731_v26 = vld [vmem:[#allocation3 + $0x70] sm:$0xf0]  ;;  %v1500_v4 = vsel %vm6762_vm0, %v1492_v7, %v1499_v43  ;;  %1611 = vst [vmem:[#allocation3 + $0x90] sm:$0xf] %v1491_v58  ;;  %v2461_v54 = vld [vmem:[#allocation2 + $0x1c] sm:$0xf]  ;;  %vm716_vm9 = vmand %vm672_vm2, %vm694_vm8  ;;  %v2062_v27 = vor.u32 %v7203_v50, %v7271_v49  ;;  %vm9561_vm8 = vnez %v9496_v22  ;;  %v1228_v50 = vsel %vm6661_vm10, %v6735_v42, %v1227_v1 }
 0x152   : > { %v5131_v57 = vor.u32 %v5731_v26, %v5130_v38  ;;  %v7382_v38 = vrot.slane %v2069_v41, 4  ;;  %v2278_v26 = vshrl.u32 %v7322_v63, 16  ;;  %1612 = vst [vmem:[#allocation3 + $0xb4] sm:$0xf] %v1500_v4  ;;  %v781_v30 = vsel %vm7370_vm3, %v602_v17, 0.0 }
 0x153   : > { %v782_v11 = vsel %vm716_vm9, %v603_v59, 0.0  ;;  %v2065_v7 = vshll.u32 %v7297_v46, 16  ;;  %1646 = vst [vmem:[#allocation3 + $0x100] sm:$0xf] %v1630_v14  ;;  %v2951_v41 = vsel %vm6802_vm1, %v2934_v15, 0  ;;  %v2952_v31 = vsel %vm9521_vm13, %v2935_v29, 0 }
 0x154   : > { %4302 = vmatmul.bf16.gmra.mxu3 %v5131_v57  ;;  %v5897_v43 = vpack.c.bf16 %v782_v11, %v781_v30  ;;  %v2734_v57 = vrot.slane %v7274_v5, 4  ;;  %v2425_v8 = vld [vmem:[#allocation2 + $0xc] sm:$0xf]  ;;  %v7399_v17 = vsel %vm9561_vm8, %v2460_v45, 0  ;;  %v1729_v51 = vsel %vm1713_vm4, 65537, %v9552_v23 }
 0x155   : > { %9562 = vst [vmem:[#allocation42_spill] sm:$0xff] %v7399_v17  ;;  %v1233_v60 = vrot.slane %v1232_v10, 4  ;;  %v2063_v49 = vrot.slane %v2062_v27, 4  ;;  %v2067_v5 = vrot.slane %v2065_v7, 5  ;;  %vm9563_vm1 = vnez %v9501_v36  ;;  %v2690_v45 = vld [vmem:[#allocation2 + $0x1c] sm:$0xf] }
 0x156   : > { %2441 = vst [vmem:[#allocation3 + $0x10] sm:$0xf] %v2425_v8  ;;  %v2742_v11 = vsel %vm6762_vm0, %v2734_v57, %v2741_v34  ;;  %v7414_v46 = vsel %vm9563_vm1, %v2461_v54, 0  ;;  %v2977_v1 = vshll.u32 %v2951_v41, 16  ;;  %v2981_v59 = vshrl.u32 %v2951_v41, 16 }
 0x157   : > { %5968 = vst [vmem:[#allocation2 + $0x28] sm:$0xff] %v5897_v43   ;;  %v2987_v30 = vshll.u32 %v2952_v31, 16  ;;  %v1360_v21 = vunpack.c.l.b16 %v1228_v50  ;;  %v1361_v15 = vunpack.c.h.b16 %v1228_v50  ;;  %v1817_v58 = vshrl.u32 %v1729_v51, 16 }
 0x158   : > { %9564 = vst [vmem:[#allocation43_spill] sm:$0xff] %v7414_v46  ;;  %v2068_v14 = vsel %vm6661_vm10, %v2063_v49, %v2067_v5  ;;  %v1935_v29 = vunpack.c.l.b16 %v7365_v62  ;;  %v1936_v4 = vunpack.c.h.b16 %v7365_v62  ;;  %v5158_v10 = vld [vmem:[#allocation3 + $0x90] sm:$0xf]  ;;  %v2991_v54 = vshrl.u32 %v2952_v31, 16 }
 0x159   : > { %2886 = vst [vmem:[#allocation3 + $0x3c] sm:$0xf] %v2742_v11  ;;  %v5739_v34 = vld [vmem:[#allocation3 + $0xb0] sm:$0xf0]  ;;  %v1238_v27 = vsel %vm6661_vm10, %v1233_v60, %v6657_v48  ;;  %v911_v7 = vand.u32 15, %v7300_v39  ;;  %v9565_v57 = vunpack.c.l.b16 %v7308_v24  ;;  %vm7432_vm5 = vcmp.ne.s32.totalorder %v1929_v19, %v6693_v6 }
 0x15a   : > { %2199 = vst [vmem:[#allocation3 + $0x98] sm:$0xf] %v2068_v14  ;;  %v5159_v41 = vor.u32 %v5739_v34, %v5158_v10  ;;  %v5196_v43 = vld [vmem:[#allocation3 + $0xfc] sm:$0xf0]  ;;  %vm9570_vm12 = vnez %v9462_v47  ;;  %v7440_v60 = vrot.slane %v2977_v1, 5  ;;  %v2983_v39 = vrot.slane %v2981_v59, 4  ;;  %v7453_v47 = vpop.f32.mrf.mxu0 }
 0x15b   : > { %vm7427_vm13 = vcmp.ne.s32.totalorder %v9565_v57, %v6686_v3  ;;  %v7438_v31 = vsel %vm9570_vm12, %v2690_v45, 0  ;;  %v2072_v11 = vor.u32 %v7382_v38, %v2067_v5  ;;  %vm7444_vm3 = vcmp.ne.s32.totalorder %v1360_v21, %v6686_v3  ;;  %v5744_v1 = vld [vmem:[#allocation3 + $0xdc] sm:$0xf]  ;;  %v5825_v45 = vld [vmem:[#allocation9 + $0x120] sm:$0xff]  ;;  %v8126_v57 = vld [vmem:[%s9316_s4] ss:$0 sm:$0xff] }
 0x15c   : > { %9571 = vst [vmem:[#allocation44_spill] sm:$0xff] %v7440_v60  ;;  %vm7449_vm4 = vcmp.ne.s32.totalorder %v1361_v15, %v6693_v6  ;;  %v1819_v49 = vrot.slane %v1817_v58, 7  ;;  %v1820_v14 = vshll.u32 %v1729_v51, 16  ;;  %4209 = vmatmul.bf16.gmra.mxu1 %v5159_v41  ;;  %v1367_v59 = vunpack.c.l.b16 %v1238_v27  ;;  %4390 = vmatpush.bf16.msrb.mxu2 %v5825_v45 }
 0x15d   : > { %v1368_v10 = vunpack.c.h.b16 %v1238_v27  ;;  %v2075_v38 = vshll.u32 %v7313_v32, 16  ;;  %v5199_v5 = vor.u32 %v5744_v1, %v5196_v43  ;;  %v2287_v21 = vshrl.u32 %v7339_v56, 16  ;;  %vm7473_vm9 = vmpackc.low %vm7449_vm4, %vm7444_vm3  ;;  %v1663_v56 = vld [vmem:[#allocation2 + $0x24] sm:$0xf] }
 0x15e   : > { %v7457_v34 = vrot.slane %v2987_v30, 5  ;;  %v2993_v15 = vrot.slane %v2991_v54, 4  ;;  %vm7459_vm2 = vcmp.ne.s32.totalorder %v911_v7, 0  ;;  %v9579_v51 = vshrl.u32 %v7313_v32, 16  ;;  %v1069_v54 = vld [vmem:[#allocation2 + $0x20] sm:$0xf] }
 0x15f   : > { %v2525_v27 = vshrl.u32 %v7399_v17, 16  ;;  %v2073_v7 = vrot.slane %v2072_v11, 4  ;;  %4263 = vmatmul.bf16.gmra.mxu2 %v5199_v5  ;;  %v2535_v43 = vshrl.u32 %v7414_v46, 16  ;;  %v2745_v32 = vshrl.u32 %v7438_v31, 16  ;;  %vm1120_vm4 = vmpackc.low %vm7459_vm2, %vm7459_vm2 }
 0x160   : > { %9576 = vst [vmem:[#allocation45_spill] sm:$0xff] %v7457_v34  ;;  %v7465_v58 = vrot.slane %v9579_v51, 4  ;;  %v2984_v1 = vor.u32 %v2983_v39, %v7440_v60  ;;  %v1822_v45 = vor.u32 %v1820_v14, %v1819_v49  ;;  %v2691_v51 = vld [vmem:[#allocation2 + $0x20] sm:$0xf]  ;;  %vm7481_vm12 = vcmp.ne.s32.totalorder %v1367_v59, %v6686_v3  ;;  %v5815_v60 = vld [vmem:[#allocation9 + $0xd0] sm:$0xff] }
 0x161   : > { %vm1372_vm3 = vcmp.ne.s32.totalorder %v1368_v10, %v6693_v6  ;;  %v1824_v19 = vrot.slane %v1819_v49, 4  ;;  %v7489_v11 = vrot.slane %v2075_v38, 5  ;;  %v7493_v5 = vrot.slane %v2278_v26, 7 }
 0x162   : > { %v7495_v39 = vrot.slane %v2287_v21, 7  ;;  %v2994_v14 = vor.u32 %v2993_v15, %v7457_v34  ;;  %v7500_v59 = vsel %vm7473_vm9, %v1069_v54, 0  ;;  %v7502_v10 = vrot.slane %v2525_v27, 4  ;;  %vm7519_vm2 = vmpackc.low %vm1372_vm3, %vm7481_vm12  ;;  %v569_v41 = vpop.f32.mrf.mxu0 }
 0x163   : > { %v7506_v49 = vsel %vm9554_vm7, %v2691_v51, 0  ;;  %v2078_v38 = vsel %vm6661_vm10, %v2073_v7, %v7489_v11  ;;  %v7512_v26 = vadd.s32 96, %v6628_v18  ;;  %v7514_v21 = vrot.slane %v2535_v43, 4  ;;  %v1662_v51 = vld [vmem:[#allocation2 + $0x20] sm:$0xf]  ;;  %vm7543_vm7 = vmpackc.low %vm7432_vm5, %vm7427_vm13 }
 0x164   : > { %9584 = vst [vmem:[#allocation46_spill] sm:$0xff] %v7495_v39  ;;  %v2748_v15 = vshll.u32 %v7438_v31, 16  ;;  %v7526_v27 = vsel %vm6762_vm0, %v6741_v35, %v1822_v45  ;;  %v1136_v54 = vsel %vm1120_vm4, 65537, %v9552_v23  ;;  %v7529_v7 = vrot.slane %v2745_v32, 7  ;;  %v2218_v39 = vld [vmem:[#allocation2 + $0x24] sm:$0xf] }
 0x165   : > { %9585 = vst [vmem:[#allocation47_spill] sm:$0xff] %v7502_v10  ;;  %v7531_v43 = vrot.slane %v2984_v1, 4  ;;  %v1512_v31 = vshrl.u32 %v7500_v59, 16  ;;  %v7537_v24 = vsel %vm6762_vm0, %v1824_v19, %v6733_v40  ;;  %v9590_v45 = vmov 0  ;;  %v5724_v19 = vld [vmem:[#allocation3 + $0x38] sm:$0xf0] }
 0x166   : > { %9586 = vst [vmem:[#allocation48_spill] sm:$0xff] %v7514_v21  ;;  %v9591_v45 = vsel %vm7543_vm7, 4294967295, %v9590_v45  ;;  %vm7550_vm12 = vcmp.ne.s32.totalorder %v1935_v29, %v6686_v3  ;;  %vm7557_vm3 = vcmp.ne.s32.totalorder %v1936_v4, %v6693_v6  ;;  %v7561_v8 = vrot.slane %v2994_v14, 4  ;;  %v5110_v10 = vld [vmem:[#allocation3 + $0x18] sm:$0xf] }
 0x167   : > { %9589 = vst [vmem:[#allocation49_spill] sm:$0xff] %v7531_v43  ;;  %v2754_v50 = vshrl.u32 %v7506_v49, 16  ;;  %v7566_v29 = vsel %vm7519_vm2, %v1070_v0, 0  ;;  %v1245_v21 = vshll.u32 %v1136_v54, 16  ;;  %v651_v62 = vadd.s32 %v6636_v28, %v7512_v26  ;;  %v1631_v43 = vld [vmem:[#allocation2 + $0x24] sm:$0xf]  ;;  %vm7600_vm4 = vmpackc.low %vm7557_vm3, %vm7550_vm12 }
 0x168   : > { %9592 = vst [vmem:[#allocation50_spill] sm:$0xff] %v9591_v45  ;;  %v7575_v34 = vrot.slane %v1512_v31, 7  ;;  %v7579_v0 = vsel %vm7543_vm7, %v1662_v51, 0  ;;  %v5111_v20 = vor.u32 %v5724_v19, %v5110_v10  ;;  %v570_v46 = vadd.f32 %v7329_v13, %v569_v41  ;;  %v2426_v41 = vld [vmem:[#allocation2 + $0x10] sm:$0xf] }
 0x169   : > { %9597 = vst [vmem:[#allocation51_spill] sm:$0xff] %v7561_v8  ;;  %v1249_v8 = vshrl.u32 %v1136_v54, 16  ;;  %v1515_v4 = vshll.u32 %v7500_v59, 16  ;;  %v1521_v14 = vshrl.u32 %v7566_v29, 16  ;;  %v7584_v54 = vrot.slane %v2754_v50, 7 }
 0x16a   : > { %2200 = vst [vmem:[#allocation3 + $0xbc] sm:$0xf] %v2078_v38  ;;  %v568_v38 = vadd.f32 %v7329_v13, %v7453_v47  ;;  %v918_v17 = vand.u32 15, %v7349_v25  ;;  %v5817_v47 = vld [vmem:[#allocation9 + $0xe0] sm:$0xff]  ;;  %v7587_v31 = vrot.slane %v1245_v21, 5  ;;  %4493 = vmatmul.bf16.vlgmr.msrb.gmra.mxu0 %v5111_v20  ;;  %vm673_vm13 = vcmp.ge.s32.totalorder %v651_v62, 0 }
 0x16b   : > { %1647 = vst [vmem:[#allocation3 + $0x124] sm:$0xf] %v1631_v43  ;;  %vm695_vm5 = vcmp.lt.s32.totalorder %v651_v62, 256  ;;  %v7590_v10 = vadd.s32 104, %v6628_v18  ;;  %v1251_v43 = vrot.slane %v1249_v8, 4  ;;  %v1501_v59 = vrot.slane %v7316_v53, 4  ;;  %4341 = vmatpush.bf16.msrb.mxu1 %v5817_v47 }
 0x16c   : > { %v604_v51 = vmax.f32 %v568_v38, 0.0  ;;  %v9598_v50 = vshll.u32 %v7266_v33, 16  ;;  %2442 = vst [vmem:[#allocation3 + $0x34] sm:$0xf] %v2426_v41  ;;  %v9599_v25 = vmov 0  ;;  %v605_v8 = vmax.f32 %v570_v46, 0.0  ;;  %vm7610_vm7 = vmand %vm673_vm13, %vm695_vm5 }
 0x16d   : > { %v9600_v25 = vsel %vm7600_vm4, 4294967295, %v9599_v25  ;;  %v5166_v20 = vld [vmem:[#allocation3 + $0x98] sm:$0xf]  ;;  %v652_v53 = vadd.s32 %v6636_v28, %v7590_v10  ;;  %v1510_v38 = vrot.slane %v7324_v61, 4  ;;  %v1517_v33 = vor.u32 %v1515_v4, %v7575_v34 }
 0x16e   : > { %v1508_v19 = vor.u32 %v9598_v50, %v7324_v61  ;;  %9601 = vst [vmem:[#allocation52_spill] sm:$0xff] %v9600_v25  ;;  %v2743_v41 = vrot.slane %v7345_v16, 4  ;;  %v2750_v46 = vor.u32 %v2748_v15, %v7529_v7  ;;  %v2217_v50 = vld [vmem:[#allocation2 + $0x20] sm:$0xf]  ;;  %v2757_v61 = vshll.u32 %v7506_v49, 16 }
 0x16f   : > { %vm7619_vm12 = vcmp.ne.s32.totalorder %v918_v17, 15  ;;  %vm674_vm3 = vcmp.ge.s32.totalorder %v652_v53, 0  ;;  %vm696_vm13 = vcmp.lt.s32.totalorder %v652_v53, 256  ;;  %v2462_v16 = vld [vmem:[#allocation2 + $0x20] sm:$0xf]  ;;  %v1518_v15 = vsel %vm6762_vm0, %v1510_v38, %v1517_v33 }
 0x170   : > { %v1509_v1 = vsel %vm6762_vm0, %v1501_v59, %v1508_v19  ;;  %v7626_v59 = vsel %vm7600_vm4, %v1663_v56, 0  ;;  %vm718_vm5 = vmand %vm674_vm3, %vm696_vm13  ;;  %v2751_v17 = vsel %vm6762_vm0, %v2743_v41, %v2750_v46  ;;  %v1632_v49 = vld [vmem:[#allocation2 + $0x28] sm:$0xf]  ;;  %v783_v19 = vsel %vm7610_vm7, %v604_v51, 0.0  ;;  %1614 = vst [vmem:[#allocation3 + $0xfc] sm:$0xf] %v1518_v15 }
 0x171   : > { %v5740_v21 = vld [vmem:[#allocation3 + $0xb8] sm:$0xf0]  ;;  %1613 = vst [vmem:[#allocation3 + $0xd8] sm:$0xf] %v1509_v1  ;;  %v2759_v56 = vor.u32 %v2757_v61, %v7584_v54  ;;  %v2936_v53 = vld [vmem:[#allocation2 + $0x20] sm:$0xf]  ;;  %vm1715_vm3 = vmpackc.low %vm7619_vm12, %vm7619_vm12  ;;  %v2082_v51 = vor.u32 %v7465_v58, %v7489_v11  ;;  %vm9612_vm12 = vnez %v9499_v9 }
 0x172   : > { %v5167_v47 = vor.u32 %v5740_v21, %v5166_v20  ;;  %v784_v20 = vsel %vm718_vm5, %v605_v8, 0.0  ;;  %v2752_v21 = vrot.slane %v7529_v7, 4  ;;  %v925_v38 = vand.u32 15, %v7512_v26  ;;  %2887 = vst [vmem:[#allocation3 + $0x60] sm:$0xf] %v2751_v17  ;;  %v572_v7 = vpop.f32.mrf.mxu0 }
 0x173   : > { %v5902_v33 = vpack.c.bf16 %v784_v20, %v783_v19  ;;  %v7643_v8 = vrot.slane %v1521_v14, 7  ;;  %v2089_v32 = vshrl.u32 %v7579_v0, 16  ;;  %v2463_v1 = vld [vmem:[#allocation2 + $0x24] sm:$0xf]  ;;  %1648 = vst [vmem:[#allocation3 + $0x148] sm:$0xf] %v1632_v49 }
 0x174   : > { %4307 = vmatmul.bf16.gmra.mxu3 %v5167_v47  ;;  %v1252_v47 = vor.u32 %v1251_v43, %v7587_v31  ;;  %v2760_v43 = vsel %vm6762_vm0, %v2752_v21, %v2759_v56  ;;  %v2099_v41 = vshrl.u32 %v7626_v59, 16  ;;  %v7652_v26 = vsel %vm7215_vm6, %v2217_v50, 0  ;;  %v2692_v49 = vld [vmem:[#allocation2 + $0x24] sm:$0xf] }
 0x175   : > { %9606 = vst [vmem:[#allocation53_spill] sm:$0xff] %v7652_v26  ;;  %v7656_v58 = vsel %vm7234_vm15, %v2218_v39, 0  ;;  %v2085_v11 = vshll.u32 %v7579_v0, 16  ;;  %v7661_v14 = vsel %vm7260_vm11, %v2462_v16, 0  ;;  %v2953_v46 = vsel %vm9561_vm8, %v2936_v53, 0 }
 0x176   : > { %9607 = vst [vmem:[#allocation54_spill] sm:$0xff] %v7656_v58  ;;  %v1248_v50 = vsel %vm6661_vm10, %v6735_v42, %v7587_v31  ;;  %v1731_v39 = vsel %vm1715_vm3, 65537, %v9552_v23  ;;  %v1253_v0 = vrot.slane %v1252_v47, 4  ;;  %vm7675_vm7 = vcmp.ne.s32.totalorder %v925_v38, 0  ;;  %v2937_v19 = vld [vmem:[#allocation2 + $0x24] sm:$0xf] }
 0x177   : > { %5969 = vst [vmem:[#allocation2 + $0x30] sm:$0xff] %v5902_v33   ;;  %v2083_v22 = vrot.slane %v2082_v51, 4  ;;  %v7679_v16 = vrot.slane %v2085_v11, 5  ;;  %v7681_v15 = vrot.slane %v2089_v32, 4  ;;  %v2296_v31 = vshrl.u32 %v7652_v26, 16  ;;  %vm1122_vm8 = vmpackc.low %vm7675_vm7, %vm7675_vm7 }
 0x178   : > { %9608 = vst [vmem:[#allocation55_spill] sm:$0xff] %v7661_v14  ;;  %v7687_v4 = vsel %vm7280_vm14, %v2463_v1, 0  ;;  %v1374_v20 = vunpack.c.l.b16 %v1248_v50  ;;  %v1375_v21 = vunpack.c.h.b16 %v1248_v50  ;;  %v1835_v56 = vshrl.u32 %v1731_v39, 16  ;;  %v5748_v53 = vld [vmem:[#allocation3 + $0xf8] sm:$0xf0] }
 0x179   : > { %2888 = vst [vmem:[#allocation3 + $0x84] sm:$0xf] %v2760_v43  ;;  %v2088_v47 = vsel %vm6661_vm10, %v2083_v22, %v7679_v16  ;;  %v7692_v38 = vrot.slane %v2099_v41, 4  ;;  %v2305_v33 = vshrl.u32 %v7656_v58, 16  ;;  %v2997_v51 = vshll.u32 %v2953_v46, 16 }
 0x17a   : > { %9611 = vst [vmem:[#allocation56_spill] sm:$0xff] %v7687_v4  ;;  %v3001_v32 = vshrl.u32 %v2953_v46, 16  ;;  %v2545_v43 = vshrl.u32 %v7661_v14, 16  ;;  %v2555_v11 = vshrl.u32 %v7687_v4, 16  ;;  %v1258_v41 = vsel %vm6661_vm10, %v1253_v0, %v6657_v48  ;;  %v5194_v50 = vld [vmem:[#allocation3 + $0xd8] sm:$0xf] }
 0x17b   : > { %2201 = vst [vmem:[#allocation3 + $0xe0] sm:$0xf] %v2088_v47  ;;  %v7706_v22 = vsel %vm9612_vm12, %v2692_v49, 0  ;;  %v2954_v46 = vsel %vm9563_vm1, %v2937_v19, 0  ;;  %v1838_v61 = vshll.u32 %v1731_v39, 16  ;;  %v5195_v47 = vor.u32 %v5748_v53, %v5194_v50  ;;  %v5824_v39 = vld [vmem:[#allocation9 + $0x118] sm:$0xff] }
 0x17c   : > { %vm7711_vm13 = vcmp.ne.s32.totalorder %v1374_v20, %v6686_v3  ;;  %vm7716_vm5 = vcmp.ne.s32.totalorder %v1375_v21, %v6693_v6  ;;  %v1837_v0 = vrot.slane %v1835_v56, 7  ;;  %v1138_v9 = vsel %vm1122_vm8, 65537, %v9552_v23  ;;  %4391 = vmatpush.bf16.msrb.mxu2 %v5824_v39 }
 0x17d   : > { %v7721_v49 = vrot.slane %v2997_v51, 5  ;;  %v3003_v62 = vrot.slane %v3001_v32, 4  ;;  %v1381_v36 = vunpack.c.l.b16 %v1258_v41  ;;  %v1382_v19 = vunpack.c.h.b16 %v1258_v41  ;;  %4214 = vmatmul.bf16.gmra.mxu1 %v5195_v47  ;;  %vm7748_vm7 = vmpackc.low %vm7716_vm5, %vm7711_vm13  ;;  %v2693_v41 = vld [vmem:[#allocation2 + $0x28] sm:$0xf] }
 0x17e   : > { %v7723_v53 = vrot.slane %v2296_v31, 7  ;;  %v7725_v20 = vrot.slane %v2305_v33, 7  ;;  %v7727_v50 = vrot.slane %v2545_v43, 4  ;;  %v2763_v21 = vshrl.u32 %v7706_v22, 16  ;;  %v1071_v43 = vld [vmem:[#allocation2 + $0x28] sm:$0xf] }
 0x17f   : > { %9617 = vst [vmem:[#allocation57_spill] sm:$0xff] %v7721_v49  ;;  %v9621_v56 = vunpack.c.l.b16 %v7526_v27  ;;  %v9624_v32 = vunpack.c.h.b16 %v7526_v27  ;;  %v1265_v47 = vshll.u32 %v1138_v9, 16  ;;  %v7752_v58 = vrot.slane %v2555_v11, 4 }
 0x180   : > { %9618 = vst [vmem:[#allocation58_spill] sm:$0xff] %v7723_v53  ;;  %v3007_v27 = vshll.u32 %v2954_v46, 16  ;;  %v3011_v1 = vshrl.u32 %v2954_v46, 16  ;;  %vm1385_vm8 = vcmp.ne.s32.totalorder %v1381_v36, %v6686_v3  ;;  %vm1386_vm12 = vcmp.ne.s32.totalorder %v1382_v19, %v6693_v6  ;;  %v1072_v19 = vld [vmem:[#allocation2 + $0x2c] sm:$0xf] }
 0x181   : > { %9619 = vst [vmem:[#allocation59_spill] sm:$0xff] %v7725_v20  ;;  %vm7733_vm1 = vcmp.ne.s32.totalorder %v9621_v56, %v6686_v3  ;;  %vm7740_vm3 = vcmp.ne.s32.totalorder %v9624_v32, %v6693_v6  ;;  %v1269_v56 = vshrl.u32 %v1138_v9, 16  ;;  %v1840_v32 = vor.u32 %v1838_v61, %v1837_v0  ;;  %v5733_v46 = vld [vmem:[#allocation3 + $0x80] sm:$0xf0] }
 0x182   : > { %9620 = vst [vmem:[#allocation60_spill] sm:$0xff] %v7727_v50  ;;  %v932_v20 = vand.u32 15, %v7590_v10  ;;  %v3004_v50 = vor.u32 %v3003_v62, %v7721_v49  ;;  %v7760_v17 = vsel %vm7748_vm7, %v1071_v43, 0  ;;  %v1842_v4 = vrot.slane %v1837_v0, 4  ;;  %vm7773_vm13 = vmpackc.low %vm7740_vm3, %vm7733_vm1  ;;  %v1664_v0 = vld [vmem:[#allocation2 + $0x28] sm:$0xf] }
 0x183   : > { %9629 = vst [vmem:[#allocation61_spill] sm:$0xff] %v7752_v58  ;;  %v7764_v11 = vsel %vm7215_vm6, %v2693_v41, 0  ;;  %v7767_v61 = vadd.s32 112, %v6628_v18  ;;  %v9630_v10 = vmov 0  ;;  %v7777_v62 = vrot.slane %v2763_v21, 7  ;;  %vm7780_vm6 = vmpackc.low %vm1386_vm12, %vm1385_vm8 }
 0x184   : > { %v9631_v10 = vsel %vm7773_vm13, 4294967295, %v9630_v10  ;;  %v1267_v9 = vrot.slane %v1265_v47, 5  ;;  %v1271_v55 = vrot.slane %v1269_v56, 4  ;;  %v9633_v36 = vmov 0  ;;  %v5232_v49 = vld [vmem:[#allocation3 + $0x144] sm:$0xf0] }
 0x185   : > { %9632 = vst [vmem:[#allocation62_spill] sm:$0xff] %v9631_v10  ;;  %v9634_v36 = vsel %vm7780_vm6, 4294967295, %v9633_v36  ;;  %v7787_v39 = vsel %vm6762_vm0, %v6741_v35, %v1840_v32  ;;  %vm7789_vm5 = vcmp.ne.s32.totalorder %v932_v20, 15  ;;  %v2092_v21 = vor.u32 %v7681_v15, %v7679_v16  ;;  %v1633_v15 = vld [vmem:[#allocation2 + $0x2c] sm:$0xf] }
 0x186   : > { %v2095_v31 = vshll.u32 %v7626_v59, 16  ;;  %v7796_v43 = vrot.slane %v3007_v27, 5  ;;  %v7798_v41 = vrot.slane %v3011_v1, 4  ;;  %v1530_v47 = vshrl.u32 %v7760_v17, 16  ;;  %vm1717_vm8 = vmpackc.low %vm7789_vm5, %vm7789_vm5  ;;  %1649 = vst [vmem:[#allocation3 + $0x16c] sm:$0xf] %v1633_v15 }
 0x187   : > { %v2772_v56 = vshrl.u32 %v7764_v11, 16  ;;  %v7802_v32 = vrot.slane %v3004_v50, 4  ;;  %v7807_v20 = vsel %vm6762_vm0, %v1842_v4, %v6733_v40  ;;  %v7811_v16 = vsel %vm7773_vm13, %v1664_v0, 0 }
 0x188   : > { %9637 = vst [vmem:[#allocation63_spill] sm:$0xff] %v7796_v43  ;;  %v653_v59 = vadd.s32 %v6636_v28, %v7767_v61  ;;  %v9640_v27 = vunpack.c.l.b16 %v7537_v24  ;;  %v9643_v50 = vunpack.c.h.b16 %v7537_v24  ;;  %v7831_v0 = vsel %vm7780_vm6, %v1072_v19, 0  ;;  %v574_v19 = vpop.f32.mrf.mxu0 }
 0x189   : > { %9638 = vst [vmem:[#allocation64_spill] sm:$0xff] %v7798_v41  ;;  %v1272_v10 = vor.u32 %v1271_v55, %v1267_v9  ;;  %v573_v43 = vadd.f32 %v7329_v13, %v572_v7  ;;  %v7841_v26 = vrot.slane %v1530_v47, 7  ;;  %v1533_v41 = vshll.u32 %v7760_v17, 16  ;;  %v5816_v17 = vld [vmem:[#allocation9 + $0xd8] sm:$0xff] }
 0x18a   : > { %9639 = vst [vmem:[#allocation65_spill] sm:$0xff] %v7802_v32  ;;  %vm7818_vm1 = vcmp.ne.s32.totalorder %v9640_v27, %v6686_v3  ;;  %vm7825_vm3 = vcmp.ne.s32.totalorder %v9643_v50, %v6693_v6  ;;  %v5146_v27 = vld [vmem:[#allocation3 + $0x60] sm:$0xf]  ;;  %v2093_v50 = vrot.slane %v2092_v21, 4  ;;  %v7838_v32 = vrot.slane %v2095_v31, 5  ;;  %4342 = vmatpush.bf16.msrb.mxu1 %v5816_v17 }
 0x18b   : > { %v5147_v24 = vor.u32 %v5733_v46, %v5146_v27  ;;  %v7845_v58 = vrot.slane %v2772_v56, 7  ;;  %v7850_v51 = vsel %vm6661_vm10, %v6735_v42, %v1267_v9  ;;  %v7853_v46 = vsel %vm1717_vm8, 65537, %v9552_v23  ;;  %v5753_v21 = vld [vmem:[#allocation3 + $0x124] sm:$0xf]  ;;  %v1665_v17 = vld [vmem:[#allocation2 + $0x2c] sm:$0xf] }
 0x18c   : > { %v2098_v7 = vsel %vm6661_vm10, %v2093_v50, %v7838_v32  ;;  %vm675_vm12 = vcmp.ge.s32.totalorder %v653_v59, 0  ;;  %vm697_vm5 = vcmp.lt.s32.totalorder %v653_v59, 256  ;;  %v5235_v31 = vor.u32 %v5753_v21, %v5232_v49 }
 0x18d   : > { %4498 = vmatmul.bf16.gmra.mxu0 %v5147_v24  ;;  %2202 = vst [vmem:[#allocation3 + $0x104] sm:$0xf] %v2098_v7  ;;  %v575_v47 = vadd.f32 %v7329_v13, %v574_v19  ;;  %v7860_v56 = vadd.s32 120, %v6628_v18  ;;  %v1273_v9 = vrot.slane %v1272_v10, 4  ;;  %v606_v15 = vmax.f32 %v573_v43, 0.0  ;;  %vm7872_vm8 = vmand %vm675_vm12, %vm697_vm5 }
 0x18e   : > { %v1519_v27 = vrot.slane %v7575_v34, 4  ;;  %v9646_v24 = vshll.u32 %v7566_v29, 16  ;;  %v939_v50 = vand.u32 15, %v7767_v61  ;;  %4268 = vmatmul.bf16.gmra.mxu2 %v5235_v31  ;;  %v1535_v13 = vor.u32 %v1533_v41, %v7841_v26  ;;  %v1634_v19 = vld [vmem:[#allocation2 + $0x30] sm:$0xf]  ;;  %v5823_v31 = vld [vmem:[#allocation9 + $0x110] sm:$0xff]  ;;  %4343 = vmatpush.bf16.msrb.mxu1 %v5815_v60 }
 0x18f   : > { %v607_v7 = vmax.f32 %v575_v47, 0.0  ;;  %v654_v49 = vadd.s32 %v6636_v28, %v7860_v56  ;;  %v1528_v29 = vrot.slane %v7643_v8, 4  ;;  %v2761_v61 = vrot.slane %v7584_v54, 4  ;;  %1650 = vst [vmem:[#allocation3 + $0x190] sm:$0xf] %v1634_v19  ;;  %4392 = vmatpush.bf16.msrb.mxu2 %v5823_v31 }
 0x190   : > { %v1526_v55 = vor.u32 %v9646_v24, %v7643_v8  ;;  %v9649_v43 = vshll.u32 %v7706_v22, 16  ;;  %v2775_v41 = vshll.u32 %v7764_v11, 16  ;;  %v1853_v59 = vshrl.u32 %v7853_v46, 16  ;;  %v5202_v54 = vld [vmem:[#allocation3 + $0xe0] sm:$0xf] }
 0x191   : > { %vm676_vm12 = vcmp.ge.s32.totalorder %v654_v49, 0  ;;  %vm698_vm5 = vcmp.lt.s32.totalorder %v654_v49, 256  ;;  %v1388_v8 = vunpack.c.l.b16 %v7850_v51  ;;  %v1536_v22 = vsel %vm6762_vm0, %v1528_v29, %v1535_v13  ;;  %v2219_v31 = vld [vmem:[#allocation2 + $0x28] sm:$0xf] }
 0x192   : > { %v1527_v34 = vsel %vm6762_vm0, %v1519_v27, %v1526_v55  ;;  %v2768_v21 = vor.u32 %v9649_v43, %v7777_v62  ;;  %v1278_v55 = vsel %vm6661_vm10, %v1273_v9, %v6657_v48  ;;  %vm720_vm13 = vmand %vm676_vm12, %vm698_vm5  ;;  %v785_v47 = vsel %vm7872_vm8, %v606_v15, 0.0  ;;  %1616 = vst [vmem:[#allocation3 + $0x144] sm:$0xf] %v1536_v22 }
 0x193   : > { %1615 = vst [vmem:[#allocation3 + $0x120] sm:$0xf] %v1527_v34  ;;  %vm7895_vm14 = vcmp.ne.s32.totalorder %v939_v50, 0  ;;  %v786_v24 = vsel %vm720_vm13, %v607_v7, 0.0  ;;  %v2777_v9 = vor.u32 %v2775_v41, %v7845_v58  ;;  %vm7904_vm12 = vmpackc.low %vm7825_vm3, %vm7818_vm1  ;;  %v9652_v49 = vmov 0 }
 0x194   : > { %v2769_v11 = vsel %vm6762_vm0, %v2761_v61, %v2768_v21  ;;  %v9653_v49 = vsel %vm7904_vm12, 4294967295, %v9652_v49  ;;  %v5749_v13 = vld [vmem:[#allocation3 + $0x100] sm:$0xf0]  ;;  %v5907_v19 = vpack.c.bf16 %v786_v24, %v785_v47  ;;  %v2770_v15 = vrot.slane %v7777_v62, 4  ;;  %vm1124_vm13 = vmpackc.low %vm7895_vm14, %vm7895_vm14  ;;  %v7921_v62 = vpop.f32.mrf.mxu0  ;;  %v2694_v47 = vld [vmem:[#allocation2 + $0x2c] sm:$0xf] }
 0x195   : > { %9654 = vst [vmem:[#allocation66_spill] sm:$0xff] %v9653_v49  ;;  %v2102_v50 = vor.u32 %v7692_v38, %v7838_v32  ;;  %v2105_v7 = vshll.u32 %v7811_v16, 16  ;;  %v1963_v10 = vunpack.c.l.b16 %v7807_v20  ;;  %v1964_v1 = vunpack.c.h.b16 %v7807_v20 }
 0x196   : > { %2889 = vst [vmem:[#allocation3 + $0xa8] sm:$0xf] %v2769_v11  ;;  %v1389_v4 = vunpack.c.h.b16 %v7850_v51  ;;  %v5203_v34 = vor.u32 %v5749_v13, %v5202_v54  ;;  %v1539_v29 = vshrl.u32 %v7831_v0, 16  ;;  %v1395_v61 = vunpack.c.l.b16 %v1278_v55  ;;  %v1074_v54 = vld [vmem:[#allocation2 + $0x34] sm:$0xf] }
 0x197   : > { %v1396_v43 = vunpack.c.h.b16 %v1278_v55  ;;  %5970 = vst [vmem:[#allocation2 + $0x38] sm:$0xff] %v5907_v19   ;;  %v2778_v38 = vsel %vm6762_vm0, %v2770_v15, %v2777_v9  ;;  %v7926_v20 = vsel %vm7904_vm12, %v1665_v17, 0  ;;  %v2103_v51 = vrot.slane %v2102_v50, 4 }
 0x198   : > { %4312 = vmatmul.bf16.gmra.mxu3 %v5203_v34  ;;  %2890 = vst [vmem:[#allocation3 + $0xcc] sm:$0xf] %v2778_v38  ;;  %v2107_v21 = vrot.slane %v2105_v7, 5  ;;  %v9655_v41 = vshrl.u32 %v7811_v16, 16  ;;  %vm7931_vm1 = vcmp.ne.s32.totalorder %v1388_v8, %v6686_v3  ;;  %v7935_v22 = vrot.slane %v1853_v59, 7 }
 0x199   : > { %v1856_v11 = vshll.u32 %v7853_v46, 16  ;;  %vm7939_vm3 = vcmp.ne.s32.totalorder %v1389_v4, %v6693_v6  ;;  %v1140_v16 = vsel %vm1124_vm13, 65537, %v9552_v23  ;;  %v946_v8 = vand.u32 15, %v7860_v56  ;;  %v5757_v13 = vld [vmem:[#allocation3 + $0x140] sm:$0xf0] }
 0x19a   : > { %v2111_v55 = vrot.slane %v9655_v41, 4  ;;  %v2108_v59 = vsel %vm6661_vm10, %v2103_v51, %v2107_v21  ;;  %v9660_v46 = vunpack.c.l.b16 %v7787_v39  ;;  %vm7960_vm5 = vcmp.ne.s32.totalorder %v1395_v61, %v6686_v3  ;;  %v5230_v56 = vld [vmem:[#allocation3 + $0x120] sm:$0xf]  ;;  %v2220_v4 = vld [vmem:[#allocation2 + $0x2c] sm:$0xf]  ;;  %vm7997_vm6 = vmpackc.low %vm7939_vm3, %vm7931_vm1 }
 0x19b   : > { %vm7965_vm14 = vcmp.ne.s32.totalorder %v1396_v43, %v6693_v6  ;;  %2203 = vst [vmem:[#allocation3 + $0x128] sm:$0xf] %v2108_v59  ;;  %v9667_v19 = vunpack.c.h.b16 %v7787_v39  ;;  %vm7977_vm12 = vcmp.ne.s32.totalorder %v1963_v10, %v6686_v3  ;;  %vm7982_vm11 = vcmp.ne.s32.totalorder %v1964_v1, %v6693_v6  ;;  %v2464_v34 = vld [vmem:[#allocation2 + $0x28] sm:$0xf]  ;;  %v2465_v61 = vld [vmem:[#allocation2 + $0x2c] sm:$0xf] }
 0x19c   : > { %vm7955_vm8 = vcmp.ne.s32.totalorder %v9660_v46, %v6686_v3  ;;  %v5231_v43 = vor.u32 %v5757_v13, %v5230_v56  ;;  %v7986_v38 = vrot.slane %v1539_v29, 7  ;;  %v2119_v39 = vshrl.u32 %v7926_v20, 16  ;;  %v1073_v1 = vld [vmem:[#allocation2 + $0x30] sm:$0xf] }
 0x19d   : > { %vm7972_vm13 = vcmp.ne.s32.totalorder %v9667_v19, %v6693_v6  ;;  %v7991_v51 = vsel %vm7234_vm15, %v2694_v47, 0  ;;  %v1858_v41 = vor.u32 %v1856_v11, %v7935_v22  ;;  %v8004_v29 = vsel %vm7473_vm9, %v2219_v31, 0  ;;  %vm8010_vm15 = vmpackc.low %vm7965_vm14, %vm7960_vm5 }
 0x19e   : > { %9676 = vst [vmem:[#allocation67_spill] sm:$0xff] %v8004_v29  ;;  %v1285_v47 = vshll.u32 %v1140_v16, 16  ;;  %v1289_v17 = vshrl.u32 %v1140_v16, 16  ;;  %4219 = vmatmul.bf16.gmra.mxu1 %v5231_v43  ;;  %v2112_v59 = vor.u32 %v2111_v55, %v2107_v21  ;;  %vm8018_vm1 = vmpackc.low %vm7972_vm13, %vm7955_vm8  ;;  %v9679_v11 = vmov 0  ;;  %v1666_v21 = vld [vmem:[#allocation2 + $0x30] sm:$0xf] }
 0x19f   : > { %v9680_v11 = vsel %vm8018_vm1, 4294967295, %v9679_v11  ;;  %v8024_v31 = vsel %vm7519_vm2, %v2220_v4, 0  ;;  %vm9682_vm3 = vnez %v9591_v45  ;;  %v8032_v16 = vsel %vm7600_vm4, %v2465_v61, 0  ;;  %v579_v4 = vpop.f32.mrf.mxu0  ;;  %vm8072_vm14 = vmpackc.low %vm7982_vm11, %vm7977_vm12  ;;  %v5182_v45 = vld [vmem:[#allocation3 + $0xa8] sm:$0xf] }
 0x1a0   : > { %9681 = vst [vmem:[#allocation68_spill] sm:$0xff] %v9680_v11  ;;  %v8028_v46 = vsel %vm9682_vm3, %v2464_v34, 0  ;;  %vm8034_vm5 = vcmp.ne.s32.totalorder %v946_v8, 15  ;;  %v2781_v24 = vshrl.u32 %v7991_v51, 16  ;;  %v8041_v9 = vsel %vm7997_vm6, %v1073_v1, 0 }
 0x1a1   : > { %v1860_v27 = vrot.slane %v7935_v22, 4  ;;  %v2115_v56 = vshll.u32 %v7926_v20, 16  ;;  %v8045_v13 = vrot.slane %v2119_v39, 4  ;;  %v8050_v8 = vsel %vm8010_vm15, %v1074_v54, 0  ;;  %v2695_v22 = vld [vmem:[#allocation2 + $0x30] sm:$0xf]  ;;  %vm1719_vm8 = vmpackc.low %vm8034_vm5, %vm8034_vm5 }
 0x1a2   : > { %v8055_v15 = vsel %vm6762_vm0, %v6741_v35, %v1858_v41  ;;  %v8059_v34 = vsel %vm8018_vm1, %v1666_v21, 0  ;;  %v1287_v20 = vrot.slane %v1285_v47, 5  ;;  %v1291_v61 = vrot.slane %v1289_v17, 4  ;;  %v1667_v21 = vld [vmem:[#allocation2 + $0x34] sm:$0xf] }
 0x1a3   : > { %v2113_v43 = vrot.slane %v2112_v59, 4  ;;  %v1548_v54 = vshrl.u32 %v8041_v9, 16  ;;  %v9685_v47 = vmov 0  ;;  %v8076_v17 = vrot.slane %v2781_v24, 7  ;;  %v2696_v1 = vld [vmem:[#allocation2 + $0x34] sm:$0xf] }
 0x1a4   : > { %v9686_v47 = vsel %vm8072_vm14, 4294967295, %v9685_v47  ;;  %v8081_v59 = vsel %vm6762_vm0, %v1860_v27, %v6733_v40  ;;  %v8084_v19 = vrot.slane %v2115_v56, 5  ;;  %v1557_v50 = vshrl.u32 %v8050_v8, 16  ;;  %v1636_v44 = vld [vmem:[#allocation2 + $0x38] sm:$0xf] }
 0x1a5   : > { %9687 = vst [vmem:[#allocation69_spill] sm:$0xff] %v9686_v47  ;;  %v2129_v7 = vshrl.u32 %v8059_v34, 16  ;;  %v8090_v41 = vsel %vm7473_vm9, %v2695_v22, 0  ;;  %v1735_v40 = vsel %vm1719_vm8, 65537, %v9552_v23  ;;  %v1288_v27 = vsel %vm6661_vm10, %v6735_v42, %v1287_v20 }
 0x1a6   : > { %v1292_v56 = vor.u32 %v1291_v61, %v1287_v20  ;;  %v2118_v30 = vsel %vm6661_vm10, %v2113_v43, %v8084_v19  ;;  %v8105_v22 = vrot.slane %v1548_v54, 7  ;;  %v8110_v55 = vsel %vm8072_vm14, %v1667_v21, 0  ;;  %v5742_v43 = vld [vmem:[#allocation3 + $0xc8] sm:$0xf0]  ;;  %v5268_v54 = vld [vmem:[#allocation3 + $0x18c] sm:$0xf0] }
 0x1a7   : > { %v8114_v23 = vsel %vm7519_vm2, %v2696_v1, 0  ;;  %v2790_v61 = vshrl.u32 %v8090_v41, 16  ;;  %v1871_v32 = vshrl.u32 %v1735_v40, 16  ;;  %v8119_v11 = vrot.slane %v1557_v50, 7  ;;  %2204 = vst [vmem:[#allocation3 + $0x14c] sm:$0xf] %v2118_v30  ;;  %v8134_v12 = vpop.f32.mrf.mxu0 }
 0x1a8   : > { %v8121_v39 = vrot.slane %v2129_v7, 4  ;;  %v1402_v47 = vunpack.c.l.b16 %v1288_v27  ;;  %v578_v1 = vadd.f32 %v8126_v57, %v7921_v62  ;;  %v1635_v21 = vld [vmem:[#allocation2 + $0x34] sm:$0xf]  ;;  %v2793_v24 = vshll.u32 %v8090_v41, 16  ;;  %v5762_v7 = vld [vmem:[#allocation3 + $0x16c] sm:$0xf] }
 0x1a9   : > { %v1293_v25 = vrot.slane %v1292_v56, 4  ;;  %v1403_v50 = vunpack.c.h.b16 %v1288_v27  ;;  %v2799_v49 = vshrl.u32 %v8114_v23, 16  ;;  %v5183_v30 = vor.u32 %v5742_v43, %v5182_v45  ;;  %v5822_v62 = vld [vmem:[#allocation9 + $0x108] sm:$0xff]  ;;  %1651 = vst [vmem:[#allocation3 + $0x1b4] sm:$0xf] %v1635_v21 }
 0x1aa   : > { %v631_v53 = vadd.s32 128, %v6628_v18  ;;  %v5271_v14 = vor.u32 %v5762_v7, %v5268_v54  ;;  %v8136_v29 = vrot.slane %v2790_v61, 7  ;;  %v8138_v20 = vrot.slane %v1871_v32, 7  ;;  %1652 = vst [vmem:[#allocation3 + $0x1d8] sm:$0xf] %v1636_v44  ;;  %4393 = vmatpush.bf16.msrb.mxu2 %v5822_v62 }
 0x1ab   : > { %v1874_v41 = vshll.u32 %v1735_v40, 16  ;;  %v580_v27 = vadd.f32 %v8126_v57, %v579_v4  ;;  %vm8142_vm11 = vcmp.ne.s32.totalorder %v1402_v47, %v6686_v3  ;;  %4503 = vmatmul.bf16.gmra.mxu0 %v5183_v30  ;;  %v608_v45 = vmax.f32 %v578_v1, 0.0 }
 0x1ac   : > { %v655_v43 = vadd.s32 %v6636_v28, %v631_v53  ;;  %4273 = vmatmul.bf16.gmra.mxu2 %v5271_v14  ;;  %v632_v54 = vadd.s32 136, %v6628_v18  ;;  %v8151_v32 = vsel %vm6661_vm10, %v1293_v25, %v6657_v48  ;;  %vm8154_vm9 = vcmp.ne.s32.totalorder %v1403_v50, %v6693_v6  ;;  %v5238_v25 = vld [vmem:[#allocation3 + $0x128] sm:$0xf] }
 0x1ad   : > { %v1537_v47 = vrot.slane %v7841_v26, 4  ;;  %v9692_v40 = vshll.u32 %v7831_v0, 16  ;;  %v609_v44 = vmax.f32 %v580_v27, 0.0  ;;  %v8164_v48 = vor.u32 %v1874_v41, %v8138_v20  ;;  %v1637_v27 = vld [vmem:[#allocation2 + $0x3c] sm:$0xf] }
 0x1ae   : > { %vm677_vm2 = vcmp.ge.s32.totalorder %v655_v43, 0  ;;  %vm699_vm12 = vcmp.lt.s32.totalorder %v655_v43, 256  ;;  %v656_v14 = vadd.s32 %v6636_v28, %v632_v54  ;;  %v5758_v61 = vld [vmem:[#allocation3 + $0x148] sm:$0xf0]  ;;  %v1546_v1 = vrot.slane %v7986_v38, 4 }
 0x1af   : > { %v1544_v53 = vor.u32 %v9692_v40, %v7986_v38  ;;  %vm721_vm13 = vmand %vm677_vm2, %vm699_vm12  ;;  %v9693_v60 = vshll.u32 %v8041_v9, 16  ;;  %v5239_v21 = vor.u32 %v5758_v61, %v5238_v25  ;;  %v2779_v30 = vrot.slane %v7845_v58, 4  ;;  %1653 = vst [vmem:[#allocation3 + $0x1fc] sm:$0xf] %v1637_v27 }
 0x1b0   : > { %v787_v50 = vsel %vm721_vm13, %v608_v45, 0.0  ;;  %vm678_vm5 = vcmp.ge.s32.totalorder %v656_v14, 0  ;;  %vm700_vm8 = vcmp.lt.s32.totalorder %v656_v14, 256  ;;  %v9694_v62 = vshll.u32 %v7991_v51, 16  ;;  %vm8183_vm2 = vmpackc.low %vm8154_vm9, %vm8142_vm11  ;;  %v1075_v45 = vld [vmem:[#allocation2 + $0x38] sm:$0xf] }
 0x1b1   : > { %v1545_v26 = vsel %vm6762_vm0, %v1537_v47, %v1544_v53  ;;  %v1553_v0 = vor.u32 %v9693_v60, %v8105_v22  ;;  %vm722_vm14 = vmand %vm678_vm5, %vm700_vm8  ;;  %v2788_v38 = vrot.slane %v8076_v17, 4  ;;  %4317 = vmatmul.bf16.gmra.mxu3 %v5239_v21  ;;  %v2795_v58 = vor.u32 %v2793_v24, %v8136_v29  ;;  %v5304_v40 = vld [vmem:[#allocation3 + $0x1d4] sm:$0xf0] }
 0x1b2   : > { %1617 = vst [vmem:[#allocation3 + $0x168] sm:$0xf] %v1545_v26  ;;  %v2786_v41 = vor.u32 %v9694_v62, %v8076_v17  ;;  %v788_v43 = vsel %vm722_vm14, %v609_v44, 0.0  ;;  %v2122_v51 = vor.u32 %v8045_v13, %v8084_v19  ;;  %v2125_v17 = vshll.u32 %v8059_v34, 16  ;;  %v584_v19 = vpop.f32.mrf.mxu0  ;;  %v5814_v21 = vld [vmem:[#allocation9 + $0xc8] sm:$0xff] }
 0x1b3   : > { %v1554_v7 = vsel %vm6762_vm0, %v1546_v1, %v1553_v0  ;;  %v1409_v54 = vunpack.c.l.b16 %v8151_v32  ;;  %v5912_v56 = vpack.c.bf16 %v788_v43, %v787_v50  ;;  %v2135_v47 = vshll.u32 %v8110_v55, 16  ;;  %v5771_v0 = vld [vmem:[#allocation3 + $0x1b4] sm:$0xf]  ;;  %4344 = vmatpush.bf16.msrb.mxu1 %v5814_v21 }
 0x1b4   : > { %1618 = vst [vmem:[#allocation3 + $0x18c] sm:$0xf] %v1554_v7  ;;  %v2787_v4 = vsel %vm6762_vm0, %v2779_v30, %v2786_v41  ;;  %v2796_v53 = vsel %vm6762_vm0, %v2788_v38, %v2795_v58  ;;  %v2123_v24 = vrot.slane %v2122_v51, 4  ;;  %v2127_v44 = vrot.slane %v2125_v17, 5  ;;  %v2697_v58 = vld [vmem:[#allocation2 + $0x38] sm:$0xf] }
 0x1b5   : > { %2891 = vst [vmem:[#allocation3 + $0xf0] sm:$0xf] %v2787_v4  ;;  %v633_v13 = vadd.s32 144, %v6628_v18  ;;  %v1410_v34 = vunpack.c.h.b16 %v8151_v32  ;;  %v8201_v14 = vsel %vm8183_vm2, %v1075_v45, 0  ;;  %v8203_v25 = vrot.slane %v2135_v47, 5 }
 0x1b6   : > { %5971 = vst [vmem:[#allocation2 + $0x40] sm:$0xff] %v5912_v56   ;;  %v583_v61 = vadd.f32 %v8126_v57, %v8134_v12  ;;  %v2128_v26 = vsel %vm6661_vm10, %v2123_v24, %v2127_v44  ;;  %v2132_v1 = vor.u32 %v8121_v39, %v2127_v44  ;;  %v634_v32 = vadd.s32 152, %v6628_v18  ;;  %v1669_v38 = vld [vmem:[#allocation2 + $0x3c] sm:$0xf] }
 0x1b7   : > { %2892 = vst [vmem:[#allocation3 + $0x114] sm:$0xf] %v2796_v53  ;;  %v657_v60 = vadd.s32 %v6636_v28, %v633_v13  ;;  %v5307_v50 = vor.u32 %v5771_v0, %v5304_v40  ;;  %v585_v7 = vadd.f32 %v8126_v57, %v584_v19  ;;  %v1555_v30 = vrot.slane %v8105_v22, 4 }
 0x1b8   : > { %2205 = vst [vmem:[#allocation3 + $0x170] sm:$0xf] %v2128_v26  ;;  %v9697_v12 = vshll.u32 %v8050_v8, 16  ;;  %v2133_v41 = vrot.slane %v2132_v1, 4  ;;  %v658_v39 = vadd.s32 %v6636_v28, %v634_v32  ;;  %vm8219_vm9 = vcmp.ne.s32.totalorder %v1409_v54, %v6686_v3 }
 0x1b9   : > { %vm679_vm14 = vcmp.ge.s32.totalorder %v657_v60, 0  ;;  %vm701_vm11 = vcmp.lt.s32.totalorder %v657_v60, 256  ;;  %vm8224_vm12 = vcmp.ne.s32.totalorder %v1410_v34, %v6693_v6  ;;  %v1566_v22 = vshrl.u32 %v8201_v14, 16  ;;  %v5266_v8 = vld [vmem:[#allocation3 + $0x168] sm:$0xf] }
 0x1ba   : > { %v1562_v62 = vor.u32 %v9697_v12, %v8119_v11  ;;  %v2138_v17 = vsel %vm6661_vm10, %v2133_v41, %v8203_v25  ;;  %v610_v54 = vmax.f32 %v583_v61, 0.0  ;;  %v9702_v56 = vunpack.c.l.b16 %v8055_v15  ;;  %vm8250_vm1 = vmand %vm679_vm14, %vm701_vm11 }
 0x1bb   : > { %v5766_v45 = vld [vmem:[#allocation3 + $0x188] sm:$0xf0]  ;;  %v9705_v47 = vunpack.c.h.b16 %v8055_v15  ;;  %2206 = vst [vmem:[#allocation3 + $0x194] sm:$0xf] %v2138_v17  ;;  %v611_v24 = vmax.f32 %v585_v7, 0.0  ;;  %vm702_vm13 = vcmp.lt.s32.totalorder %v658_v39, 256  ;;  %v9710_v13 = vunpack.c.l.b16 %v8081_v59  ;;  %vm8273_vm14 = vmpackc.low %vm8224_vm12, %vm8219_vm9 }
 0x1bc   : > { %v1563_v43 = vsel %vm6762_vm0, %v1555_v30, %v1562_v62  ;;  %v5267_v51 = vor.u32 %v5766_v45, %v5266_v8  ;;  %vm8237_vm5 = vcmp.ne.s32.totalorder %v9702_v56, %v6686_v3  ;;  %v9713_v19 = vunpack.c.h.b16 %v8081_v59  ;;  %4278 = vmatmul.bf16.gmra.mxu2 %v5307_v50  ;;  %v1076_v59 = vld [vmem:[#allocation2 + $0x3c] sm:$0xf]  ;;  %v8333_v45 = vld [vmem:[#allocation9 + $0x1f8] sm:$0xff] }
 0x1bd   : > { %1619 = vst [vmem:[#allocation3 + $0x1b0] sm:$0xf] %v1563_v43  ;;  %vm8244_vm8 = vcmp.ne.s32.totalorder %v9705_v47, %v6693_v6  ;;  %vm8258_vm4 = vcmp.ne.s32.totalorder %v9710_v13, %v6686_v3  ;;  %v1877_v26 = vsel %vm6762_vm0, %v6741_v35, %v8164_v48  ;;  %v8281_v1 = vrot.slane %v1566_v22, 7  ;;  %v2698_v47 = vld [vmem:[#allocation2 + $0x3c] sm:$0xf]  ;;  %4534 = vmatpush.bf16.msra.mxu0 %v8333_v45 }
 0x1be   : > { %vm8265_vm3 = vcmp.ne.s32.totalorder %v9713_v19, %v6693_v6  ;;  %4224 = vmatmul.bf16.gmra.mxu1 %v5267_v51  ;;  %v8285_v60 = vsel %vm7748_vm7, %v2697_v58, 0  ;;  %v1416_v0 = vunpack.c.l.b16 %v6735_v42  ;;  %v1417_v32 = vunpack.c.h.b16 %v6735_v42  ;;  %vm8304_vm12 = vmpackc.low %vm8244_vm8, %vm8237_vm5  ;;  %v5218_v19 = vld [vmem:[#allocation3 + $0xf0] sm:$0xf]  ;;  %v5751_v34 = vld [vmem:[#allocation3 + $0x110] sm:$0xf0] }
 0x1bf   : > { %vm9718_vm11 = vcmp.ge.s32.totalorder %v658_v39, 0  ;;  %v2139_v21 = vshrl.u32 %v8110_v55, 16  ;;  %v8293_v35 = vrot.slane %v2799_v49, 7  ;;  %v1878_v48 = vrot.slane %v8138_v20, 4  ;;  %v2699_v27 = vld [vmem:[#allocation2 + $0x40] sm:$0xf] }
 0x1c0   : > { %vm724_vm9 = vmand %vm9718_vm11, %vm702_vm13  ;;  %v789_v50 = vsel %vm8250_vm1, %v610_v54, 0.0  ;;  %v1569_v7 = vshll.u32 %v8201_v14, 16  ;;  %v1984_v30 = vunpack.c.l.b16 %v1877_v26  ;;  %v1985_v12 = vunpack.c.h.b16 %v1877_v26  ;;  %v1668_v14 = vld [vmem:[#allocation2 + $0x38] sm:$0xf]  ;;  %v2944_v61 = vld [vmem:[#allocation2 + $0x40] sm:$0xf] }
 0x1c1   : > { %v790_v62 = vsel %vm724_vm9, %v611_v24, 0.0  ;;  %v9719_v55 = vmov 0  ;;  %v2802_v49 = vshll.u32 %v8114_v23, 16  ;;  %v8311_v20 = vsel %vm8273_vm14, %v1076_v59, 0  ;;  %vm8318_vm1 = vmpackc.low %vm8265_vm3, %vm8258_vm4  ;;  %v8370_v59 = vpop.f32.mrf.mxu0 }
 0x1c2   : > { %v9720_v55 = vsel %vm8304_vm12, 4294967295, %v9719_v55  ;;  %v2808_v41 = vshrl.u32 %v8285_v60, 16  ;;  %v9721_v39 = vmov 0  ;;  %vm8323_vm13 = vcmp.ne.s32.totalorder %v1416_v0, %v6686_v3 }
 0x1c3   : > { %v9722_v39 = vsel %vm8318_vm1, 4294967295, %v9721_v39  ;;  %vm8328_vm5 = vcmp.ne.s32.totalorder %v1417_v32, %v6693_v6  ;;  %v5917_v22 = vpack.c.bf16 %v790_v62, %v789_v50  ;;  %v1571_v8 = vor.u32 %v1569_v7, %v8281_v1  ;;  %v5274_v62 = vld [vmem:[#allocation3 + $0x170] sm:$0xf] }
 0x1c4   : > { %v8335_v43 = vrot.slane %v2139_v21, 4  ;;  %v1991_v58 = vunpack.c.l.b16 %v1878_v48  ;;  %v2797_v51 = vrot.slane %v8136_v29, 4  ;;  %v2804_v17 = vor.u32 %v2802_v49, %v8293_v35  ;;  %vm8364_vm8 = vmpackc.low %vm8328_vm5, %vm8323_vm13  ;;  %v5767_v49 = vld [vmem:[#allocation3 + $0x190] sm:$0xf0] }
 0x1c5   : > { %vm8340_vm4 = vcmp.ne.s32.totalorder %v1984_v30, %v6686_v3  ;;  %vm8345_vm3 = vcmp.ne.s32.totalorder %v1985_v12, %v6693_v6  ;;  %v2011_v4 = vsel %vm8304_vm12, %v1668_v14, 0  ;;  %5972 = vst [vmem:[#allocation2 + $0x48] sm:$0xff] %v5917_v22   ;;  %v1564_v40 = vrot.slane %v8119_v11, 4  ;;  %v1077_v11 = vld [vmem:[#allocation2 + $0x40] sm:$0xf] }
 0x1c6   : > { %v1575_v29 = vshrl.u32 %v8311_v20, 16  ;;  %v1992_v53 = vunpack.c.h.b16 %v1878_v48  ;;  %v8356_v24 = vsel %vm8318_vm1, %v1669_v38, 0  ;;  %v8358_v13 = vrot.slane %v2808_v41, 7  ;;  %vm8376_vm11 = vmpackc.low %vm8345_vm3, %vm8340_vm4  ;;  %v1670_v48 = vld [vmem:[#allocation2 + $0x40] sm:$0xf] }
 0x1c7   : > { %v1572_v26 = vsel %vm6762_vm0, %v1564_v40, %v1571_v8  ;;  %v9733_v0 = vmov 0  ;;  %v2149_v32 = vshrl.u32 %v2011_v4, 16  ;;  %vm9735_vm9 = vnez %v9634_v36  ;;  %v5836_v30 = vld [vmem:[#allocation9 + $0x178] sm:$0xff] }
 0x1c8   : > { %v9734_v0 = vsel %vm8376_vm11, 4294967295, %v9733_v0  ;;  %v8382_v21 = vsel %vm9735_vm9, %v2698_v47, 0  ;;  %v5219_v50 = vor.u32 %v5751_v34, %v5218_v19  ;;  %v2805_v7 = vsel %vm6762_vm0, %v2797_v51, %v2804_v17  ;;  %1620 = vst [vmem:[#allocation3 + $0x1d4] sm:$0xf] %v1572_v26  ;;  %4436 = vmatpush.bf16.msrb.mxu3 %v5836_v30  ;;  %v2700_v8 = vld [vmem:[#allocation2 + $0x44] sm:$0xf] }
 0x1c9   : > { %vm1995_vm13 = vcmp.ne.s32.totalorder %v1991_v58, %v6686_v3  ;;  %v2811_v12 = vshll.u32 %v8285_v60, 16  ;;  %v2145_v14 = vshll.u32 %v2011_v4, 16  ;;  %vm1996_vm5 = vcmp.ne.s32.totalorder %v1992_v53, %v6693_v6  ;;  %2893 = vst [vmem:[#allocation3 + $0x138] sm:$0xf] %v2805_v7  ;;  %v8406_v40 = vld [vmem:[#allocation2 + $0x44] sm:$0x1] }
 0x1ca   : > { %v2159_v41 = vshrl.u32 %v8356_v24, 16  ;;  %v8392_v38 = vsel %vm8364_vm8, %v1077_v11, 0  ;;  %4508 = vmatmul.bf16.gmra.mxu0 %v5219_v50  ;;  %v5275_v23 = vor.u32 %v5767_v49, %v5274_v62  ;;  %v8397_v60 = vsel %vm8376_vm11, %v1670_v48, 0  ;;  %vm8412_vm4 = vmpackc.low %vm1996_vm5, %vm1995_vm13 }
 0x1cb   : > { %v2813_v51 = vor.u32 %v2811_v12, %v8358_v13  ;;  %v2142_v17 = vor.u32 %v8335_v43, %v8203_v25  ;;  %v8402_v54 = vrot.slane %v1575_v29, 7  ;;  %v1578_v56 = vshll.u32 %v8311_v20, 16 }
 0x1cc   : > { %v2151_v4 = vrot.slane %v2149_v32, 4  ;;  %v2817_v47 = vshrl.u32 %v8382_v21, 16  ;;  %4322 = vmatmul.bf16.gmra.mxu3 %v5275_v23  ;;  %v1584_v25 = vshrl.u32 %v8392_v38, 16  ;;  %v8419_v43 = vsel %vm7997_vm6, %v2699_v27, 0  ;;  %v2701_v20 = vld [vmem:[#allocation2 + $0x48] sm:$0xf]  ;;  %v589_v23 = vpop.f32.mrf.mxu0 }
 0x1cd   : > { %v2806_v29 = vrot.slane %v8293_v35, 4  ;;  %v2147_v19 = vrot.slane %v2145_v14, 5  ;;  %v8422_v34 = vrot.slane %v2159_v41, 4  ;;  %v2820_v3 = vshll.u32 %v8382_v21, 16  ;;  %v2702_v53 = vld [vmem:[#allocation2 + $0x4c] sm:$0xf] }
 0x1ce   : > { %v2169_v6 = vshrl.u32 %v8397_v60, 16  ;;  %v8428_v58 = vsel %vm8010_vm15, %v2700_v8, 0  ;;  %v8432_v26 = vsel %vm8183_vm2, %v2701_v20, 0  ;;  %v8436_v32 = vsel %vm8273_vm14, %v2702_v53, 0  ;;  %v8505_v21 = vld [vmem:[%s9317_s5] ss:$0 sm:$0xff] }
 0x1cf   : > { %v2814_v35 = vsel %vm6762_vm0, %v2806_v29, %v2813_v51  ;;  %v2143_v48 = vrot.slane %v2142_v17, 4  ;;  %v8440_v50 = vrot.slane %v2817_v47, 7  ;;  %v1587_v7 = vshll.u32 %v8392_v38, 16  ;;  %v5775_v14 = vld [vmem:[#allocation3 + $0x1d0] sm:$0xf0]  ;;  %v5835_v17 = vld [vmem:[#allocation9 + $0x170] sm:$0xff] }
 0x1d0   : > { %v2014_v30 = vsel %vm8412_vm4, %v8406_v40, 0  ;;  %v2826_v12 = vshrl.u32 %v8419_v43, 16  ;;  %v1586_v62 = vrot.slane %v1584_v25, 7  ;;  %v2835_v49 = vshrl.u32 %v8428_v58, 16  ;;  %2894 = vst [vmem:[#allocation3 + $0x15c] sm:$0xf] %v2814_v35  ;;  %4437 = vmatpush.bf16.msrb.mxu3 %v5835_v17 }
 0x1d1   : > { %v2148_v41 = vsel %vm6661_vm10, %v2143_v48, %v2147_v19  ;;  %v2152_v27 = vor.u32 %v2151_v4, %v2147_v19  ;;  %v2844_v8 = vshrl.u32 %v8432_v26, 16  ;;  %v2853_v51 = vshrl.u32 %v8436_v32, 16  ;;  %v5302_v29 = vld [vmem:[#allocation3 + $0x1b0] sm:$0xf]  ;;  %v1638_v35 = vld [vmem:[#allocation2 + $0x40] sm:$0xf] }
 0x1d2   : > { %v2155_v38 = vshll.u32 %v8356_v24, 16  ;;  %v8453_v47 = vrot.slane %v2169_v6, 4  ;;  %v2829_v25 = vshll.u32 %v8419_v43, 16  ;;  %v8459_v53 = vadd.f32 %v8126_v57, %v8370_v59  ;;  %2207 = vst [vmem:[#allocation3 + $0x1b8] sm:$0xf] %v2148_v41  ;;  %v5834_v48 = vld [vmem:[#allocation9 + $0x168] sm:$0xff] }
 0x1d3   : > { %v8461_v4 = vrot.slane %v2826_v12, 7  ;;  %v5303_v19 = vor.u32 %v5775_v14, %v5302_v29  ;;  %v8464_v24 = vadd.f32 %v8126_v57, %v589_v23  ;;  %v1580_v6 = vor.u32 %v1578_v56, %v8402_v54  ;;  %1654 = vst [vmem:[#allocation3 + $0x220] sm:$0xf] %v1638_v35  ;;  %v5821_v59 = vld [vmem:[#allocation9 + $0x100] sm:$0xff]  ;;  %v5254_v23 = vld [vmem:[#allocation3 + $0x138] sm:$0xf] }
 0x1d4   : > { %v8467_v44 = vrot.slane %v2835_v49, 7  ;;  %v2847_v22 = vshll.u32 %v8432_v26, 16  ;;  %v2153_v42 = vrot.slane %v2152_v27, 4  ;;  %v1589_v20 = vor.u32 %v1587_v7, %v1586_v62  ;;  %v5813_v57 = vld [vmem:[#allocation9 + $0xc0] sm:$0xff]  ;;  %4394 = vmatpush.bf16.msrb.mxu2 %v5821_v59  ;;  %v5851_v29 = vld [vmem:[#allocation9 + $0x1f0] sm:$0xff]  ;;  %4438 = vmatpush.bf16.msrb.mxu3 %v5834_v48  ;;  %v8491_v48 = vpop.f32.mrf.mxu2 }
 0x1d5   : > { %v8470_v12 = vrot.slane %v2844_v8, 7  ;;  %v8472_v14 = vrot.slane %v2853_v51, 7  ;;  %v2856_v41 = vshll.u32 %v8436_v32, 16  ;;  %4229 = vmatmul.bf16.gmra.mxu1 %v5303_v19  ;;  %v2157_v17 = vrot.slane %v2155_v38, 5  ;;  %v5833_v8 = vld [vmem:[#allocation9 + $0x160] sm:$0xff]  ;;  %v8483_v19 = vld [vmem:[#allocation9 + $0x238] sm:$0xff]  ;;  %4535 = vmatpush.bf16.msra.mxu0 %v5851_v29 }
 0x1d6   : > { %v612_v56 = vmax.f32 %v8459_v53, 0.0  ;;  %v635_v49 = vadd.s32 160, %v6628_v18  ;;  %v636_v27 = vadd.s32 168, %v6628_v18  ;;  %v613_v62 = vmax.f32 %v8464_v24, 0.0  ;;  %4345 = vmatpush.bf16.msrb.mxu1 %v5813_v57  ;;  %v5780_v57 = vld [vmem:[#allocation3 + $0x1fc] sm:$0xf] }
 0x1d7   : > { %v2158_v7 = vsel %vm6661_vm10, %v2153_v42, %v2157_v17  ;;  %v1573_v51 = vrot.slane %v8281_v1, 4  ;;  %v1582_v38 = vrot.slane %v8402_v54, 4  ;;  %v5760_v53 = vld [vmem:[#allocation3 + $0x158] sm:$0xf0]  ;;  %v2815_v59 = vrot.slane %v8358_v13, 4  ;;  %v4200_v54 = vpop.f32.mrf.mxu1 }
 0x1d8   : > { %2208 = vst [vmem:[#allocation3 + $0x1dc] sm:$0xf] %v2158_v7  ;;  %v659_v35 = vadd.s32 %v6636_v28, %v635_v49  ;;  %v660_v18 = vadd.s32 %v6636_v28, %v636_v27  ;;  %v2822_v42 = vor.u32 %v2820_v3, %v8440_v50  ;;  %v8493_v1 = vld [vmem:[#allocation9 + $0x1e8] sm:$0xff]  ;;  %v5255_v24 = vor.u32 %v5760_v53, %v5254_v23  ;;  %v5832_v49 = vld [vmem:[#allocation9 + $0x158] sm:$0xff] }
 0x1d9   : > { %v1581_v7 = vsel %vm6762_vm0, %v1573_v51, %v1580_v6  ;;  %v1590_v28 = vsel %vm6762_vm0, %v1582_v38, %v1589_v20  ;;  %v2824_v13 = vrot.slane %v8440_v50, 4  ;;  %5989 = vmatpush.bf16.msra.mxu2 %v8483_v19  ;;  %4439 = vmatpush.bf16.msrb.mxu3 %v5833_v8  ;;  %v2162_v20 = vor.u32 %v8422_v34, %v2157_v17  ;;  %v2427_v6 = vld [vmem:[#allocation2 + $0x14] sm:$0xf]  ;;  %v8524_v38 = vld [vmem:[#allocation9 + $0x1e0] sm:$0xff] }
 0x1da   : > { %5981 = vmatpush.bf16.msra.mxu1 %v8333_v45  ;;  %vm681_vm3 = vcmp.ge.s32.totalorder %v659_v35, 0  ;;  %vm703_vm13 = vcmp.lt.s32.totalorder %v659_v35, 256  ;;  %vm682_vm5 = vcmp.ge.s32.totalorder %v660_v18, 0  ;;  %vm704_vm11 = vcmp.lt.s32.totalorder %v660_v18, 256  ;;  %4513 = vmatmul.bf16.gmra.mxu0 %v5255_v24  ;;  %v5340_v3 = vld [vmem:[#allocation3 + $0x21c] sm:$0xf0] }
 0x1db   : > { %vm725_vm1 = vmand %vm681_vm3, %vm703_vm13  ;;  %1621 = vst [vmem:[#allocation3 + $0x1f8] sm:$0xf] %v1581_v7  ;;  %v2823_v50 = vsel %vm6762_vm0, %v2815_v59, %v2822_v42  ;;  %v2831_v45 = vor.u32 %v2829_v25, %v8461_v4  ;;  %v5343_v27 = vor.u32 %v5780_v57, %v5340_v3  ;;  %v2165_v51 = vshll.u32 %v8397_v60, 16  ;;  %4536 = vmatpush.bf16.msra.mxu0 %v8493_v1  ;;  %v5310_v60 = vld [vmem:[#allocation3 + $0x1b8] sm:$0xf]  ;;  %v9741_v24 = vld [vmem:[#allocation32_spill] sm:$0xff] }
 0x1dc   : > { %v791_v23 = vsel %vm725_vm1, %v612_v56, 0.0  ;;  %vm726_vm12 = vmand %vm682_vm5, %vm704_vm11  ;;  %1622 = vst [vmem:[#allocation3 + $0x21c] sm:$0xf] %v1590_v28  ;;  %v2175_v8 = vshll.u32 %v2014_v30, 16  ;;  %v2849_v43 = vor.u32 %v2847_v22, %v8470_v12  ;;  %v2163_v17 = vrot.slane %v2162_v20, 4  ;;  %v5831_v56 = vld [vmem:[#allocation9 + $0x150] sm:$0xff] }
 0x1dd   : > { %v792_v25 = vsel %vm726_vm12, %v613_v62, 0.0  ;;  %v2832_v34 = vsel %vm6762_vm0, %v2824_v13, %v2831_v45  ;;  %2895 = vst [vmem:[#allocation3 + $0x180] sm:$0xf] %v2823_v50  ;;  %4283 = vmatmul.bf16.gmra.mxu2 %v5343_v27  ;;  %v2167_v30 = vrot.slane %v2165_v51, 5  ;;  %v4201_v35 = vadd.f32 %v8505_v21, %v4200_v54  ;;  %4440 = vmatpush.bf16.msrb.mxu3 %v5832_v49  ;;  %v9738_v22 = vld [vmem:[#allocation27_spill] sm:$0xff]  ;;  %v9739_v62 = vld [vmem:[#allocation25_spill] sm:$0xff] }
 0x1de   : > { %5982 = vmatpush.bf16.msra.mxu1 %v5851_v29  ;;  %v5922_v40 = vpack.c.bf16 %v792_v25, %v791_v23  ;;  %2896 = vst [vmem:[#allocation3 + $0x1a4] sm:$0xf] %v2832_v34  ;;  %v2177_v53 = vrot.slane %v2175_v8, 5  ;;  %v9740_v18 = vshll.u32 %v9739_v62, 16  ;;  %v2258_v42 = vrot.slane %v9738_v22, 4  ;;  %v9742_v57 = vld [vmem:[#allocation30_spill] sm:$0xff] }
 0x1df   : > { %v5776_v26 = vld [vmem:[#allocation3 + $0x1d8] sm:$0xf0]  ;;  %v9743_v7 = vshll.u32 %v9742_v57, 16  ;;  %v2833_v28 = vrot.slane %v8461_v4, 4  ;;  %2443 = vst [vmem:[#allocation3 + $0x58] sm:$0xf] %v2427_v6  ;;  %v2168_v54 = vsel %vm6661_vm10, %v2163_v17, %v2167_v30  ;;  %v2172_v49 = vor.u32 %v8453_v47, %v2167_v30  ;;  %4537 = vmatpush.bf16.msra.mxu0 %v8524_v38  ;;  %v8555_v30 = vpop.f32.mrf.mxu2  ;;  %v4298_v57 = vpop.f32.mrf.mxu3 }
 0x1e0   : > { %v2256_v59 = vor.u32 %v9740_v18, %v9738_v22  ;;  %v5311_v13 = vor.u32 %v5776_v26, %v5310_v60  ;;  %5973 = vst [vmem:[#allocation2 + $0x50] sm:$0xff] %v5922_v40   ;;  %v9744_v3 = vshll.u32 %v8428_v58, 16  ;;  %v9745_v45 = vld [vmem:[#allocation26_spill] sm:$0xff]  ;;  %v2842_v6 = vrot.slane %v8467_v44, 4  ;;  %v9747_v27 = vld [vmem:[#allocation28_spill] sm:$0xff]  ;;  %v9748_v51 = vld [vmem:[#allocation29_spill] sm:$0xff] }
 0x1e1   : > { %v2265_v29 = vor.u32 %v9743_v7, %v9741_v24  ;;  %2209 = vst [vmem:[#allocation3 + $0x200] sm:$0xf] %v2168_v54  ;;  %v9746_v20 = vrot.slane %v9745_v45, 11  ;;  %v2498_v47 = vor.u32 %v9748_v51, %v9747_v27  ;;  %v2938_v8 = vld [vmem:[#allocation2 + $0x28] sm:$0xf]  ;;  %v2173_v25 = vrot.slane %v2172_v49, 4  ;;  %4441 = vmatpush.bf16.msrb.mxu3 %v5831_v56 }
 0x1e2   : > { %v2840_v50 = vor.u32 %v9744_v3, %v8467_v44  ;;  %4327 = vmatmul.bf16.gmra.mxu3 %v5311_v13  ;;  %v5338_v58 = vld [vmem:[#allocation3 + $0x1f8] sm:$0xf]  ;;  %v9750_v60 = vld [vmem:[#allocation35_spill] sm:$0xff]  ;;  %9751 = vst [vmem:[#allocation27_spill] sm:$0xff] %v8555_v30  ;;  %v8557_v26 = vld [vmem:[#allocation9 + $0x1d8] sm:$0xff]  ;;  %v8559_v44 = vpop.f32.mrf.mxu1  ;;  %v4250_v22 = vadd.f32 %v8491_v48, %v4201_v35  ;;  %5983 = vmatpush.bf16.msra.mxu1 %v8493_v1  ;;  %vm9822_vm13 = vnez %v9734_v0 }
 0x1e3   : > { %v2257_v23 = vsel %vm6762_vm0, %v9746_v20, %v2256_v59  ;;  %v2266_v4 = vsel %vm6762_vm0, %v2258_v42, %v2265_v29  ;;  %v9749_v17 = vld [vmem:[#allocation34_spill] sm:$0xff]  ;;  %9752 = vst [vmem:[#allocation25_spill] sm:$0xff] %v8559_v44  ;;  %v2850_v59 = vsel %vm6762_vm0, %v2842_v6, %v2849_v43  ;;  %v2499_v42 = vrot.slane %v2498_v47, 4  ;;  %v9753_v7 = vld [vmem:[#allocation33_spill] sm:$0xff]  ;;  %v9754_v29 = vld [vmem:[#allocation31_spill] sm:$0xff]  ;;  %4538 = vmatpush.bf16.msra.mxu0 %v8557_v26 }
 0x1e4   : > { %2409 = vst [vmem:[#allocation3 + $0xc] sm:$0xf] %v2257_v23  ;;  %v2841_v34 = vsel %vm6762_vm0, %v2833_v28, %v2840_v50  ;;  %v2508_v40 = vor.u32 %v9750_v60, %v9749_v17  ;;  %v5784_v62 = vld [vmem:[#allocation3 + $0x218] sm:$0xf0]  ;;  %v9755_v28 = vshll.u32 %v9754_v29, 16  ;;  %v2178_v3 = vsel %vm6661_vm10, %v2173_v25, %v2177_v53  ;;  %v8571_v56 = vld [vmem:[#allocation9 + $0x1d0] sm:$0xff] }
 0x1e5   : > { %v5830_v18 = vld [vmem:[#allocation9 + $0x148] sm:$0xff]  ;;  %2410 = vst [vmem:[#allocation3 + $0x30] sm:$0xf] %v2266_v4  ;;  %v2939_v54 = vld [vmem:[#allocation2 + $0x2c] sm:$0xf]  ;;  %v5339_v49 = vor.u32 %v5784_v62, %v5338_v58  ;;  %v8569_v35 = vadd.f32 %v4298_v57, %v4250_v22  ;;  %v2504_v50 = vsel %vm6661_vm10, %v2499_v42, %v9749_v17  ;;  %v8578_v45 = vld [vmem:[#allocation9 + $0x230] sm:$0xff] }
 0x1e6   : > { %v2274_v13 = vor.u32 %v9755_v28, %v9753_v7  ;;  %2897 = vst [vmem:[#allocation3 + $0x1c8] sm:$0xf] %v2841_v34  ;;  %v2509_v48 = vrot.slane %v2508_v40, 4  ;;  %v5769_v43 = vld [vmem:[#allocation3 + $0x1a0] sm:$0xf0]  ;;  %v2267_v53 = vrot.slane %v9741_v24, 4  ;;  %4442 = vmatpush.bf16.msrb.mxu3 %v5830_v18  ;;  %5990 = vmatpush.bf16.msra.mxu2 %v8578_v45 }
 0x1e7   : > { %9756 = vst [vmem:[#allocation32_spill] sm:$0xff] %v8569_v35  ;;  %v9757_v20 = vshll.u32 %v7322_v63, 16  ;;  %v9758_v4 = vld [vmem:[#allocation67_spill] sm:$0xff]  ;;  %4234 = vmatmul.bf16.gmra.mxu1 %v5339_v49  ;;  %v9760_v51 = vld [vmem:[#allocation36_spill] sm:$0xff]  ;;  %v2276_v58 = vrot.slane %v9753_v7, 4  ;;  %v9761_v25 = vshrl.u32 %v8024_v31, 16  ;;  %v2858_v7 = vor.u32 %v2856_v41, %v8472_v14  ;;  %4539 = vmatpush.bf16.msra.mxu0 %v8571_v56 }
 0x1e8   : > { %2210 = vst [vmem:[#allocation3 + $0x224] sm:$0xf] %v2178_v3  ;;  %v9759_v6 = vshrl.u32 %v9758_v4, 16  ;;  %v5290_v1 = vld [vmem:[#allocation3 + $0x180] sm:$0xf]  ;;  %v2514_v47 = vsel %vm6661_vm10, %v2509_v48, %v9760_v51  ;;  %v9762_v34 = vld [vmem:[#allocation38_spill] sm:$0xff]  ;;  %v2275_v22 = vsel %vm6762_vm0, %v2267_v53, %v2274_v13  ;;  %5984 = vmatpush.bf16.msra.mxu1 %v8524_v38  ;;  %v4254_v53 = vpop.f32.mrf.mxu2 }
 0x1e9   : > { %v2283_v23 = vor.u32 %v9757_v20, %v7493_v5  ;;  %2898 = vst [vmem:[#allocation3 + $0x1ec] sm:$0xf] %v2850_v59  ;;  %v8594_v24 = vrot.slane %v9761_v25, 7  ;;  %vm9763_vm12 = vnez %v9762_v34  ;;  %v2703_v17 = vld [vmem:[#allocation2 + $0x50] sm:$0xf]  ;;  %v5291_v60 = vor.u32 %v5769_v43, %v5290_v1  ;;  %v5829_v40 = vld [vmem:[#allocation9 + $0x140] sm:$0xff] }
 0x1ea   : > { %v8586_v27 = vrot.slane %v9759_v6, 7  ;;  %v8598_v63 = vsel %vm9763_vm12, %v2938_v8, 0  ;;  %v9764_v62 = vshrl.u32 %v8028_v46, 16  ;;  %v9765_v42 = vld [vmem:[#allocation39_spill] sm:$0xff]  ;;  %v2720_v8 = vsel %vm8364_vm8, %v2703_v17, 0  ;;  %v8620_v49 = vld [vmem:[#allocation9 + $0x1c8] sm:$0xff]  ;;  %v4205_v32 = vpop.f32.mrf.mxu1  ;;  %4443 = vmatpush.bf16.msrb.mxu3 %v5829_v40 }
 0x1eb   : > { %vm9766_vm1 = vnez %v9765_v42  ;;  %v2284_v18 = vsel %vm6762_vm0, %v2276_v58, %v2283_v23  ;;  %v2862_v29 = vshrl.u32 %v2720_v8, 16  ;;  %v2865_v28 = vshll.u32 %v2720_v8, 16  ;;  %v5723_v13 = vld [vmem:[#allocation3 + $0x30] sm:$0xf0]  ;;  %2671 = vst [vmem:[#allocation3 + $0x14] sm:$0xf] %v2504_v50  ;;  %4518 = vmatmul.bf16.gmra.mxu0 %v5291_v60  ;;  %v8633_v58 = vpop.f32.mrf.mxu3 }
 0x1ec   : > { %v8605_v59 = vrot.slane %v9764_v62, 4  ;;  %v8609_v57 = vsel %vm9766_vm1, %v2939_v54, 0  ;;  %v2851_v54 = vrot.slane %v8470_v12, 4  ;;  %v9767_v3 = vshrl.u32 %v8032_v16, 16  ;;  %v2428_v38 = vld [vmem:[#allocation2 + $0x18] sm:$0xf]  ;;  %5985 = vmatpush.bf16.msra.mxu1 %v8557_v26  ;;  %4540 = vmatpush.bf16.msra.mxu0 %v8620_v49 }
 0x1ed   : > { %v9768_v41 = vld [vmem:[#allocation44_spill] sm:$0xff]  ;;  %v2864_v1 = vrot.slane %v2862_v29, 7  ;;  %v5102_v12 = vld [vmem:[#allocation3 + $0x10] sm:$0xf]  ;;  %9770 = vst [vmem:[#allocation30_spill] sm:$0xff] %v8633_v58  ;;  %v2860_v25 = vrot.slane %v8472_v14, 4  ;;  %v4206_v14 = vadd.f32 %v8505_v21, %v4205_v32 }
 0x1ee   : > { %v8625_v48 = vrot.slane %v9767_v3, 4  ;;  %v9769_v20 = vld [vmem:[#allocation40_spill] sm:$0xff]  ;;  %v9771_v50 = vld [vmem:[#allocation37_spill] sm:$0xff]  ;;  %v5103_v8 = vor.u32 %v5723_v13, %v5102_v12  ;;  %2672 = vst [vmem:[#allocation3 + $0x38] sm:$0xf] %v2514_v47  ;;  %v9772_v3 = vld [vmem:[#allocation46_spill] sm:$0xff] }
 0x1ef   : > { %v2518_v34 = vor.u32 %v9771_v50, %v9760_v51  ;;  %v5785_v42 = vld [vmem:[#allocation3 + $0x220] sm:$0xf0]  ;;  %v9773_v23 = vld [vmem:[#allocation41_spill] sm:$0xff]  ;;  %v2867_v40 = vor.u32 %v2865_v28, %v2864_v1  ;;  %v5346_v6 = vld [vmem:[#allocation3 + $0x200] sm:$0xf]  ;;  %v2859_v51 = vsel %vm6762_vm0, %v2851_v54, %v2858_v7  ;;  %v2285_v26 = vrot.slane %v7493_v5, 4 }
 0x1f0   : > { %v9774_v29 = vshll.u32 %v9773_v23, 16  ;;  %2444 = vst [vmem:[#allocation3 + $0x7c] sm:$0xf] %v2428_v38  ;;  %v8648_v50 = vld [vmem:[#allocation9 + $0x1c0] sm:$0xff]  ;;  %v9775_v13 = vld [vmem:[#allocation42_spill] sm:$0xff]  ;;  %v5347_v12 = vor.u32 %v5785_v42, %v5346_v6  ;;  %4395 = vmatmul.bf16.vlgmr.msrb.gmra.mxu2 %v5103_v8  ;;  %v9776_v23 = vld [vmem:[#allocation43_spill] sm:$0xff]  ;;  %5986 = vmatpush.bf16.msra.mxu1 %v8571_v56  ;;  %v8672_v56 = vpop.f32.mrf.mxu2 }
 0x1f1   : > { %v2521_v47 = vshll.u32 %v9775_v13, 16  ;;  %2411 = vst [vmem:[#allocation3 + $0x54] sm:$0xf] %v2275_v22  ;;  %v9777_v28 = vld [vmem:[#allocation45_spill] sm:$0xff]  ;;  %v2868_v7 = vsel %vm6762_vm0, %v2860_v25, %v2867_v40  ;;  %v2519_v54 = vrot.slane %v2518_v34, 4  ;;  %v9779_v42 = vld [vmem:[#allocation55_spill] sm:$0xff]  ;;  %4541 = vmatpush.bf16.msra.mxu0 %v8648_v50 }
 0x1f2   : > { %v2292_v60 = vor.u32 %v9774_v29, %v9772_v3  ;;  %v2531_v29 = vshll.u32 %v9776_v23, 16  ;;  %v9778_v38 = vld [vmem:[#allocation49_spill] sm:$0xff]  ;;  %2412 = vst [vmem:[#allocation3 + $0x78] sm:$0xf] %v2284_v18  ;;  %v2429_v62 = vld [vmem:[#allocation2 + $0x1c] sm:$0xf]  ;;  %4332 = vmatmul.bf16.gmra.mxu3 %v5347_v12 }
 0x1f3   : > { %v2523_v32 = vrot.slane %v2521_v47, 5  ;;  %v5096_v13 = vld [vmem:[#allocation3 + $0x2c] sm:$0xf0]  ;;  %2899 = vst [vmem:[#allocation3 + $0x210] sm:$0xf] %v2859_v51  ;;  %v2541_v5 = vshll.u32 %v9779_v42, 16  ;;  %v4255_v42 = vadd.f32 %v4254_v53, %v4206_v14 }
 0x1f4   : > { %v2533_v6 = vrot.slane %v2531_v29, 5  ;;  %v2293_v22 = vsel %vm6762_vm0, %v2285_v26, %v2292_v60  ;;  %v2221_v8 = vld [vmem:[#allocation2 + $0x30] sm:$0xf]  ;;  %2900 = vst [vmem:[#allocation3 + $0x234] sm:$0xf] %v2868_v7  ;;  %v9780_v25 = vld [vmem:[#allocation47_spill] sm:$0xff]  ;;  %v8674_v7 = vpop.f32.mrf.mxu1  ;;  %5987 = vmatpush.bf16.msra.mxu1 %v8620_v49 }
 0x1f5   : > { %v2524_v18 = vsel %vm6661_vm10, %v2519_v54, %v2523_v32  ;;  %v2528_v34 = vor.u32 %v9780_v25, %v2523_v32  ;;  %v2430_v40 = vld [vmem:[#allocation2 + $0x20] sm:$0xf]  ;;  %v2294_v51 = vrot.slane %v9772_v3, 4  ;;  %v9781_v47 = vld [vmem:[#allocation58_spill] sm:$0xff]  ;;  %v9782_v23 = vld [vmem:[#allocation53_spill] sm:$0xff]  ;;  %4583 = vmatpush.bf16.msrb.mxu0 %v8483_v19  ;;  %v2543_v25 = vrot.slane %v2541_v5, 5 }
 0x1f6   : > { %v9783_v29 = vshll.u32 %v9782_v23, 16  ;;  %v2222_v26 = vld [vmem:[#allocation2 + $0x34] sm:$0xf]  ;;  %2673 = vst [vmem:[#allocation3 + $0x5c] sm:$0xf] %v2524_v18  ;;  %v9784_v1 = vld [vmem:[#allocation48_spill] sm:$0xff]  ;;  %v4303_v23 = vpop.f32.mrf.mxu3 }
 0x1f7   : > { %v5858_v54 = vld [vmem:[#allocation9 + $0x228] sm:$0xff]  ;;  %v2538_v32 = vor.u32 %v9784_v1, %v2533_v6  ;;  %v9785_v17 = vld [vmem:[#allocation56_spill] sm:$0xff]  ;;  %v2529_v35 = vrot.slane %v2528_v34, 4  ;;  %2445 = vst [vmem:[#allocation3 + $0xa0] sm:$0xf] %v2429_v62  ;;  %v2303_v19 = vrot.slane %v9781_v47, 4  ;;  %v8681_v58 = vadd.f32 %v4303_v23, %v4255_v42 }
 0x1f8   : > { %v2301_v60 = vor.u32 %v9783_v29, %v9781_v47  ;;  %v2551_v3 = vshll.u32 %v9785_v17, 16  ;;  %v5718_v43 = vld [vmem:[#allocation3 + $0xc] sm:$0xf]  ;;  %2446 = vst [vmem:[#allocation3 + $0xc4] sm:$0xf] %v2430_v40  ;;  %5991 = vmatpush.bf16.msra.mxu2 %v5858_v54  ;;  %v9787_v62 = vld [vmem:[#allocation59_spill] sm:$0xff]  ;;  %5988 = vmatpush.bf16.msra.mxu1 %v8648_v50 }
 0x1f9   : > { %v5099_v18 = vor.u32 %v5718_v43, %v5096_v13  ;;  %v5778_v29 = vld [vmem:[#allocation3 + $0x1e8] sm:$0xf0]  ;;  %v2539_v53 = vrot.slane %v2538_v32, 4  ;;  %v2466_v5 = vld [vmem:[#allocation2 + $0x30] sm:$0xf]  ;;  %v2534_v34 = vsel %vm6661_vm10, %v2529_v35, %v2533_v6  ;;  %v8691_v43 = vsel %vm7748_vm7, %v2221_v8, 0  ;;  %4584 = vmatpush.bf16.msrb.mxu0 %v8578_v45 }
 0x1fa   : > { %v2302_v12 = vsel %vm6762_vm0, %v2294_v51, %v2301_v60  ;;  %v9786_v14 = vld [vmem:[#allocation60_spill] sm:$0xff]  ;;  %2413 = vst [vmem:[#allocation3 + $0x9c] sm:$0xf] %v2293_v22  ;;  %v9788_v30 = vld [vmem:[#allocation54_spill] sm:$0xff]  ;;  %v5857_v13 = vld [vmem:[#allocation9 + $0x220] sm:$0xff]  ;;  %v2553_v42 = vrot.slane %v2551_v3, 5 }
 0x1fb   : > { %v2548_v1 = vor.u32 %v9786_v14, %v2543_v25  ;;  %v5326_v17 = vld [vmem:[#allocation3 + $0x1c8] sm:$0xf]  ;;  %v9789_v51 = vshll.u32 %v9788_v30, 16  ;;  %4346 = vmatmul.bf16.vlgmr.msrb.gmra.mxu1 %v5099_v18  ;;  %2674 = vst [vmem:[#allocation3 + $0x80] sm:$0xf] %v2534_v34  ;;  %v2544_v40 = vsel %vm6661_vm10, %v2539_v53, %v2543_v25  ;;  %v8698_v35 = vsel %vm9735_vm9, %v2222_v26, 0 }
 0x1fc   : > { %v5327_v30 = vor.u32 %v5778_v29, %v5326_v17  ;;  %2414 = vst [vmem:[#allocation3 + $0xc0] sm:$0xf] %v2302_v12  ;;  %v2431_v6 = vld [vmem:[#allocation2 + $0x24] sm:$0xf]  ;;  %v9790_v22 = vld [vmem:[#allocation57_spill] sm:$0xff]  ;;  %v9791_v45 = vld [vmem:[#allocation51_spill] sm:$0xff]  ;;  %5992 = vmatpush.bf16.msra.mxu2 %v5857_v13 }
 0x1fd   : > { %v2310_v60 = vor.u32 %v9789_v51, %v9787_v62  ;;  %v2549_v47 = vrot.slane %v2548_v1, 4  ;;  %v3000_v8 = vsel %vm6661_vm10, %v9791_v45, %v9790_v22  ;;  %v9792_v32 = vshll.u32 %v8598_v63, 16  ;;  %v2467_v3 = vld [vmem:[#allocation2 + $0x34] sm:$0xf]  ;;  %2675 = vst [vmem:[#allocation3 + $0xa4] sm:$0xf] %v2544_v40  ;;  %4585 = vmatpush.bf16.msrb.mxu0 %v5858_v54  ;;  %v4259_v40 = vpop.f32.mrf.mxu2 }
 0x1fe   : > { %v9793_v36 = vshrl.u32 %v8598_v63, 16  ;;  %v9794_v49 = vld [vmem:[#allocation63_spill] sm:$0xff]  ;;  %v9795_v12 = vld [vmem:[#allocation65_spill] sm:$0xff]  ;;  %v2332_v18 = vshrl.u32 %v8691_v43, 16  ;;  %v9796_v29 = vld [vmem:[#allocation62_spill] sm:$0xff]  ;;  %v9798_v14 = vshll.u32 %v8609_v57, 16  ;;  %4523 = vmatmul.bf16.gmra.mxu0 %v5327_v30  ;;  %v8737_v45 = vpop.f32.mrf.mxu3 }
 0x1ff   : > { %v2311_v33 = vsel %vm6762_vm0, %v2303_v19, %v2310_v60  ;;  %v8709_v25 = vrot.slane %v9792_v32, 5  ;;  %v2554_v23 = vsel %vm6661_vm10, %v2549_v47, %v2553_v42  ;;  %vm9797_vm7 = vnez %v9796_v29  ;;  %v5732_v63 = vld [vmem:[#allocation3 + $0x78] sm:$0xf0]  ;;  %v4210_v47 = vpop.f32.mrf.mxu1  ;;  %2447 = vst [vmem:[#allocation3 + $0xe8] sm:$0xf] %v2431_v6  ;;  %v5856_v32 = vld [vmem:[#allocation9 + $0x218] sm:$0xff] }
 0x200   : > { %v8713_v26 = vrot.slane %v9793_v36, 4  ;;  %v8724_v53 = vsel %vm9797_vm7, %v2466_v5, 0  ;;  %2676 = vst [vmem:[#allocation3 + $0xc8] sm:$0xf] %v2554_v23  ;;  %v8728_v1 = vrot.slane %v9798_v14, 5  ;;  %v9799_v17 = vshrl.u32 %v8609_v57, 16  ;;  %5993 = vmatpush.bf16.msra.mxu2 %v5856_v32 }
 0x201   : > { %v2341_v60 = vshrl.u32 %v8698_v35, 16  ;;  %v5138_v22 = vld [vmem:[#allocation3 + $0x58] sm:$0xf]  ;;  %9800 = vst [vmem:[#allocation26_spill] sm:$0xff] %v8737_v45  ;;  %v2432_v36 = vld [vmem:[#allocation2 + $0x28] sm:$0xf]  ;;  %4586 = vmatpush.bf16.msrb.mxu0 %v5857_v13 }
 0x202   : > { %v8732_v34 = vrot.slane %v9799_v17, 4  ;;  %v9801_v23 = vld [vmem:[#allocation61_spill] sm:$0xff]  ;;  %v9802_v14 = vld [vmem:[#allocation66_spill] sm:$0xff]  ;;  %v2581_v54 = vshll.u32 %v8724_v53, 16  ;;  %v5139_v6 = vor.u32 %v5732_v63, %v5138_v22  ;;  %2448 = vst [vmem:[#allocation3 + $0x10c] sm:$0xf] %v2432_v36 }
 0x203   : > { %v2558_v57 = vor.u32 %v9801_v23, %v2553_v42  ;;  %vm9803_vm11 = vnez %v9802_v14  ;;  %v5104_v51 = vld [vmem:[#allocation3 + $0x34] sm:$0xf0]  ;;  %v8746_v5 = vrot.slane %v2332_v18, 7  ;;  %2415 = vst [vmem:[#allocation3 + $0xe4] sm:$0xf] %v2311_v33  ;;  %v2561_v19 = vshll.u32 %v8028_v46, 16 }
 0x204   : > { %v8743_v17 = vsel %vm9803_vm11, %v2467_v3, 0  ;;  %v2940_v30 = vld [vmem:[#allocation2 + $0x30] sm:$0xf]  ;;  %v2433_v44 = vld [vmem:[#allocation2 + $0x2c] sm:$0xf]  ;;  %v8749_v42 = vrot.slane %v2341_v60, 7  ;;  %4400 = vmatmul.bf16.gmra.mxu2 %v5139_v6  ;;  %v4211_v3 = vadd.f32 %v8505_v21, %v4210_v47  ;;  %v9804_v18 = vsel %vm6661_vm10, %v9769_v20, %v9768_v41 }
 0x205   : > { %v2585_v50 = vshrl.u32 %v8724_v53, 16  ;;  %v5719_v23 = vld [vmem:[#allocation3 + $0x14] sm:$0xf]  ;;  %3147 = vst [vmem:[#allocation3 + $0x20] sm:$0xf] %v9804_v18  ;;  %v9805_v33 = vld [vmem:[#allocation64_spill] sm:$0xff]  ;;  %v9806_v53 = vsel %vm6661_vm10, %v9778_v38, %v9777_v28  ;;  %4587 = vmatpush.bf16.msrb.mxu0 %v5856_v32  ;;  %v3034_v10 = vor.u32 %v8732_v34, %v8728_v1 }
 0x206   : > { %v3014_v46 = vor.u32 %v9805_v33, %v9794_v49  ;;  %v2591_v63 = vshll.u32 %v8743_v17, 16  ;;  %3148 = vst [vmem:[#allocation3 + $0x44] sm:$0xf] %v9806_v53  ;;  %v2559_v60 = vrot.slane %v2558_v57, 4  ;;  %v2563_v47 = vrot.slane %v2561_v19, 5  ;;  %v9808_v19 = vld [vmem:[#allocation50_spill] sm:$0xff] }
 0x207   : > { %v2571_v13 = vshll.u32 %v8032_v16, 16  ;;  %v8767_v22 = vrot.slane %v2581_v54, 5  ;;  %v2595_v41 = vshrl.u32 %v8743_v17, 16  ;;  %v2941_v20 = vld [vmem:[#allocation2 + $0x34] sm:$0xf]  ;;  %v5107_v36 = vor.u32 %v5719_v23, %v5104_v51  ;;  %v5855_v51 = vld [vmem:[#allocation9 + $0x210] sm:$0xff]  ;;  %v8784_v23 = vpop.f32.mrf.mxu2 }
 0x208   : > { %v5132_v6 = vld [vmem:[#allocation3 + $0x74] sm:$0xf0]  ;;  %2449 = vst [vmem:[#allocation3 + $0x130] sm:$0xf] %v2433_v44  ;;  %v2312_v18 = vrot.slane %v9787_v62, 4  ;;  %v9807_v33 = vshll.u32 %v9758_v4, 16  ;;  %v2564_v28 = vsel %vm6661_vm10, %v2559_v60, %v2563_v47  ;;  %v2568_v38 = vor.u32 %v8605_v59, %v2563_v47  ;;  %v8781_v44 = vpop.f32.mrf.mxu1  ;;  %v4308_v59 = vpop.f32.mrf.mxu3  ;;  %5994 = vmatpush.bf16.msra.mxu2 %v5855_v51 }
 0x209   : > { %3149 = vst [vmem:[#allocation3 + $0x68] sm:$0xf] %v3000_v8  ;;  %v2905_v16 = vld [vmem:[#allocation2 + $0x24] sm:$0xf]  ;;  %vm9809_vm9 = vnez %v9808_v19  ;;  %4444 = vmatmul.bf16.vlgmr.msrb.gmra.mxu3 %v5107_v36  ;;  %v4260_v62 = vadd.f32 %v4259_v40, %v4211_v3  ;;  %v2321_v4 = vrot.slane %v8586_v27, 4  ;;  %v3015_v17 = vrot.slane %v3014_v46, 4  ;;  %4588 = vmatpush.bf16.msrb.mxu0 %v5855_v51 }
 0x20a   : > { %v2319_v45 = vor.u32 %v9807_v33, %v8586_v27  ;;  %v8779_v57 = vsel %vm9809_vm9, %v2940_v30, 0  ;;  %2677 = vst [vmem:[#allocation3 + $0xec] sm:$0xf] %v2564_v28  ;;  %v5727_v54 = vld [vmem:[#allocation3 + $0x54] sm:$0xf]  ;;  %v2569_v53 = vrot.slane %v2568_v38, 4  ;;  %v9811_v27 = vsel %vm6661_vm10, %v9795_v12, %v9794_v49 }
 0x20b   : > { %v8788_v30 = vrot.slane %v2571_v13, 5  ;;  %v9810_v32 = vshll.u32 %v8024_v31, 16  ;;  %3150 = vst [vmem:[#allocation3 + $0x8c] sm:$0xf] %v9811_v27  ;;  %v5135_v40 = vor.u32 %v5727_v54, %v5132_v6  ;;  %v5362_v3 = vld [vmem:[#allocation3 + $0x210] sm:$0xf]  ;;  %v8798_v47 = vadd.f32 %v4308_v59, %v4260_v62 }
 0x20c   : > { %v2320_v8 = vsel %vm6762_vm0, %v2312_v18, %v2319_v45  ;;  %v5787_v46 = vld [vmem:[#allocation3 + $0x230] sm:$0xf0]  ;;  %v9812_v45 = vld [vmem:[#allocation52_spill] sm:$0xff]  ;;  %v3020_v49 = vsel %vm6661_vm10, %v3015_v17, %v8709_v25  ;;  %2921 = vst [vmem:[#allocation3 + $0xac] sm:$0xf] %v2905_v16  ;;  %v8812_v12 = vrot.slane %v2585_v50, 4 }
 0x20d   : > { %v2328_v60 = vor.u32 %v9810_v32, %v8594_v24  ;;  %2416 = vst [vmem:[#allocation3 + $0x108] sm:$0xf] %v2320_v8  ;;  %vm9813_vm3 = vnez %v9812_v45  ;;  %v2574_v31 = vsel %vm6661_vm10, %v2569_v53, %v8788_v30  ;;  %4351 = vmatmul.bf16.gmra.mxu1 %v5135_v40  ;;  %v5854_v6 = vld [vmem:[#allocation9 + $0x208] sm:$0xff]  ;;  %v2906_v18 = vld [vmem:[#allocation2 + $0x28] sm:$0xf]  ;;  %v8816_v33 = vrot.slane %v2591_v63, 5  ;;  %v8824_v63 = vpop.f32.mrf.mxu0 }
 0x20e   : > { %v8802_v13 = vsel %vm9813_vm3, %v2941_v20, 0  ;;  %2678 = vst [vmem:[#allocation3 + $0x110] sm:$0xf] %v2574_v31  ;;  %v3024_v20 = vor.u32 %v8713_v26, %v8709_v25  ;;  %v8818_v28 = vrot.slane %v2595_v41, 4  ;;  %v5363_v38 = vor.u32 %v5787_v46, %v5362_v3  ;;  %v2907_v19 = vld [vmem:[#allocation2 + $0x2c] sm:$0xf]  ;;  %5995 = vmatpush.bf16.msra.mxu2 %v5854_v6  ;;  %4589 = vmatpush.bf16.msrb.mxu0 %v5854_v6 }
 0x20f   : > { %v2329_v36 = vsel %vm6762_vm0, %v2321_v4, %v2328_v60  ;;  %v3037_v62 = vshll.u32 %v8779_v57, 16  ;;  %v3041_v50 = vshrl.u32 %v8779_v57, 16  ;;  %v3047_v16 = vshll.u32 %v8802_v13, 16  ;;  %3151 = vst [vmem:[#allocation3 + $0xb0] sm:$0xf] %v3020_v49  ;;  %v5853_v54 = vld [vmem:[#allocation9 + $0x200] sm:$0xff]  ;;  %v4264_v45 = vpop.f32.mrf.mxu2 }
 0x210   : > { %2417 = vst [vmem:[#allocation3 + $0x12c] sm:$0xf] %v2329_v36  ;;  %v3025_v51 = vrot.slane %v3024_v20, 4  ;;  %v2223_v4 = vld [vmem:[#allocation2 + $0x38] sm:$0xf]  ;;  %v3051_v25 = vshrl.u32 %v8802_v13, 16  ;;  %v4215_v41 = vpop.f32.mrf.mxu1  ;;  %4528 = vmatmul.bf16.gmra.mxu0 %v5363_v38  ;;  %v2578_v8 = vor.u32 %v8625_v48, %v8788_v30 }
 0x211   : > { %v5741_v17 = vld [vmem:[#allocation3 + $0xc0] sm:$0xf0]  ;;  %2922 = vst [vmem:[#allocation3 + $0xd0] sm:$0xf] %v2906_v18  ;;  %v5174_v59 = vld [vmem:[#allocation3 + $0xa0] sm:$0xf]  ;;  %v4216_v30 = vadd.f32 %v8505_v21, %v4215_v41 }
 0x212   : > { %v2224_v26 = vld [vmem:[#allocation2 + $0x3c] sm:$0xf]  ;;  %v3030_v57 = vsel %vm6661_vm10, %v3025_v51, %v8728_v1  ;;  %2923 = vst [vmem:[#allocation3 + $0xf4] sm:$0xf] %v2907_v19  ;;  %v2434_v53 = vld [vmem:[#allocation2 + $0x30] sm:$0xf]  ;;  %v5175_v40 = vor.u32 %v5741_v17, %v5174_v59  ;;  %5996 = vmatpush.bf16.msra.mxu2 %v5853_v54  ;;  %4590 = vmatpush.bf16.msrb.mxu0 %v5853_v54  ;;  %v8848_v51 = vpop.f32.mrf.mxu3 }
 0x213   : > { %v2435_v32 = vld [vmem:[#allocation2 + $0x34] sm:$0xf]  ;;  %v8831_v60 = vrot.slane %v3037_v62, 5  ;;  %v8835_v27 = vsel %vm7997_vm6, %v2223_v4, 0  ;;  %2450 = vst [vmem:[#allocation3 + $0x154] sm:$0xf] %v2434_v53  ;;  %v2588_v4 = vor.u32 %v8812_v12, %v8767_v22  ;;  %v4265_v54 = vadd.f32 %v4264_v45, %v4216_v30 }
 0x214   : > { %v2908_v3 = vld [vmem:[#allocation2 + $0x30] sm:$0xf]  ;;  %v5140_v46 = vld [vmem:[#allocation3 + $0x7c] sm:$0xf0]  ;;  %2451 = vst [vmem:[#allocation3 + $0x178] sm:$0xf] %v2435_v32  ;;  %4405 = vmatmul.bf16.gmra.mxu2 %v5175_v40 }
 0x215   : > { %v2909_v31 = vld [vmem:[#allocation2 + $0x34] sm:$0xf]  ;;  %v3043_v36 = vrot.slane %v3041_v50, 4  ;;  %v8837_v49 = vrot.slane %v3047_v16, 5  ;;  %v2468_v48 = vld [vmem:[#allocation2 + $0x38] sm:$0xf]  ;;  %v8873_v45 = vpop.f32.mrf.mxu0 }
 0x216   : > { %3152 = vst [vmem:[#allocation3 + $0xd4] sm:$0xf] %v3030_v57  ;;  %v8844_v6 = vsel %vm8010_vm15, %v2224_v26, 0  ;;  %v5728_v20 = vld [vmem:[#allocation3 + $0x5c] sm:$0xf]  ;;  %v2579_v18 = vrot.slane %v2578_v8, 4 }
 0x217   : > { %2924 = vst [vmem:[#allocation3 + $0x118] sm:$0xf] %v2908_v3  ;;  %v2350_v38 = vshrl.u32 %v8835_v27, 16  ;;  %v2469_v19 = vld [vmem:[#allocation2 + $0x3c] sm:$0xf]  ;;  %v5143_v62 = vor.u32 %v5728_v20, %v5140_v46  ;;  %v2330_v50 = vrot.slane %v8594_v24, 4  ;;  %v3044_v20 = vor.u32 %v3043_v36, %v8831_v60 }
 0x218   : > { %2925 = vst [vmem:[#allocation3 + $0x13c] sm:$0xf] %v2909_v31  ;;  %v5168_v16 = vld [vmem:[#allocation3 + $0xbc] sm:$0xf0]  ;;  %v9814_v1 = vshll.u32 %v8691_v43, 16  ;;  %v2584_v37 = vsel %vm6661_vm10, %v2579_v18, %v8767_v22  ;;  %v2339_v17 = vrot.slane %v8746_v5, 4  ;;  %v8861_v41 = vpop.f32.mrf.mxu1 }
 0x219   : > { %v9815_v26 = vld [vmem:[#allocation68_spill] sm:$0xff]  ;;  %4449 = vmatmul.bf16.gmra.mxu3 %v5143_v62  ;;  %2679 = vst [vmem:[#allocation3 + $0x134] sm:$0xf] %v2584_v37  ;;  %v9817_v43 = vshll.u32 %v8698_v35, 16  ;;  %v3035_v59 = vrot.slane %v3034_v10, 4  ;;  %v2359_v8 = vshrl.u32 %v8844_v6, 16 }
 0x21a   : > { %v2337_v34 = vor.u32 %v9814_v1, %v8746_v5  ;;  %vm9816_vm6 = vnez %v9815_v26  ;;  %v9818_v53 = vld [vmem:[#allocation69_spill] sm:$0xff]  ;;  %v5736_v5 = vld [vmem:[#allocation3 + $0x9c] sm:$0xf]  ;;  %v2589_v32 = vrot.slane %v2588_v4, 4  ;;  %v2942_v40 = vld [vmem:[#allocation2 + $0x38] sm:$0xf] }
 0x21b   : > { %v2485_v24 = vsel %vm9816_vm6, %v2468_v48, 0  ;;  %v2346_v57 = vor.u32 %v9817_v43, %v8749_v42  ;;  %vm9819_vm15 = vnez %v9818_v53  ;;  %v2943_v3 = vld [vmem:[#allocation2 + $0x3c] sm:$0xf]  ;;  %v5171_v46 = vor.u32 %v5736_v5, %v5168_v16  ;;  %v5112_v62 = vld [vmem:[#allocation3 + $0x3c] sm:$0xf0]  ;;  %v4313_v5 = vpop.f32.mrf.mxu3 }
 0x21c   : > { %v8869_v22 = vsel %vm9819_vm15, %v2469_v19, 0  ;;  %v2338_v12 = vsel %vm6762_vm0, %v2330_v50, %v2337_v34  ;;  %v3040_v31 = vsel %vm6661_vm10, %v3035_v59, %v8831_v60  ;;  %v2601_v48 = vshll.u32 %v2485_v24, 16  ;;  %v8896_v34 = vpop.f32.mrf.mxu2 }
 0x21d   : > { %2418 = vst [vmem:[#allocation3 + $0x150] sm:$0xf] %v2338_v12  ;;  %v2347_v35 = vsel %vm6762_vm0, %v2339_v17, %v2346_v57  ;;  %v2605_v30 = vshrl.u32 %v2485_v24, 16  ;;  %v2594_v10 = vsel %vm6661_vm10, %v2589_v32, %v8816_v33  ;;  %v8886_v18 = vrot.slane %v3051_v25, 4  ;;  %4356 = vmatmul.bf16.gmra.mxu1 %v5171_v46  ;;  %v5750_v24 = vld [vmem:[#allocation3 + $0x108] sm:$0xf0] }
 0x21e   : > { %2419 = vst [vmem:[#allocation3 + $0x174] sm:$0xf] %v2347_v35  ;;  %v2611_v19 = vshll.u32 %v8869_v22, 16  ;;  %v2353_v50 = vshll.u32 %v8835_v27, 16  ;;  %v2959_v16 = vsel %vm9797_vm7, %v2942_v40, 0  ;;  %v8894_v1 = vsel %vm9803_vm11, %v2943_v3, 0 }
 0x21f   : > { %2680 = vst [vmem:[#allocation3 + $0x158] sm:$0xf] %v2594_v10  ;;  %v3045_v60 = vrot.slane %v3044_v20, 4  ;;  %v8898_v13 = vrot.slane %v2350_v38, 7  ;;  %v8900_v25 = vrot.slane %v2359_v8, 7  ;;  %v2362_v36 = vshll.u32 %v8844_v6, 16 }
 0x220   : > { %3153 = vst [vmem:[#allocation3 + $0xf8] sm:$0xf] %v3040_v31  ;;  %v2615_v37 = vshrl.u32 %v8869_v22, 16  ;;  %v5720_v27 = vld [vmem:[#allocation3 + $0x1c] sm:$0xf]  ;;  %v2603_v4 = vrot.slane %v2601_v48, 5  ;;  %v4220_v12 = vpop.f32.mrf.mxu1  ;;  %v2598_v40 = vor.u32 %v8818_v28, %v8816_v33  ;;  %v8912_v31 = vadd.f32 %v4313_v5, %v4265_v54 }
 0x221   : > { %v2607_v29 = vrot.slane %v2605_v30, 4  ;;  %v5115_v17 = vor.u32 %v5720_v27, %v5112_v62  ;;  %v3050_v14 = vsel %vm6661_vm10, %v3045_v60, %v8837_v49  ;;  %v8907_v43 = vrot.slane %v2611_v19, 5  ;;  %v2225_v8 = vld [vmem:[#allocation2 + $0x40] sm:$0xf]  ;;  %v2436_v32 = vld [vmem:[#allocation2 + $0x38] sm:$0xf] }
 0x222   : > { %v3057_v57 = vshll.u32 %v2959_v16, 16  ;;  %v3061_v38 = vshrl.u32 %v2959_v16, 16  ;;  %v3067_v59 = vshll.u32 %v8894_v1, 16  ;;  %3154 = vst [vmem:[#allocation3 + $0x11c] sm:$0xf] %v3050_v14  ;;  %v3071_v19 = vshrl.u32 %v8894_v1, 16  ;;  %v8915_v16 = vpop.f32.mrf.mxu0 }
 0x223   : > { %4542 = vmatmul.bf16.vlgmr.msra.gmra.mxu0 %v5115_v17  ;;  %v5210_v6 = vld [vmem:[#allocation3 + $0xe8] sm:$0xf]  ;;  %v2437_v3 = vld [vmem:[#allocation2 + $0x3c] sm:$0xf]  ;;  %v2226_v46 = vld [vmem:[#allocation2 + $0x44] sm:$0xf]  ;;  %v4221_v60 = vadd.f32 %v8505_v21, %v4220_v12  ;;  %v3054_v33 = vor.u32 %v8886_v18, %v8837_v49  ;;  %v2355_v49 = vor.u32 %v2353_v50, %v8898_v13 }
 0x224   : > { %v5211_v35 = vor.u32 %v5750_v24, %v5210_v6  ;;  %2452 = vst [vmem:[#allocation3 + $0x19c] sm:$0xf] %v2436_v32  ;;  %v2910_v48 = vld [vmem:[#allocation2 + $0x38] sm:$0xf]  ;;  %v5176_v30 = vld [vmem:[#allocation3 + $0xc4] sm:$0xf0]  ;;  %v4269_v5 = vpop.f32.mrf.mxu2 }
 0x225   : > { %2453 = vst [vmem:[#allocation3 + $0x1c0] sm:$0xf] %v2437_v3  ;;  %v2911_v10 = vld [vmem:[#allocation2 + $0x3c] sm:$0xf]  ;;  %v3059_v20 = vrot.slane %v3057_v57, 5  ;;  %v3063_v28 = vrot.slane %v3061_v38, 4  ;;  %v2608_v38 = vor.u32 %v2607_v29, %v2603_v4  ;;  %v8935_v12 = vadd.f32 %v4269_v5, %v4221_v60 }
 0x226   : > { %v2470_v62 = vld [vmem:[#allocation2 + $0x40] sm:$0xf]  ;;  %4410 = vmatmul.bf16.gmra.mxu2 %v5211_v35  ;;  %2926 = vst [vmem:[#allocation3 + $0x160] sm:$0xf] %v2910_v48  ;;  %v5737_v54 = vld [vmem:[#allocation3 + $0xa4] sm:$0xf] }
 0x227   : > { %v2599_v27 = vrot.slane %v2598_v40, 4  ;;  %2927 = vst [vmem:[#allocation3 + $0x184] sm:$0xf] %v2911_v10  ;;  %v8922_v17 = vsel %vm8183_vm2, %v2225_v8, 0  ;;  %v8926_v24 = vsel %vm8273_vm14, %v2226_v46, 0  ;;  %v5179_v57 = vor.u32 %v5737_v54, %v5176_v30 }
 0x228   : > { %v2471_v14 = vld [vmem:[#allocation2 + $0x44] sm:$0xf]  ;;  %v2348_v21 = vrot.slane %v8749_v42, 4  ;;  %v5204_v6 = vld [vmem:[#allocation3 + $0x104] sm:$0xf0]  ;;  %v2357_v9 = vrot.slane %v8898_v13, 4  ;;  %vm9820_vm2 = vnez %v9720_v55  ;;  %v2364_v42 = vor.u32 %v2362_v36, %v8900_v25 }
 0x229   : > { %v2604_v18 = vsel %vm6661_vm10, %v2599_v27, %v2603_v4  ;;  %v2487_v8 = vsel %vm9820_vm2, %v2470_v62, 0  ;;  %4454 = vmatmul.bf16.gmra.mxu3 %v5179_v57  ;;  %v3055_v32 = vrot.slane %v3054_v33, 4  ;;  %v2368_v40 = vshrl.u32 %v8922_v17, 16  ;;  %v5745_v4 = vld [vmem:[#allocation3 + $0xe4] sm:$0xf] }
 0x22a   : > { %2681 = vst [vmem:[#allocation3 + $0x17c] sm:$0xf] %v2604_v18  ;;  %vm9821_vm14 = vnez %v9722_v39  ;;  %v2356_v13 = vsel %vm6762_vm0, %v2348_v21, %v2355_v49  ;;  %v2609_v29 = vrot.slane %v2608_v38, 4  ;;  %v2377_v3 = vshrl.u32 %v8926_v24, 16  ;;  %v5725_v54 = vld [vmem:[#allocation3 + $0x40] sm:$0xf0]  ;;  %v8964_v49 = vpop.f32.mrf.mxu0 }
 0x22b   : > { %v8941_v50 = vsel %vm9821_vm14, %v2471_v14, 0  ;;  %v5207_v46 = vor.u32 %v5745_v4, %v5204_v6  ;;  %2420 = vst [vmem:[#allocation3 + $0x198] sm:$0xf] %v2356_v13  ;;  %v2365_v35 = vsel %vm6762_vm0, %v2357_v9, %v2364_v42  ;;  %v3060_v36 = vsel %vm6661_vm10, %v3055_v32, %v3059_v20  ;;  %v5118_v5 = vld [vmem:[#allocation3 + $0x20] sm:$0xf] }
 0x22c   : > { %v2621_v48 = vshll.u32 %v2487_v8, 16  ;;  %v2961_v30 = vsel %vm9816_vm6, %v2944_v61, 0  ;;  %v2614_v10 = vsel %vm6661_vm10, %v2609_v29, %v8907_v43  ;;  %2421 = vst [vmem:[#allocation3 + $0x1bc] sm:$0xf] %v2365_v35  ;;  %v3064_v62 = vor.u32 %v3063_v28, %v3059_v20  ;;  %v2438_v61 = vld [vmem:[#allocation2 + $0x40] sm:$0xf]  ;;  %v8978_v29 = vpop.f32.mrf.mxu3 }
 0x22d   : > { %v2625_v60 = vshrl.u32 %v2487_v8, 16  ;;  %v2631_v33 = vshll.u32 %v8941_v50, 16  ;;  %4361 = vmatmul.bf16.gmra.mxu1 %v5207_v46  ;;  %2682 = vst [vmem:[#allocation3 + $0x1a0] sm:$0xf] %v2614_v10  ;;  %v2617_v27 = vrot.slane %v2615_v37, 4  ;;  %v3069_v14 = vrot.slane %v3067_v59, 5 }
 0x22e   : > { %v3073_v26 = vrot.slane %v3071_v19, 4  ;;  %v3065_v57 = vrot.slane %v3064_v62, 4  ;;  %3155 = vst [vmem:[#allocation3 + $0x140] sm:$0xf] %v3060_v36  ;;  %v8960_v21 = vrot.slane %v2368_v40, 7  ;;  %v2371_v6 = vshll.u32 %v8922_v17, 16  ;;  %v8980_v62 = vpop.f32.mrf.mxu2 }
 0x22f   : > { %v2380_v20 = vshll.u32 %v8926_v24, 16  ;;  %v3077_v28 = vshll.u32 %v2961_v30, 16  ;;  %v8966_v18 = vrot.slane %v2377_v3, 7  ;;  %v2635_v22 = vshrl.u32 %v8941_v50, 16  ;;  %v2945_v37 = vld [vmem:[#allocation2 + $0x44] sm:$0xf] }
 0x230   : > { %v5119_v1 = vor.u32 %v5725_v54, %v5118_v5  ;;  %v5759_v59 = vld [vmem:[#allocation3 + $0x150] sm:$0xf0]  ;;  %v3070_v19 = vsel %vm6661_vm10, %v3065_v57, %v3069_v14  ;;  %v2623_v38 = vrot.slane %v2621_v48, 5  ;;  %v2627_v9 = vrot.slane %v2625_v60, 4  ;;  %v5246_v24 = vld [vmem:[#allocation3 + $0x130] sm:$0xf]  ;;  %v8982_v57 = vpop.f32.mrf.mxu1 }
 0x231   : > { %v8971_v8 = vrot.slane %v2631_v33, 5  ;;  %v3081_v17 = vshrl.u32 %v2961_v30, 16  ;;  %3156 = vst [vmem:[#allocation3 + $0x164] sm:$0xf] %v3070_v19  ;;  %v2618_v42 = vor.u32 %v2617_v27, %v8907_v43  ;;  %v2439_v32 = vld [vmem:[#allocation2 + $0x44] sm:$0xf]  ;;  %v5247_v13 = vor.u32 %v5759_v59, %v5246_v24 }
 0x232   : > { %v2962_v40 = vsel %vm9819_vm15, %v2945_v37, 0  ;;  %v8976_v4 = vrot.slane %v3077_v28, 5  ;;  %2454 = vst [vmem:[#allocation3 + $0x1e4] sm:$0xf] %v2438_v61  ;;  %v2912_v3 = vld [vmem:[#allocation2 + $0x40] sm:$0xf]  ;;  %v3074_v30 = vor.u32 %v3073_v26, %v3069_v14  ;;  %v2373_v37 = vor.u32 %v2371_v6, %v8960_v21 }
 0x233   : > { %4591 = vmatmul.bf16.vlgmr.msrb.gmra.mxu0 %v5119_v1  ;;  %v5212_v46 = vld [vmem:[#allocation3 + $0x10c] sm:$0xf0]  ;;  %2455 = vst [vmem:[#allocation3 + $0x208] sm:$0xf] %v2439_v32  ;;  %v2913_v35 = vld [vmem:[#allocation2 + $0x44] sm:$0xf]  ;;  %v2628_v26 = vor.u32 %v2627_v9, %v2623_v38 }
 0x234   : > { %v2227_v36 = vld [vmem:[#allocation2 + $0x48] sm:$0xf]  ;;  %2928 = vst [vmem:[#allocation3 + $0x1a8] sm:$0xf] %v2912_v3  ;;  %v3083_v43 = vrot.slane %v3081_v17, 4  ;;  %v2619_v53 = vrot.slane %v2618_v42, 4  ;;  %v8995_v17 = vpop.f32.mrf.mxu0 }
 0x235   : > { %v2472_v48 = vld [vmem:[#allocation2 + $0x48] sm:$0xf]  ;;  %v5746_v10 = vld [vmem:[#allocation3 + $0xec] sm:$0xf]  ;;  %2929 = vst [vmem:[#allocation3 + $0x1cc] sm:$0xf] %v2913_v35 }
 0x236   : > { %4415 = vmatmul.bf16.gmra.mxu2 %v5247_v13  ;;  %v3087_v60 = vshll.u32 %v2962_v40, 16  ;;  %v3091_v33 = vshrl.u32 %v2962_v40, 16  ;;  %v2946_v54 = vld [vmem:[#allocation2 + $0x48] sm:$0xf]  ;;  %v5215_v27 = vor.u32 %v5746_v10, %v5212_v46  ;;  %v2366_v28 = vrot.slane %v8900_v25, 4  ;;  %v4274_v50 = vpop.f32.mrf.mxu2 }
 0x237   : > { %v5240_v5 = vld [vmem:[#allocation3 + $0x14c] sm:$0xf0]  ;;  %v2624_v14 = vsel %vm6661_vm10, %v2619_v53, %v2623_v38  ;;  %v2375_v1 = vrot.slane %v8960_v21, 4  ;;  %v8991_v59 = vsel %vm8364_vm8, %v2227_v36, 0  ;;  %v2489_v19 = vsel %vm9822_vm13, %v2472_v48, 0 }
 0x238   : > { %2683 = vst [vmem:[#allocation3 + $0x1c4] sm:$0xf] %v2624_v14  ;;  %v2382_v25 = vor.u32 %v2380_v20, %v8966_v18  ;;  %v3075_v6 = vrot.slane %v3074_v30, 4  ;;  %v2963_v24 = vsel %vm9820_vm2, %v2946_v54, 0  ;;  %v5754_v38 = vld [vmem:[#allocation3 + $0x12c] sm:$0xf]  ;;  %v2374_v21 = vsel %vm6762_vm0, %v2366_v28, %v2373_v37  ;;  %v4318_v30 = vpop.f32.mrf.mxu3 }
 0x239   : > { %4459 = vmatmul.bf16.gmra.mxu3 %v5215_v27  ;;  %v2629_v15 = vrot.slane %v2628_v26, 4  ;;  %v3084_v9 = vor.u32 %v3083_v43, %v8976_v4  ;;  %v3089_v61 = vrot.slane %v3087_v60, 5  ;;  %v2473_v42 = vld [vmem:[#allocation2 + $0x4c] sm:$0x1]  ;;  %v5243_v32 = vor.u32 %v5754_v38, %v5240_v5  ;;  %2422 = vst [vmem:[#allocation3 + $0x1e0] sm:$0xf] %v2374_v21 }
 0x23a   : > { %v2383_v40 = vsel %vm6762_vm0, %v2375_v1, %v2382_v25  ;;  %v3080_v20 = vsel %vm6661_vm10, %v3075_v6, %v8976_v4  ;;  %v2386_v55 = vshrl.u32 %v8991_v59, 16  ;;  %v2641_v13 = vshll.u32 %v2489_v19, 16  ;;  %v2947_v4 = vld [vmem:[#allocation2 + $0x4c] sm:$0xf]  ;;  %v5768_v37 = vld [vmem:[#allocation3 + $0x198] sm:$0xf0] }
 0x23b   : > { %v2634_v3 = vsel %vm6661_vm10, %v2629_v15, %v8971_v8  ;;  %2423 = vst [vmem:[#allocation3 + $0x204] sm:$0xf] %v2383_v40  ;;  %v3085_v46 = vrot.slane %v3084_v9, 4  ;;  %v2645_v35 = vshrl.u32 %v2489_v19, 16  ;;  %v3097_v36 = vshll.u32 %v2963_v24, 16  ;;  %v4225_v26 = vpop.f32.mrf.mxu1 }
 0x23c   : > { %v3101_v48 = vshrl.u32 %v2963_v24, 16  ;;  %2684 = vst [vmem:[#allocation3 + $0x1e8] sm:$0xf] %v2634_v3  ;;  %v2637_v43 = vrot.slane %v2635_v22, 4  ;;  %v3093_v10 = vrot.slane %v3091_v33, 4  ;;  %v9015_v53 = vadd.f32 %v4318_v30, %v8935_v12  ;;  %v9033_v39 = vpop.f32.mrf.mxu0 }
 0x23d   : > { %4366 = vmatmul.bf16.gmra.mxu1 %v5243_v32  ;;  %v3090_v60 = vsel %vm6661_vm10, %v3085_v46, %v3089_v61  ;;  %3157 = vst [vmem:[#allocation3 + $0x188] sm:$0xf] %v3080_v20  ;;  %v2388_v54 = vrot.slane %v2386_v55, 7  ;;  %v2389_v27 = vshll.u32 %v8991_v59, 16  ;;  %v2490_v28 = vsel %vm8412_vm4, %v2473_v42, 0 }
 0x23e   : > { %3158 = vst [vmem:[#allocation3 + $0x1ac] sm:$0xf] %v3090_v60  ;;  %v2643_v5 = vrot.slane %v2641_v13, 5  ;;  %v2647_v22 = vrot.slane %v2645_v35, 4  ;;  %v9024_v33 = vsel %vm9821_vm14, %v2947_v4, 0  ;;  %v3099_v12 = vrot.slane %v3097_v36, 5  ;;  %v9043_v4 = vpop.f32.mrf.mxu2 }
 0x23f   : > { %v3103_v14 = vrot.slane %v3101_v48, 4  ;;  %v5282_v1 = vld [vmem:[#allocation3 + $0x178] sm:$0xf]  ;;  %v9029_v19 = vld [vmem:[%s9317_s5] ss:$0 sm:$0xff]  ;;  %v2638_v6 = vor.u32 %v2637_v43, %v8971_v8  ;;  %v3094_v24 = vor.u32 %v3093_v10, %v3089_v61  ;;  %v2651_v21 = vshll.u32 %v2490_v28, 16 }
 0x240   : > { %v4226_v59 = vadd.f32 %v9029_v19, %v4225_v26  ;;  %v2440_v25 = vld [vmem:[#allocation2 + $0x48] sm:$0xf]  ;;  %v5283_v15 = vor.u32 %v5768_v37, %v5282_v1  ;;  %v3107_v9 = vshll.u32 %v9024_v33, 16  ;;  %v5248_v42 = vld [vmem:[#allocation3 + $0x154] sm:$0xf0]  ;;  %v2391_v40 = vor.u32 %v2389_v27, %v2388_v54  ;;  %v9047_v28 = vpop.f32.mrf.mxu3 }
 0x241   : > { %v2914_v38 = vld [vmem:[#allocation2 + $0x48] sm:$0xf]  ;;  %2456 = vst [vmem:[#allocation3 + $0x22c] sm:$0xf] %v2440_v25  ;;  %v2648_v20 = vor.u32 %v2647_v22, %v2643_v5  ;;  %v3104_v55 = vor.u32 %v3103_v14, %v3099_v12  ;;  %v5755_v13 = vld [vmem:[#allocation3 + $0x134] sm:$0xf] }
 0x242   : > { %v4275_v32 = vadd.f32 %v4274_v50, %v4226_v59  ;;  %2930 = vst [vmem:[#allocation3 + $0x1f0] sm:$0xf] %v2914_v38  ;;  %v2639_v3 = vrot.slane %v2638_v6, 4  ;;  %v3095_v46 = vrot.slane %v3094_v24, 4  ;;  %v2653_v8 = vrot.slane %v2651_v21, 5 }
 0x243   : > { %v5251_v61 = vor.u32 %v5755_v13, %v5248_v42  ;;  %v9036_v35 = vrot.slane %v3107_v9, 5  ;;  %v5276_v36 = vld [vmem:[#allocation3 + $0x194] sm:$0xf0]  ;;  %v2384_v48 = vrot.slane %v8966_v18, 4  ;;  %v5763_v10 = vld [vmem:[#allocation3 + $0x174] sm:$0xf]  ;;  %v9056_v2 = vpop.f32.mrf.mxu1 }
 0x244   : > { %v2644_v30 = vsel %vm6661_vm10, %v2639_v3, %v2643_v5  ;;  %v3100_v43 = vsel %vm6661_vm10, %v3095_v46, %v3099_v12  ;;  %v2649_v54 = vrot.slane %v2648_v20, 4  ;;  %v3105_v27 = vrot.slane %v3104_v55, 4  ;;  %v5777_v22 = vld [vmem:[#allocation3 + $0x1e0] sm:$0xf0]  ;;  %v5318_v12 = vld [vmem:[#allocation3 + $0x1c0] sm:$0xf] }
 0x245   : > { %2685 = vst [vmem:[#allocation3 + $0x20c] sm:$0xf] %v2644_v30  ;;  %v2392_v60 = vsel %vm6762_vm0, %v2384_v48, %v2391_v40  ;;  %v5279_v18 = vor.u32 %v5763_v10, %v5276_v36  ;;  %v5319_v14 = vor.u32 %v5777_v22, %v5318_v12  ;;  %v5284_v26 = vld [vmem:[#allocation3 + $0x19c] sm:$0xf0]  ;;  %v5764_v6 = vld [vmem:[#allocation3 + $0x17c] sm:$0xf] }
 0x246   : > { %4420 = vmatmul.bf16.gmra.mxu2 %v5283_v15  ;;  %3159 = vst [vmem:[#allocation3 + $0x1d0] sm:$0xf] %v3100_v43  ;;  %v2654_v5 = vsel %vm6661_vm10, %v2649_v54, %v2653_v8  ;;  %v3110_v37 = vsel %vm6661_vm10, %v3105_v27, %v9036_v35  ;;  %v4279_v1 = vpop.f32.mrf.mxu2  ;;  %v5287_v38 = vor.u32 %v5764_v6, %v5284_v26  ;;  %v5312_v21 = vld [vmem:[#allocation3 + $0x1dc] sm:$0xf0]  ;;  %v5772_v42 = vld [vmem:[#allocation3 + $0x1bc] sm:$0xf] }
 0x247   : > { %2424 = vst [vmem:[#allocation3 + $0x228] sm:$0xf] %v2392_v60  ;;  %v9054_v50 = vpop.f32.mrf.mxu0  ;;  %v5315_v40 = vor.u32 %v5772_v42, %v5312_v21  ;;  %v5320_v48 = vld [vmem:[#allocation3 + $0x1e4] sm:$0xf0]  ;;  %v5773_v10 = vld [vmem:[#allocation3 + $0x1c4] sm:$0xf] }
 0x248   : > { %2686 = vst [vmem:[#allocation3 + $0x230] sm:$0xf] %v2654_v5  ;;  %v5786_v3 = vld [vmem:[#allocation3 + $0x228] sm:$0xf0]  ;;  %v5323_v60 = vor.u32 %v5773_v10, %v5320_v48  ;;  %v2948_v21 = vld [vmem:[#allocation2 + $0x50] sm:$0xf] }
 0x249   : > { %4464 = vmatmul.bf16.gmra.mxu3 %v5251_v61  ;;  %3160 = vst [vmem:[#allocation3 + $0x1f4] sm:$0xf] %v3110_v37  ;;  %v5354_v61 = vld [vmem:[#allocation3 + $0x208] sm:$0xf]  ;;  %v5781_v37 = vld [vmem:[#allocation3 + $0x204] sm:$0xf] }
 0x24a   : > { %v5355_v36 = vor.u32 %v5786_v3, %v5354_v61  ;;  %v5868_v43 = vld [vmem:[#allocation10 + $0x38] sm:$0xff]  ;;  %v2949_v10 = vld [vmem:[#allocation2 + $0x54] sm:$0x1]  ;;  %v5743_v11 = vld [vmem:[#allocation3 + $0xd0] sm:$0xf0] }
 0x24b   : > { %4740 = vmatpush.bf16.msra.mxu3 %v5868_v43 }
 0x24c   : > { %v5782_v61 = vld [vmem:[#allocation3 + $0x20c] sm:$0xf] }
 0x24d   : > { %4371 = vmatmul.bf16.gmra.mxu1 %v5279_v18 }
 0x24e   : > { %v4281_v55 = vpop.f32.mrf.mxu2  ;;  %v5348_v18 = vld [vmem:[#allocation3 + $0x224] sm:$0xf0] }
 0x24f   : > { %v4323_v59 = vpop.f32.mrf.mxu3  ;;  %v9058_v25 = vpop.f32.mrf.mxu0  ;;  %v5351_v12 = vor.u32 %v5781_v37, %v5348_v18  ;;  %v5356_v3 = vld [vmem:[#allocation3 + $0x22c] sm:$0xf0]  ;;  %v5729_v37 = vld [vmem:[#allocation3 + $0x64] sm:$0xf] }
 0x250   : > { %v9060_v24 = vadd.f32 %v4323_v59, %v4275_v32  ;;  %v5359_v48 = vor.u32 %v5782_v61, %v5356_v3 }
 0x252   : > { %v4230_v15 = vpop.f32.mrf.mxu1 }
 0x253   : > { %v4231_v9 = vadd.f32 %v9029_v19, %v4230_v15 }
 0x255   : > { %v4280_v20 = vadd.f32 %v4279_v1, %v4231_v9  ;;  %v5154_v9 = vld [vmem:[#allocation3 + $0x68] sm:$0xf] }
 0x256   : > { %4425 = vmatmul.bf16.gmra.mxu2 %v5319_v14 }
 0x257   : > { %v9063_v13 = vpop.f32.mrf.mxu0  ;;  %v9065_v8 = vpop.f32.mrf.mxu3 }
 0x259   : > { %4469 = vmatmul.bf16.gmra.mxu3 %v5287_v38  ;;  %v5734_v38 = vld [vmem:[#allocation3 + $0x88] sm:$0xf0] }
 0x25a   : > { %v4232_v46 = vpop.f32.mrf.mxu1 }
 0x25b   : > { %v4233_v32 = vadd.f32 %v9029_v19, %v4232_v46  ;;  %v2965_v46 = vsel %vm9822_vm13, %v2948_v21, 0  ;;  %v2915_v21 = vld [vmem:[#allocation2 + $0x4c] sm:$0xf] }
 0x25c   : > { %2931 = vst [vmem:[#allocation3 + $0x214] sm:$0xf] %v2915_v21 }
 0x25d   : > { %4376 = vmatmul.bf16.gmra.mxu1 %v5315_v40  ;;  %v9068_v30 = vadd.f32 %v4281_v55, %v4233_v32  ;;  %v5155_v40 = vor.u32 %v5734_v38, %v5154_v9  ;;  %v5867_v32 = vld [vmem:[#allocation10 + $0x30] sm:$0xff] }
 0x25e   : > { %4741 = vmatpush.bf16.msra.mxu3 %v5867_v32 }
 0x25f   : > { %v9070_v54 = vpop.f32.mrf.mxu0 }
 0x260   : > { %v4284_v27 = vpop.f32.mrf.mxu2 }
 0x264   : > { %v4235_v5 = vpop.f32.mrf.mxu1 }
 0x265   : > { %v4236_v22 = vadd.f32 %v9029_v19, %v4235_v5  ;;  %v4328_v14 = vpop.f32.mrf.mxu3  ;;  %v5148_v5 = vld [vmem:[#allocation3 + $0x84] sm:$0xf0] }
 0x266   : > { %4430 = vmatmul.bf16.gmra.mxu2 %v5355_v36  ;;  %v9073_v26 = vadd.f32 %v4328_v14, %v4280_v20  ;;  %v3111_v36 = vshrl.u32 %v9024_v33, 16  ;;  %v5151_v14 = vor.u32 %v5729_v37, %v5148_v5 }
 0x267   : > { %v4285_v1 = vadd.f32 %v4284_v27, %v4236_v22  ;;  %v3121_v27 = vshrl.u32 %v2965_v46, 16 }
 0x268   : > { %v9075_v59 = vpop.f32.mrf.mxu0  ;;  %v4286_v6 = vpop.f32.mrf.mxu2  ;;  %v3113_v22 = vrot.slane %v3111_v36, 4 }
 0x269   : > { %4474 = vmatmul.bf16.gmra.mxu3 %v5323_v60  ;;  %v3117_v60 = vshll.u32 %v2965_v46, 16 }
 0x26a   : > { %v3114_v3 = vor.u32 %v3113_v22, %v9036_v35 }
 0x26b   : > { %v3119_v33 = vrot.slane %v3117_v60, 5 }
 0x26c   : > { %v4237_v15 = vpop.f32.mrf.mxu1  ;;  %v3115_v60 = vrot.slane %v3114_v3, 4 }
 0x26d   : > { %4381 = vmatmul.bf16.gmra.mxu1 %v5351_v12  ;;  %v4238_v42 = vadd.f32 %v9029_v19, %v4237_v15  ;;  %v9078_v55 = vpop.f32.mrf.mxu3  ;;  %v2966_v12 = vsel %vm8412_vm4, %v2949_v10, 0  ;;  %v2916_v15 = vld [vmem:[#allocation2 + $0x50] sm:$0xf] }
 0x26e   : > { %2932 = vst [vmem:[#allocation3 + $0x238] sm:$0xf] %v2916_v15  ;;  %v3120_v5 = vsel %vm6661_vm10, %v3115_v60, %v3119_v33  ;;  %v5226_v60 = vld [vmem:[#allocation3 + $0xf8] sm:$0xf] }
 0x26f   : > { %v9082_v20 = vadd.f32 %v4286_v6, %v4238_v42  ;;  %v3123_v6 = vrot.slane %v3121_v27, 4  ;;  %v3127_v42 = vshll.u32 %v2966_v12, 16  ;;  %v5866_v27 = vld [vmem:[#allocation10 + $0x28] sm:$0xff]  ;;  %3161 = vst [vmem:[#allocation3 + $0x218] sm:$0xf] %v3120_v5 }
 0x270   : > { %v9085_v43 = vpop.f32.mrf.mxu0  ;;  %4742 = vmatpush.bf16.msra.mxu3 %v5866_v27  ;;  %v5184_v12 = vld [vmem:[#allocation3 + $0xcc] sm:$0xf0]  ;;  %v5864_v27 = vld [vmem:[#allocation10 + $0x18] sm:$0xff] }
 0x271   : > { %v3124_v46 = vor.u32 %v3123_v6, %v3119_v33  ;;  %v3129_v61 = vrot.slane %v3127_v42, 5  ;;  %v5738_v6 = vld [vmem:[#allocation3 + $0xac] sm:$0xf] }
 0x272   : > { %v5187_v15 = vor.u32 %v5738_v6, %v5184_v12  ;;  %v5747_v6 = vld [vmem:[#allocation3 + $0xf4] sm:$0xf] }
 0x273   : > { %v9087_v18 = vpop.f32.mrf.mxu2 }
 0x274   : > { %4743 = vmatpush.bf16.msra.mxu3 %v5865_v52 }
 0x275   : > { %v4333_v38 = vpop.f32.mrf.mxu3 }
 0x276   : > { %4596 = vmatmul.bf16.vlgmr.msra.gmra.mxu2 %v5155_v40  ;;  %v9093_v9 = vadd.f32 %v4333_v38, %v4285_v1  ;;  %v3125_v1 = vrot.slane %v3124_v46, 4  ;;  %v4208_v38 = vadd.f32 %v9029_v19, %v8674_v7 }
 0x278   : > { %v9089_v0 = vpop.f32.mrf.mxu1  ;;  %v3130_v37 = vsel %vm6661_vm10, %v3125_v1, %v3129_v61  ;;  %v4257_v42 = vadd.f32 %v8672_v56, %v4208_v38  ;;  %v9824_v61 = vld [vmem:[#allocation26_spill] sm:$0xff]  ;;  %4744 = vmatpush.bf16.msra.mxu3 %v5864_v27  ;;  %v4213_v38 = vadd.f32 %v9029_v19, %v8781_v44 }
 0x279   : > { %4479 = vmatmul.bf16.gmra.mxu3 %v5359_v48  ;;  %v5190_v48 = vld [vmem:[#allocation3 + $0xb0] sm:$0xf]  ;;  %3162 = vst [vmem:[#allocation3 + $0x23c] sm:$0xf] %v3130_v37  ;;  %v5863_v37 = vld [vmem:[#allocation10 + $0x10] sm:$0xff] }
 0x27a   : > { %v5191_v10 = vor.u32 %v5743_v11, %v5190_v48  ;;  %v5752_v11 = vld [vmem:[#allocation3 + $0x118] sm:$0xf0]  ;;  %v4306_v48 = vadd.f32 %v9824_v61, %v4257_v42  ;;  %v5861_v61 = vld [vmem:[#allocation10] sm:$0xff] }
 0x27b   : > { %v9095_v40 = vpop.f32.mrf.mxu0  ;;  %v9098_v32 = vpop.f32.mrf.mxu2  ;;  %v5227_v7 = vor.u32 %v5752_v11, %v5226_v60  ;;  %v5862_v42 = vld [vmem:[#allocation10 + $0x8] sm:$0xff] }
 0x27c   : > { %4745 = vmatpush.bf16.msra.mxu3 %v5863_v37 }
 0x27d   : > { %4547 = vmatmul.bf16.vlgmr.msra.gmra.mxu1 %v5151_v14  ;;  %v9121_v12 = vpop.f32.mrf.mxu3 }
 0x280   : > { %v9100_v36 = vpop.f32.mrf.mxu1  ;;  %4746 = vmatpush.bf16.msra.mxu3 %v5862_v42 }
 0x283   : > { %v9106_v35 = vpop.f32.mrf.mxu0 }
 0x284   : > { %4747 = vmatpush.bf16.msra.mxu3 %v5861_v61  ;;  %v4218_v61 = vadd.f32 %v9029_v19, %v8861_v41 }
 0x286   : > { %4601 = vmatmul.bf16.gmra.mxu2 %v5191_v10 }
 0x287   : > { %v4401_v22 = vpop.f32.mrf.mxu2 }
 0x28a   : > { %v4352_v14 = vpop.f32.mrf.mxu1 }
 0x28b   : > { %v4353_v21 = vadd.f32 %v4352_v14, %v8681_v58 }
 0x28c   : > { %v4445_v27 = vpop.f32.mrf.mxu3 }
 0x28d   : > { %4552 = vmatmul.bf16.gmra.mxu1 %v5187_v15  ;;  %v9111_v33 = vadd.f32 %v4401_v22, %v4353_v21  ;;  %v9114_v3 = vpop.f32.mrf.mxu0  ;;  %v5220_v22 = vld [vmem:[#allocation3 + $0x114] sm:$0xf0] }
 0x28e   : > { %9823 = vst [vmem:[#allocation28_spill] sm:$0xff] %v9114_v3  ;;  %v5223_v15 = vor.u32 %v5747_v6, %v5220_v22  ;;  %v5756_v3 = vld [vmem:[#allocation3 + $0x13c] sm:$0xf] }
 0x28f   : > { %v4403_v46 = vpop.f32.mrf.mxu2 }
 0x292   : > { %v4354_v10 = vpop.f32.mrf.mxu1 }
 0x293   : > { %v4355_v1 = vadd.f32 %v4354_v10, %v4306_v48  ;;  %v5761_v10 = vld [vmem:[#allocation3 + $0x160] sm:$0xf0] }
 0x295   : > { %v9117_v58 = vadd.f32 %v4403_v46, %v4355_v1  ;;  %v9119_v5 = vpop.f32.mrf.mxu0  ;;  %v4262_v46 = vadd.f32 %v8784_v23, %v4213_v38  ;;  %v9826_v1 = vld [vmem:[#allocation25_spill] sm:$0xff]  ;;  %v9827_v23 = vld [vmem:[#allocation27_spill] sm:$0xff]  ;;  %v9828_v38 = vld [vmem:[#allocation30_spill] sm:$0xff] }
 0x296   : > { %4606 = vmatmul.bf16.gmra.mxu2 %v5227_v7  ;;  %9825 = vst [vmem:[#allocation29_spill] sm:$0xff] %v9119_v5  ;;  %v4203_v44 = vadd.f32 %v9029_v19, %v9826_v1 }
 0x297   : > { %v4406_v56 = vpop.f32.mrf.mxu2  ;;  %v4311_v60 = vadd.f32 %v8848_v51, %v4262_v46  ;;  %v5256_v46 = vld [vmem:[#allocation3 + $0x15c] sm:$0xf0] }
 0x29a   : > { %v4357_v14 = vpop.f32.mrf.mxu1 }
 0x29b   : > { %v4358_v21 = vadd.f32 %v4357_v14, %v8798_v47  ;;  %v5262_v47 = vld [vmem:[#allocation3 + $0x140] sm:$0xf]  ;;  %v4252_v14 = vadd.f32 %v9827_v23, %v4203_v44  ;;  %v4447_v44 = vpop.f32.mrf.mxu3 }
 0x29c   : > { %v5263_v22 = vor.u32 %v5761_v10, %v5262_v47  ;;  %v5259_v10 = vor.u32 %v5756_v3, %v5256_v46 }
 0x29d   : > { %4557 = vmatmul.bf16.gmra.mxu1 %v5223_v15  ;;  %v9126_v52 = vadd.f32 %v4406_v56, %v4358_v21  ;;  %v4301_v21 = vadd.f32 %v9828_v38, %v4252_v14  ;;  %v9829_v15 = vld [vmem:[#allocation32_spill] sm:$0xff] }
 0x29e   : > { %v4348_v51 = vadd.f32 %v9089_v0, %v9829_v15  ;;  %v5770_v14 = vld [vmem:[#allocation3 + $0x1a8] sm:$0xf0] }
 0x29f   : > { %v4408_v48 = vpop.f32.mrf.mxu2  ;;  %v4350_v1 = vadd.f32 %v9100_v36, %v4301_v21 }
 0x2a0   : > { %v4543_v11 = vpop.f32.mrf.mxu0 }
 0x2a1   : > { %v4399_v0 = vadd.f32 %v9098_v32, %v4350_v1 }
 0x2a2   : > { %v4359_v7 = vpop.f32.mrf.mxu1 }
 0x2a3   : > { %v4360_v37 = vadd.f32 %v4359_v7, %v4311_v60  ;;  %v4397_v60 = vadd.f32 %v9087_v18, %v4348_v51  ;;  %v9152_v51 = vpop.f32.mrf.mxu3 }
 0x2a5   : > { %v9132_v56 = vadd.f32 %v4408_v48, %v4360_v37  ;;  %v4446_v47 = vadd.f32 %v4445_v27, %v4397_v60  ;;  %v4267_v37 = vadd.f32 %v8896_v34, %v4218_v61 }
 0x2a6   : > { %4611 = vmatmul.bf16.gmra.mxu2 %v5263_v22  ;;  %v4448_v22 = vadd.f32 %v4447_v44, %v4399_v0 }
 0x2a7   : > { %v4316_v41 = vadd.f32 %v8978_v29, %v4267_v37  ;;  %v5292_v29 = vld [vmem:[#allocation3 + $0x1a4] sm:$0xf0]  ;;  %v5779_v37 = vld [vmem:[#allocation3 + $0x1f0] sm:$0xf0] }
 0x2a8   : > { %v4545_v6 = vpop.f32.mrf.mxu0  ;;  %v4497_v15 = vadd.f32 %v8873_v45, %v4448_v22 }
 0x2a9   : > { %v4411_v42 = vpop.f32.mrf.mxu2 }
 0x2aa   : > { %v4362_v5 = vpop.f32.mrf.mxu1  ;;  %v4546_v32 = vadd.f32 %v4545_v6, %v4497_v15 }
 0x2ab   : > { %v4363_v48 = vadd.f32 %v4362_v5, %v8912_v31  ;;  %v4495_v31 = vadd.f32 %v8824_v63, %v4446_v47  ;;  %v5298_v5 = vld [vmem:[#allocation3 + $0x188] sm:$0xf]  ;;  %v4452_v22 = vpop.f32.mrf.mxu3 }
 0x2ac   : > { %v5299_v38 = vor.u32 %v5770_v14, %v5298_v5  ;;  %v5334_v14 = vld [vmem:[#allocation3 + $0x1d0] sm:$0xf] }
 0x2ad   : > { %4562 = vmatmul.bf16.gmra.mxu1 %v5259_v10  ;;  %v9143_v7 = vadd.f32 %v4411_v42, %v4363_v48  ;;  %v4544_v21 = vadd.f32 %v4543_v11, %v4495_v31  ;;  %v5765_v10 = vld [vmem:[#allocation3 + $0x184] sm:$0xf]  ;;  %v4223_v11 = vadd.f32 %v9029_v19, %v8982_v57  ;;  %v5335_v31 = vor.u32 %v5779_v37, %v5334_v14 }
 0x2ae   : > { %v5295_v60 = vor.u32 %v5765_v10, %v5292_v29  ;;  %v5364_v10 = vld [vmem:[#allocation3 + $0x234] sm:$0xf0] }
 0x2af   : > { %v4272_v47 = vadd.f32 %v8980_v62, %v4223_v11 }
 0x2b0   : > { %v4592_v36 = vpop.f32.mrf.mxu0 }
 0x2b1   : > { %v4413_v23 = vpop.f32.mrf.mxu2  ;;  %v4593_v34 = vadd.f32 %v4592_v36, %v4544_v21  ;;  %v4321_v36 = vadd.f32 %v9047_v28, %v4272_v47 }
 0x2b2   : > { %v4364_v3 = vpop.f32.mrf.mxu1 }
 0x2b3   : > { %v4365_v18 = vadd.f32 %v4364_v3, %v4316_v41  ;;  %v4632_v61 = vmax.f32 %v4593_v34, 0.0  ;;  %v5328_v3 = vld [vmem:[#allocation3 + $0x1ec] sm:$0xf0]  ;;  %v4455_v62 = vpop.f32.mrf.mxu3 }
 0x2b5   : > { %v9150_v27 = vadd.f32 %v4413_v23, %v4365_v18  ;;  %v5774_v18 = vld [vmem:[#allocation3 + $0x1cc] sm:$0xf] }
 0x2b6   : > { %4616 = vmatmul.bf16.gmra.mxu2 %v5299_v38  ;;  %v4228_v38 = vadd.f32 %v9029_v19, %v9056_v2  ;;  %v5331_v15 = vor.u32 %v5774_v18, %v5328_v3  ;;  %v4336_v3 = vadd.f32 %v9121_v12, %v9082_v20 }
 0x2b8   : > { %v4594_v42 = vpop.f32.mrf.mxu0 }
 0x2b9   : > { %v4595_v46 = vadd.f32 %v4594_v42, %v4546_v32  ;;  %v4416_v1 = vpop.f32.mrf.mxu2  ;;  %v4277_v32 = vadd.f32 %v9043_v4, %v4228_v38  ;;  %v5370_v42 = vld [vmem:[#allocation3 + $0x218] sm:$0xf] }
 0x2ba   : > { %v4367_v48 = vpop.f32.mrf.mxu1 }
 0x2bb   : > { %v4633_v63 = vmax.f32 %v4595_v46, 0.0  ;;  %v4368_v45 = vadd.f32 %v4367_v48, %v9015_v53  ;;  %v5788_v46 = vld [vmem:[#allocation3 + $0x238] sm:$0xf0]  ;;  %v4457_v48 = vpop.f32.mrf.mxu3 }
 0x2bd   : > { %v4648_v44 = vpack.c.bf16 %v4633_v63, %v4632_v61  ;;  %4567 = vmatmul.bf16.gmra.mxu1 %v5295_v60  ;;  %v9157_v6 = vadd.f32 %v4416_v1, %v4368_v45  ;;  %v4326_v1 = vadd.f32 %v9065_v8, %v4277_v32  ;;  %v5371_v63 = vor.u32 %v5788_v46, %v5370_v42 }
 0x2be   : > { %v4331_v8 = vadd.f32 %v9078_v55, %v9068_v30  ;;  %v4451_v55 = vadd.f32 %v9152_v51, %v9111_v33  ;;  %v4453_v32 = vadd.f32 %v4452_v22, %v9117_v58  ;;  %v4456_v33 = vadd.f32 %v4455_v62, %v9126_v52 }
 0x2bf   : > { %4748 = vmatmul.bf16.vlgmr.msra.gmra.mxu3 %v4648_v44  ;;  %v4458_v58 = vadd.f32 %v4457_v48, %v9132_v56 }
 0x2c1   : > { %v4418_v0 = vpop.f32.mrf.mxu2 }
 0x2c2   : > { %v4369_v23 = vpop.f32.mrf.mxu1 }
 0x2c3   : > { %v4370_v41 = vadd.f32 %v4369_v23, %v4321_v36  ;;  %v4460_v44 = vpop.f32.mrf.mxu3 }
 0x2c4   : > { %v4461_v52 = vadd.f32 %v4460_v44, %v9143_v7 }
 0x2c5   : > { %v9161_v57 = vadd.f32 %v4418_v0, %v4370_v41 }
 0x2c6   : > { %4621 = vmatmul.bf16.gmra.mxu2 %v5335_v31  ;;  %v4510_v56 = vadd.f32 %v9054_v50, %v4461_v52 }
 0x2c9   : > { %v4421_v53 = vpop.f32.mrf.mxu2 }
 0x2ca   : > { %v4372_v5 = vpop.f32.mrf.mxu1 }
 0x2cb   : > { %v4373_v21 = vadd.f32 %v4372_v5, %v9060_v24  ;;  %v5783_v24 = vld [vmem:[#allocation3 + $0x214] sm:$0xf]  ;;  %v4462_v14 = vpop.f32.mrf.mxu3 }
 0x2cc   : > { %v5367_v60 = vor.u32 %v5783_v24, %v5364_v10 }
 0x2cd   : > { %4572 = vmatmul.bf16.gmra.mxu1 %v5331_v15  ;;  %v9166_v28 = vadd.f32 %v4421_v53, %v4373_v21 }
 0x2d1   : > { %v4423_v34 = vpop.f32.mrf.mxu2 }
 0x2d2   : > { %v4374_v29 = vpop.f32.mrf.mxu1 }
 0x2d3   : > { %v4375_v61 = vadd.f32 %v4374_v29, %v4326_v1  ;;  %v4465_v18 = vpop.f32.mrf.mxu3  ;;  %v4502_v1 = vadd.f32 %v8964_v49, %v4453_v32 }
 0x2d4   : > { %v4466_v44 = vadd.f32 %v4465_v18, %v9157_v6 }
 0x2d5   : > { %v9170_v19 = vadd.f32 %v4423_v34, %v4375_v61 }
 0x2d6   : > { %4626 = vmatmul.bf16.gmra.mxu2 %v5371_v63  ;;  %v4515_v50 = vadd.f32 %v9063_v13, %v4466_v44 }
 0x2d9   : > { %v4426_v2 = vpop.f32.mrf.mxu2 }
 0x2da   : > { %v4377_v11 = vpop.f32.mrf.mxu1 }
 0x2db   : > { %v4378_v45 = vadd.f32 %v4377_v11, %v9073_v26  ;;  %v4467_v34 = vpop.f32.mrf.mxu3 }
 0x2dd   : > { %4577 = vmatmul.bf16.gmra.mxu1 %v5367_v60  ;;  %v9173_v4 = vadd.f32 %v4426_v2, %v4378_v45  ;;  %v4507_v60 = vadd.f32 %v9033_v39, %v4458_v58 }
 0x2e1   : > { %v4428_v47 = vpop.f32.mrf.mxu2 }
 0x2e2   : > { %v4379_v0 = vpop.f32.mrf.mxu1 }
 0x2e3   : > { %v4380_v37 = vadd.f32 %v4379_v0, %v4331_v8  ;;  %v4470_v63 = vpop.f32.mrf.mxu3 }
 0x2e4   : > { %v4471_v18 = vadd.f32 %v4470_v63, %v9166_v28 }
 0x2e5   : > { %v9177_v36 = vadd.f32 %v4428_v47, %v4380_v37 }
 0x2e9   : > { %v4431_v23 = vpop.f32.mrf.mxu2 }
 0x2ea   : > { %v4382_v41 = vpop.f32.mrf.mxu1 }
 0x2eb   : > { %v4383_v31 = vadd.f32 %v4382_v41, %v9093_v9  ;;  %v4500_v9 = vadd.f32 %v8915_v16, %v4451_v55  ;;  %v4505_v16 = vadd.f32 %v8995_v17, %v4456_v33  ;;  %v4472_v49 = vpop.f32.mrf.mxu3  ;;  %v4463_v17 = vadd.f32 %v4462_v14, %v9150_v27 }
 0x2ec   : > { %v4468_v27 = vadd.f32 %v4467_v34, %v9161_v57  ;;  %v4473_v13 = vadd.f32 %v4472_v49, %v9170_v19  ;;  %v4520_v34 = vadd.f32 %v9075_v59, %v4471_v18 }
 0x2ed   : > { %v9180_v53 = vadd.f32 %v4431_v23, %v4383_v31  ;;  %v4512_v39 = vadd.f32 %v9058_v25, %v4463_v17 }
 0x2f1   : > { %v4433_v26 = vpop.f32.mrf.mxu2 }
 0x2f2   : > { %v4384_v5 = vpop.f32.mrf.mxu1 }
 0x2f3   : > { %v4385_v38 = vadd.f32 %v4384_v5, %v4336_v3  ;;  %v4475_v3 = vpop.f32.mrf.mxu3 }
 0x2f5   : > { %v9184_v21 = vadd.f32 %v4433_v26, %v4385_v38 }
 0x2f9   : > { %v4597_v30 = vpop.f32.mrf.mxu2 }
 0x2fa   : > { %v4548_v15 = vpop.f32.mrf.mxu1 }
 0x2fb   : > { %v4549_v42 = vadd.f32 %v4548_v15, %v4500_v9  ;;  %v4477_v15 = vpop.f32.mrf.mxu3 }
 0x2fd   : > { %v4598_v12 = vadd.f32 %v4597_v30, %v4549_v42 }
 0x2ff   : > { %v4634_v2 = vmax.f32 %v4598_v12, 0.0  ;;  %v4517_v12 = vadd.f32 %v9070_v54, %v4468_v27 }
 0x301   : > { %v4599_v46 = vpop.f32.mrf.mxu2 }
 0x302   : > { %v4550_v20 = vpop.f32.mrf.mxu1 }
 0x303   : > { %v4551_v29 = vadd.f32 %v4550_v20, %v4502_v1  ;;  %v4480_v14 = vpop.f32.mrf.mxu3 }
 0x305   : > { %v4600_v61 = vadd.f32 %v4599_v46, %v4551_v29 }
 0x307   : > { %v4635_v24 = vmax.f32 %v4600_v61, 0.0 }
 0x309   : > { %v4602_v10 = vpop.f32.mrf.mxu2  ;;  %v4649_v51 = vpack.c.bf16 %v4635_v24, %v4634_v2 }
 0x30a   : > { %v4553_v11 = vpop.f32.mrf.mxu1 }
 0x30b   : > { %4753 = vmatmul.bf16.gmra.mxu3 %v4649_v51  ;;  %v4554_v22 = vadd.f32 %v4553_v11, %v4505_v16  ;;  %v4482_v51 = vpop.f32.mrf.mxu3 }
 0x30d   : > { %v4603_v8 = vadd.f32 %v4602_v10, %v4554_v22  ;;  %v4522_v22 = vadd.f32 %v9085_v43, %v4473_v13  ;;  %v4476_v43 = vadd.f32 %v4475_v3, %v9173_v4 }
 0x30f   : > { %v4636_v23 = vmax.f32 %v4603_v8, 0.0 }
 0x311   : > { %v4604_v45 = vpop.f32.mrf.mxu2 }
 0x312   : > { %v4555_v47 = vpop.f32.mrf.mxu1 }
 0x313   : > { %v4556_v0 = vadd.f32 %v4555_v47, %v4507_v60  ;;  %v375_v60 = vld [vmem:[%s6619_s14 + $0xc] sm:$0xff]  }
 0x314   : > { %v4672_v19 = vunpack.c.l.bf16 %v375_v60 }
 0x315   : > { %v4605_v37 = vadd.f32 %v4604_v45, %v4556_v0  ;;  %v9210_v45 = vld [vmem:[%s9830_s20] ss:$0 sm:$0xff]  ;;  %s6285_s20 = scalar_lea.hbm %s9834_s2, 256 }
 0x317   : > { %v4637_v41 = vmax.f32 %v4605_v37, 0.0  ;;  %v4673_v37 = vunpack.c.h.bf16 %v375_v60 }
 0x319   : > { %v4607_v31 = vpop.f32.mrf.mxu2  ;;  %v4650_v62 = vpack.c.bf16 %v4637_v41, %v4636_v23 }
 0x31a   : > { %v4558_v26 = vpop.f32.mrf.mxu1 }
 0x31b   : > { %4758 = vmatmul.bf16.gmra.mxu3 %v4650_v62  ;;  %v4559_v48 = vadd.f32 %v4558_v26, %v4510_v56  ;;  %v4478_v56 = vadd.f32 %v4477_v15, %v9177_v36  ;;  %v4481_v36 = vadd.f32 %v4480_v14, %v9180_v53 }
 0x31d   : > { %v4608_v30 = vadd.f32 %v4607_v31, %v4559_v48  ;;  %v4525_v48 = vadd.f32 %v9095_v40, %v4476_v43  ;;  %v4527_v3 = vadd.f32 %v9106_v35, %v4478_v56  ;;  %v9831_v35 = vld [vmem:[#allocation28_spill] sm:$0xff] }
 0x31e   : > { %v4530_v27 = vadd.f32 %v9831_v35, %v4481_v36 }
 0x31f   : > { %v4638_v9 = vmax.f32 %v4608_v30, 0.0 }
 0x321   : > { %v4609_v5 = vpop.f32.mrf.mxu2 }
 0x322   : > { %v4560_v38 = vpop.f32.mrf.mxu1 }
 0x323   : > { %v4561_v55 = vadd.f32 %v4560_v38, %v4512_v39 }
 0x325   : > { %v4610_v32 = vadd.f32 %v4609_v5, %v4561_v55 }
 0x327   : > { %v4639_v42 = vmax.f32 %v4610_v32, 0.0 }
 0x329   : > { %v4612_v7 = vpop.f32.mrf.mxu2  ;;  %v4651_v46 = vpack.c.bf16 %v4639_v42, %v4638_v9 }
 0x32a   : > { %v4563_v1 = vpop.f32.mrf.mxu1 }
 0x32b   : > { %4763 = vmatmul.bf16.gmra.mxu3 %v4651_v46  ;;  %v4564_v20 = vadd.f32 %v4563_v1, %v4515_v50  ;;  %v4483_v1 = vadd.f32 %v4482_v51, %v9184_v21 }
 0x32d   : > { %v4613_v61 = vadd.f32 %v4612_v7, %v4564_v20  ;;  %v9832_v20 = vld [vmem:[#allocation29_spill] sm:$0xff] }
 0x32f   : > { %v4640_v10 = vmax.f32 %v4613_v61, 0.0 }
 0x331   : > { %v4614_v25 = vpop.f32.mrf.mxu2 }
 0x332   : > { %v4565_v29 = vpop.f32.mrf.mxu1 }
 0x333   : > { %v4566_v2 = vadd.f32 %v4565_v29, %v4517_v12 }
 0x335   : > { %v4615_v24 = vadd.f32 %v4614_v25, %v4566_v2  ;;  %v4532_v25 = vadd.f32 %v9832_v20, %v4483_v1  ;;  %v385_v1 = vld [vmem:[%s6619_s14 + $0x34] sm:$0xff]  }
 0x336   : > { %v4682_v35 = vunpack.c.l.bf16 %v385_v1 }
 0x337   : > { %v4641_v33 = vmax.f32 %v4615_v24, 0.0 }
 0x339   : > { %v4617_v6 = vpop.f32.mrf.mxu2  ;;  %v4652_v11 = vpack.c.bf16 %v4641_v33, %v4640_v10 }
 0x33a   : > { %v4568_v57 = vpop.f32.mrf.mxu1 }
 0x33b   : > { %4768 = vmatmul.bf16.gmra.mxu3 %v4652_v11  ;;  %v4569_v58 = vadd.f32 %v4568_v57, %v4520_v34 }
 0x33d   : > { %v4618_v63 = vadd.f32 %v4617_v6, %v4569_v58  ;;  %v377_v6 = vld [vmem:[%s6619_s14 + $0x14] sm:$0xff]  }
 0x33e   : > { %v4674_v18 = vunpack.c.l.bf16 %v377_v6  ;;  %v4675_v51 = vunpack.c.h.bf16 %v377_v6 }
 0x33f   : > { %v4642_v49 = vmax.f32 %v4618_v63, 0.0 }
 0x341   : > { %v4619_v54 = vpop.f32.mrf.mxu2 }
 0x342   : > { %v4749_v16 = vpop.f32.mrf.mxu3  ;;  %v4570_v28 = vpop.f32.mrf.mxu1 }
 0x343   : > { %v4571_v47 = vadd.f32 %v4570_v28, %v4522_v22  ;;  %v4750_v59 = vadd.f32 %v9210_v45, %v4749_v16  ;;  %v379_v28 = vld [vmem:[%s6619_s14 + $0x1c] sm:$0xff]  }
 0x344   : > { %v4676_v63 = vunpack.c.l.bf16 %v379_v28 }
 0x345   : > { %v4620_v8 = vadd.f32 %v4619_v54, %v4571_v47  ;;  %v4789_v52 = vadd.f32 %v4750_v59, %v4672_v19  ;;  %v4677_v47 = vunpack.c.h.bf16 %v379_v28 }
 0x347   : > { %v4643_v0 = vmax.f32 %v4620_v8, 0.0  ;;  %v4805_v5 = vmax.f32 %v4789_v52, 0.0 }
 0x349   : > { %v4622_v23 = vpop.f32.mrf.mxu2  ;;  %v4653_v31 = vpack.c.bf16 %v4643_v0, %v4642_v49 }
 0x34a   : > { %v4751_v41 = vpop.f32.mrf.mxu3  ;;  %v4573_v26 = vpop.f32.mrf.mxu1 }
 0x34b   : > { %v4752_v62 = vadd.f32 %v9210_v45, %v4751_v41  ;;  %4773 = vmatmul.bf16.gmra.mxu3 %v4653_v31  ;;  %v4574_v38 = vadd.f32 %v4573_v26, %v4525_v48  ;;  %v381_v41 = vld [vmem:[%s6619_s14 + $0x24] sm:$0xff]  }
 0x34c   : > { %v4678_v31 = vunpack.c.l.bf16 %v381_v41 }
 0x34d   : > { %v4790_v17 = vadd.f32 %v4752_v62, %v4673_v37  ;;  %v4623_v32 = vadd.f32 %v4622_v23, %v4574_v38  ;;  %v4679_v62 = vunpack.c.h.bf16 %v381_v41 }
 0x34f   : > { %v4806_v39 = vmax.f32 %v4790_v17, 0.0  ;;  %v4644_v7 = vmax.f32 %v4623_v32, 0.0 }
 0x351   : > { %v5927_v30 = vpack.c.bf16 %v4806_v39, %v4805_v5  ;;  %v4624_v4 = vpop.f32.mrf.mxu2 }
 0x352   : > { %v4575_v55 = vpop.f32.mrf.mxu1 }
 0x353   : > { %5928 = vst [vmem:[%s9222_s6] sm:$0xff] %v5927_v30   ;;  %v4576_v9 = vadd.f32 %v4575_v55, %v4527_v3 }
 0x355   : > { %v4625_v42 = vadd.f32 %v4624_v4, %v4576_v9  ;;  %v383_v4 = vld [vmem:[%s6619_s14 + $0x2c] sm:$0xff]  }
 0x356   : > { %v4680_v3 = vunpack.c.l.bf16 %v383_v4  ;;  %v4681_v32 = vunpack.c.h.bf16 %v383_v4 }
 0x357   : > { %v4645_v44 = vmax.f32 %v4625_v42, 0.0 }
 0x359   : > { %v4654_v40 = vpack.c.bf16 %v4645_v44, %v4644_v7  ;;  %v4627_v15 = vpop.f32.mrf.mxu2 }
 0x35a   : > { %v4578_v46 = vpop.f32.mrf.mxu1 }
 0x35b   : > { %4778 = vmatmul.bf16.gmra.mxu3 %v4654_v40  ;;  %v4579_v50 = vadd.f32 %v4578_v46, %v4530_v27 }
 0x35d   : > { %v4628_v29 = vadd.f32 %v4627_v15, %v4579_v50  ;;  %v4683_v50 = vunpack.c.h.bf16 %v385_v1 }
 0x35f   : > { %v4646_v10 = vmax.f32 %v4628_v29, 0.0 }
 0x361   : > { %v4629_v2 = vpop.f32.mrf.mxu2 }
 0x362   : > { %v4580_v12 = vpop.f32.mrf.mxu1 }
 0x363   : > { %v4581_v61 = vadd.f32 %v4580_v12, %v4532_v25 }
 0x365   : > { %v4630_v24 = vadd.f32 %v4629_v2, %v4581_v61 }
 0x367   : > { %v4647_v33 = vmax.f32 %v4630_v24, 0.0 }
 0x369   : > { %v4655_v53 = vpack.c.bf16 %v4647_v33, %v4646_v10  ;;  %v387_v33 = vld [vmem:[%s6619_s14 + $0x3c] sm:$0xff]  }
 0x36a   : > { %v4685_v6 = vunpack.c.h.bf16 %v387_v33 }
 0x36b   : > { %4783 = vmatmul.bf16.gmra.mxu3 %v4655_v53  ;;  %v4684_v53 = vunpack.c.l.bf16 %v387_v33 }
 0x38e   : > { %v4754_v14 = vpop.f32.mrf.mxu3 }
 0x38f   : > { %v4755_v21 = vadd.f32 %v9210_v45, %v4754_v14 }
 0x391   : > { %v4791_v57 = vadd.f32 %v4755_v21, %v4674_v18 }
 0x393   : > { %v4807_v58 = vmax.f32 %v4791_v57, 0.0 }
 0x396   : > { %v4756_v11 = vpop.f32.mrf.mxu3 }
 0x397   : > { %v4757_v13 = vadd.f32 %v9210_v45, %v4756_v11 }
 0x399   : > { %v4792_v34 = vadd.f32 %v4757_v13, %v4675_v51 }
 0x39b   : > { %v4808_v54 = vmax.f32 %v4792_v34, 0.0 }
 0x39d   : > { %v5932_v16 = vpack.c.bf16 %v4808_v54, %v4807_v58  ;;  %v389_v54 = vld [vmem:[%s6619_s14 + $0x44] sm:$0xff]   ;;  %s4870_s14 = sshll.u32 %s4867_s30, 4  ;;  %s4871_s14 = int_to_ptr.hbm [resolvable:$true] %s4870_s14 }
 0x39e   : > { %v4759_v22 = vpop.f32.mrf.mxu3  ;;  %v4687_v28 = vunpack.c.h.bf16 %v389_v54  ;;  %s6279_s13 = sshra.s32 %s4871_s14, 4  ;;  %s6280_s13 = int_to_ptr.hbm [resolvable:$true] %s6279_s13 }
 0x39f   : > { %5974 = vst [vmem:[%s9222_s6 + $0x8] sm:$0xff] %v5932_v16   ;;  %v4760_v60 = vadd.f32 %v9210_v45, %v4759_v22  ;;  %v4686_v16 = vunpack.c.l.bf16 %v389_v54  ;;  %s6281_s21 = scalar_lea.hbm %s6280_s13, 64  ;;  %p6286_p0 = scmp.lt.s32.totalorder %s6280_s13, %s9834_s2 }
 0x3a0   : > { %p6282_p1 = scmp.ne.s32.totalorder %s6280_s13, %s6281_s21  ;;  %p6287_p2 = scmp.lt.s32.totalorder %s6285_s20, %s6281_s21 }
 0x3a1   : > { %v4793_v19 = vadd.f32 %v4760_v60, %v4676_v63 }
 0x3a2   : > { %p6283_p4 = pnand %p6282_p1, %p6516_p6  ;;  %p6288_p3 = por %p6287_p2, %p6286_p0 }
 0x3a3   : > { %v4809_v0 = vmax.f32 %v4793_v19, 0.0 }
 0x3a4   : > { %p6284_p11 = pneg %p6283_p4 }
 0x3a6   : > { %v4761_v8 = vpop.f32.mrf.mxu3  ;;  %p6289_p5 = pnand %p6288_p3, %p6284_p11 }
 0x3a7   : > { %v4762_v59 = vadd.f32 %v9210_v45, %v4761_v8 }
 0x3a9   : > { %v4794_v49 = vadd.f32 %v4762_v59, %v4677_v47 }
 0x3ab   : > { %v4810_v37 = vmax.f32 %v4794_v49, 0.0 }
 0x3ad   : > { %v5937_v23 = vpack.c.bf16 %v4810_v37, %v4809_v0 }
 0x3ae   : > { %v4764_v43 = vpop.f32.mrf.mxu3 }
 0x3af   : > { %5975 = vst [vmem:[%s9222_s6 + $0x10] sm:$0xff] %v5937_v23   ;;  %v4765_v52 = vadd.f32 %v9210_v45, %v4764_v43 }
 0x3b1   : > { %v4795_v17 = vadd.f32 %v4765_v52, %v4678_v31 }
 0x3b3   : > { %v4811_v5 = vmax.f32 %v4795_v17, 0.0 }
 0x3b6   : > { %v4766_v26 = vpop.f32.mrf.mxu3 }
 0x3b7   : > { %v4767_v56 = vadd.f32 %v9210_v45, %v4766_v26 }
 0x3b9   : > { %v4796_v48 = vadd.f32 %v4767_v56, %v4679_v62 }
 0x3bb   : > { %v4812_v39 = vmax.f32 %v4796_v48, 0.0 }
 0x3bd   : > { %v5942_v38 = vpack.c.bf16 %v4812_v39, %v4811_v5 }
 0x3be   : > { %v4769_v30 = vpop.f32.mrf.mxu3 }
 0x3bf   : > { %5976 = vst [vmem:[%s9222_s6 + $0x18] sm:$0xff] %v5942_v38   ;;  %v4770_v55 = vadd.f32 %v9210_v45, %v4769_v30 }
 0x3c1   : > { %v4797_v42 = vadd.f32 %v4770_v55, %v4680_v3 }
 0x3c3   : > { %v4813_v36 = vmax.f32 %v4797_v42, 0.0 }
 0x3c6   : > { %v4771_v9 = vpop.f32.mrf.mxu3 }
 0x3c7   : > { %v4772_v7 = vadd.f32 %v9210_v45, %v4771_v9 }
 0x3c9   : > { %v4798_v44 = vadd.f32 %v4772_v7, %v4681_v32 }
 0x3cb   : > { %v4814_v40 = vmax.f32 %v4798_v44, 0.0 }
 0x3cd   : > { %v5947_v15 = vpack.c.bf16 %v4814_v40, %v4813_v36 }
 0x3ce   : > { %v4774_v46 = vpop.f32.mrf.mxu3 }
 0x3cf   : > { %5977 = vst [vmem:[%s9222_s6 + $0x20] sm:$0xff] %v5947_v15   ;;  %v4775_v27 = vadd.f32 %v9210_v45, %v4774_v46 }
 0x3d1   : > { %v4799_v25 = vadd.f32 %v4775_v27, %v4682_v35 }
 0x3d3   : > { %v4815_v61 = vmax.f32 %v4799_v25, 0.0 }
 0x3d6   : > { %v4776_v20 = vpop.f32.mrf.mxu3 }
 0x3d7   : > { %v4777_v12 = vadd.f32 %v9210_v45, %v4776_v20 }
 0x3d9   : > { %v4800_v29 = vadd.f32 %v4777_v12, %v4683_v50 }
 0x3db   : > { %v4816_v2 = vmax.f32 %v4800_v29, 0.0 }
 0x3dd   : > { %v5952_v24 = vpack.c.bf16 %v4816_v2, %v4815_v61 }
 0x3de   : > { %v4779_v10 = vpop.f32.mrf.mxu3 }
 0x3df   : > { %5978 = vst [vmem:[%s9222_s6 + $0x28] sm:$0xff] %v5952_v24   ;;  %v4780_v14 = vadd.f32 %v9210_v45, %v4779_v10 }
 0x3e1   : > { %v4801_v21 = vadd.f32 %v4780_v14, %v4684_v53 }
 0x3e3   : > { %v4817_v57 = vmax.f32 %v4801_v21, 0.0 }
 0x3e6   : > { %v4781_v18 = vpop.f32.mrf.mxu3 }
 0x3e7   : > { %v4782_v51 = vadd.f32 %v9210_v45, %v4781_v18 }
 0x3e9   : > { %v4802_v11 = vadd.f32 %v4782_v51, %v4685_v6 }
 0x3eb   : > { %v4818_v13 = vmax.f32 %v4802_v11, 0.0 }
 0x3ed   : > { %v5957_v34 = vpack.c.bf16 %v4818_v13, %v4817_v57 }
 0x3ee   : > { %v4784_v58 = vpop.f32.mrf.mxu3 }
 0x3ef   : > { %5979 = vst [vmem:[%s9222_s6 + $0x30] sm:$0xff] %v5957_v34   ;;  %v4785_v22 = vadd.f32 %v9210_v45, %v4784_v58 }
 0x3f1   : > { %v4803_v60 = vadd.f32 %v4785_v22, %v4686_v16 }
 0x3f3   : > { %v4819_v19 = vmax.f32 %v4803_v60, 0.0 }
 0x3f6   : > { %v4786_v63 = vpop.f32.mrf.mxu3 }
 0x3f7   : > { %v4787_v47 = vadd.f32 %v9210_v45, %v4786_v63 }
 0x3f9   : > { %v4804_v8 = vadd.f32 %v4787_v47, %v4687_v28 }
 0x3fb   : > { %v4820_v59 = vmax.f32 %v4804_v8, 0.0 }
 0x3fd   : > { %v5962_v49 = vpack.c.bf16 %v4820_v59, %v4819_v19 }
 0x3ff   : > { %5980 = vst [vmem:[%s9222_s6 + $0x38] sm:$0xff] %v5962_v49  }
 0x400   : > { %6292 = shalt.err (!%p6289_p5)
}
 0x401   : > { %s6404_s17 = smov 64   ;;  %s6405_s6 = smov 4  }
 0x402   : > { %6014 = dma.vmem_to_hbm [thread:$0]  (%p6516_p6), %s4869_s19, 1024, %s4871_s14, %s4854_s12, %s6404_s17, %s6404_s17, %s6405_s6  }
 0x403 PF: > { %s9836_s10 = sld [smem:[#allocation17_spill]]  ;;  %p6041_p7 = scmp.ge.s32.totalorder %s6395_s11, 2 }
 0x405   : > { %p6031_p8 = pnand %p6041_p7, %p6522_p10 }
 0x407   : > { %p6032_p9 = pneg %p6031_p8 }
 0x409   : > { %s4885_s16 = sand.u32 1, %s9836_s10  }
 0x40a   : > { %s4886_s18 = scalar_lea.sflag [#allocation6], %s4885_s16 }
 0x40b   : > { %6350 = dma.done.wait (%p6032_p9), %s4886_s18, 1024  }
 0x40c   : > { %6352 = vsyncadd (%p6032_p9), %s4886_s18, 4294966272  ;;  %s25_s11 = sadd.s32 1, %s6395_s11   ;;  %s9838_s30 = sld [smem:[#allocation19_spill]] }
 0x40d   : > { %p22_p12 = scmp.ge.s32.totalorder %s25_s11, 6   ;;  %s9839_s8 = sld [smem:[#allocation20_spill]] }
 0x40e   : > { %s9840_s9 = sld [smem:[#allocation23_spill]]  ;;  %s9842_s24 = smov %s6359_s25 }
 0x40f   : > { %s9841_s10 = sld [smem:[#allocation24_spill]]  ;;  %s9843_s25 = smov %s6363_s26 }
 0x410   : > { %s9844_s26 = smov %s6589_s3  ;;  %s9845_s27 = smov %s6371_s28 }
 0x411   : > { %s9846_s28 = smov %s6375_s29  ;;  %s9847_s29 = smov %s6586_s1 }
 0x412   :  { %24 = sbr.rel (!%p22_p12) target bundleno = 17 (0x11), region = 106 }
 0x417   :  { %4892 = vsyncpa [#allocation5], 1 }
 0x418   :  { %4894 = vsyncpa [#allocation5 + $0x1], 1 }
 0x419   :  { %4895 = vsyncpa [#allocation8], 1 }
 0x41a   :  { %4896 = vsyncpa [#allocation11], 1 }
 0x41b   :  { %4897 = vsyncpa [#allocation6], 1 }
 0x41c   :  { %4899 = vsyncpa [#allocation6 + $0x1], 1 }

</bundles_post_ra>
